<compile_context>
chip_gen: v7x
topology: tpu7x:2x2x1
jax: 0.10.0
libtpu: 0.0.40
codegen_flags: <defaults>
</compile_context>

<pallas_src>
import jax
import jax.numpy as jnp
from jax import lax
from jax.experimental import pallas as pl
from jax.experimental.pallas import tpu as pltpu

NUM_GROUPS = 32      # normalization(channels) == GroupNorm(32, channels)
GN_EPS = 1e-5


# ------------------------------------------------------------------------------- kernel
def _make_kernel(C, T, H, F, DBLK, G, has_mask, compute_dtype):
    gs = C // G
    M = DBLK * T
    cdt = compute_dtype
    f32 = jnp.float32

    DN_FF = (((2,), (2,)), ((0,), (0,)))   # contract last dims, batch = leading dim
    DN_SV = (((2,), (1,)), ((0,), (0,)))   # contract lhs[-1] with rhs[1], batch = leading dim

    def kernel(*refs):
        x_ref, rk_ref, rq_ref, rv_ref = refs[:4]
        rest = refs[4:]
        if has_mask:
            mb_ref, rest = rest[0], rest[1:]
        (gmat_ref, gmatT_ref, gnw_ref, gnb_ref, wqkv_ref, bqkv_ref, wp_ref, bp_ref,
         o_ref, xn_scr, q_scr, k_scr, v_scr, ao_scr, aoc_scr) = rest

        h = pl.program_id(2)

        # ---- phase 1 (h == 0): GroupNorm(32, C) + fat qkv projection, staged per head ----
        @pl.when(h == 0)
        def _():
            x = x_ref[...]                                   # (DBLK, T, C) f32
            gmat = gmat_ref[...]                             # (C, G)  channel -> group one-hot
            gmat_t = gmatT_ref[...]                          # (G, C)  group   -> channel
            inv_n = 1.0 / float(T * gs)
            # two-pass statistics over (channels-in-group x T), per d
            s1 = jnp.sum(x, axis=1)                                               # (DBLK, C)
            mean = jnp.dot(jnp.dot(s1, gmat, preferred_element_type=f32) * inv_n,
                           gmat_t, preferred_element_type=f32)                    # (DBLK, C)
            xc = x - mean[:, None, :]
            s2 = jnp.sum(xc * xc, axis=1)                                         # (DBLK, C)
            var = jnp.dot(s2, gmat, preferred_element_type=f32) * inv_n           # (DBLK, G)
            inv_std = jnp.dot(lax.rsqrt(var + GN_EPS), gmat_t,
                              preferred_element_type=f32)                          # (DBLK, C)
            xn = xc * inv_std[:, None, :] * gnw_ref[...] + gnb_ref[...]
            xn_scr[...] = xn                                  # kept f32 for the residual

            # one fat (M, C) @ (C, 3C) MXU matmul; q columns are pre-scaled by 1/sqrt(F)
            qkv = jnp.dot(xn.reshape(M, C).astype(cdt), wqkv_ref[...],
                          preferred_element_type=f32) + bqkv_ref[...]             # (M, 3C) f32
            # stage head-major (H, M, F) slices; qkv columns are already head-major so every
            # store is a contiguous static lane slice (done once per d-block, reused H times)
            for i in range(H):
                q_scr[i] = qkv[:, i * F:(i + 1) * F].astype(cdt)
                k_scr[i] = qkv[:, C + i * F:C + (i + 1) * F].astype(cdt)
                v_scr[i] = qkv[:, 2 * C + i * F:2 * C + (i + 1) * F].astype(cdt)

        # ---- phase 2 (every h): attention for head h, batched over the DBLK d's ----
        qh = q_scr[h].reshape(DBLK, T, F)                    # [d, t, f]  (cdt)
        kh = k_scr[h].reshape(DBLK, T, F)                    # [d, s, f]
        vh = v_scr[h].reshape(DBLK, T, F)                    # [d, s, f]
        rk = rk_ref[...]                                     # (T, S, F)  this head only
        rq = rq_ref[...]                                     # (S, T, F)  pre-scaled by 1/sqrt(F)
        rv = rv_ref[...]                                     # (T, S, F)

        # q @ k^T, batched over d (M = T rows per MXU pass)
        attn = lax.dot_general(qh, kh, DN_FF, preferred_element_type=f32)          # (d, t, s)

        # rpe_k: attn[d,t,s] += sum_f q[d,t,f] * Rk[t,s,f]   -- batched over t, M = DBLK
        qh_t = pltpu.einshape("dtf->tdf", qh)                                       # (t, d, f)
        rpek = lax.dot_general(qh_t, rk, DN_FF, preferred_element_type=f32)         # (t, d, s)
        attn = attn + pltpu.einshape("tds->dts", rpek)

        # rpe_q: attn[d,t,s] += sum_f k[d,s,f] * Rq_scaled[s,t,f] -- batched over s, M = DBLK
        kh_t = pltpu.einshape("dsf->sdf", kh)                                        # (s, d, f)
        rpeq = lax.dot_general(kh_t, rq, DN_FF, preferred_element_type=f32)          # (s, d, t)
        attn = attn + jnp.swapaxes(pltpu.einshape("sdt->dst", rpeq), 1, 2)           # -> (d, t, s)

        if has_mask:
            # additive -inf bias; fully-masked rows yield NaN exactly like the torch reference
            attn = attn + mb_ref[...]

        # softmax over s: f32 statistics; approx reciprocal runs on the EUP (~1e-3 rel. error)
        mx = jnp.max(attn, axis=-1, keepdims=True)
        p = jnp.exp(attn - mx)
        p = p * pl.reciprocal(jnp.sum(p, axis=-1, keepdims=True), approx=True)
        pc = p.astype(cdt)

        out = lax.dot_general(pc, vh, DN_SV, preferred_element_type=f32)             # (d, t, f)
        # rpe_v: out[d,t,f] += sum_s p[d,t,s] * Rv[t,s,f]    -- batched over t, M = DBLK
        pc_t = pltpu.einshape("dts->tds", pc)                                         # (t, d, s)
        rpev = lax.dot_general(pc_t, rv, DN_SV, preferred_element_type=f32)           # (t, d, f)
        out = out + pltpu.einshape("tdf->dtf", rpev)

        ao_scr[h] = out.reshape(M, F).astype(cdt)

        # ---- phase 3 (h == H-1): lane-packed fat output projection + residual ----
        @pl.when(h == H - 1)
        def _():
            for i in range(H):                               # pack heads into lanes (static slices)
                aoc_scr[:, i * F:(i + 1) * F] = ao_scr[i]
            y = jnp.dot(aoc_scr[...], wp_ref[...], preferred_element_type=f32) + bp_ref[...]
            o_ref[...] = (xn_scr[...].reshape(M, C) + y).reshape(DBLK, T, C)

    return kernel


# ------------------------------------------------------------------------------ wrapper
def rpe_attention_forward(x, temb, frame_indices, params, attn_mask=None,
                          d_block=None, compute_dtype=jnp.bfloat16):
    """RPEAttention forward.  x: (B, D, C, T) -> (B, D, C, T)."""
    B, D, C, T = x.shape
    H = params["num_heads"]
    F = C // H
    scale = F ** -0.5
    G = NUM_GROUPS if C % NUM_GROUPS == 0 else C
    gs = C // G

    # d-block auto-selection: target DBLK*T ~ 2048 rows (1024 on v7x, 64 MiB VMEM)
    if d_block is None:
        kind = ""
        try:
            kind = jax.devices()[0].device_kind.lower()
        except Exception:
            pass
        target_rows = 1024 if "v7" in kind else 2048
        d_block = 1
        for cand in range(1, D + 1):
            if D % cand == 0 and cand * T <= target_rows:
                d_block = cand
    DBLK = d_block
    assert D % DBLK == 0, "d_block must divide D"
    M = DBLK * T

    # RPENet relative-position tensors (plain XLA glue; depend only on b, not on d)
    pd = frame_indices[:, :, None] - frame_indices[:, None, :]                 # (B, T, T) int32

    def rpe_R(p):
        dist = pd.astype(jnp.float32)
        de = jnp.stack([jnp.log1p(jnp.maximum(dist, 0.0)),
                        jnp.log1p(jnp.maximum(-dist, 0.0)),
                        (pd == 0).astype(jnp.float32)], axis=-1)               # (B, T, T, 3)
        t_emb = temb @ p["w_t"].T + p["b_t"]                                   # (B, T, C)
        emb = t_emb[:, :, None, :] + de @ p["w_d"].T + p["b_d"]                # (B, T, T, C)
        r = jax.nn.silu(emb) @ p["w_o"].T + p["b_o"]                           # (B, T, T, C)
        r = r.reshape(B, T, T, H, F)
        return jnp.transpose(r, (0, 3, 1, 2, 4))                               # (B, H, T, T, F)

    Rk = rpe_R(params["rpe_k"]).astype(compute_dtype)
    Rq = (rpe_R(params["rpe_q"]) * scale).astype(compute_dtype)                # fold k*scale into Rq
    Rv = rpe_R(params["rpe_v"]).astype(compute_dtype)

    has_mask = attn_mask is not None
    mask_args = []
    if has_mask:
        m = attn_mask.astype(jnp.float32)
        allowed = m[:, None, :] * m[:, :, None] + (1 - m[:, None, :]) * (1 - m[:, :, None])
        # additive -inf bias; a fully-masked row produces NaN, matching the torch reference
        mask_args = [jnp.where(allowed > 0, 0.0, -jnp.inf).astype(jnp.float32)]    # (B, T, T)

    # GroupNorm one-hot channel<->group matrices, hoisted out of the kernel (loop invariant)
    ch_group = jnp.arange(C, dtype=jnp.int32) // gs
    gmat = (ch_group[:, None] == jnp.arange(G, dtype=jnp.int32)[None, :]).astype(jnp.float32)
    gmat_t = gmat.T

    # parameters: fold 1/sqrt(F) into the q columns of the qkv projection (head-major columns)
    qcol_scale = jnp.concatenate([jnp.full((C,), scale, jnp.float32),
                                  jnp.ones((2 * C,), jnp.float32)])
    wqkv = (params["w_qkv"].T * qcol_scale[None, :]).astype(compute_dtype)         # (C, 3C)
    bqkv = (params["b_qkv"] * qcol_scale).reshape(1, 3 * C).astype(jnp.float32)
    wp = params["w_proj"].T.astype(compute_dtype)                                  # (C, C)
    bp = params["b_proj"].reshape(1, C).astype(jnp.float32)
    gnw = params["gn_w"].reshape(1, C).astype(jnp.float32)
    gnb = params["gn_b"].reshape(1, C).astype(jnp.float32)

    x_tc = jnp.transpose(x, (0, 1, 3, 2)).astype(jnp.float32)                      # (B, D, T, C)

    kernel = _make_kernel(C, T, H, F, DBLK, G, has_mask, compute_dtype)
    grid = (B, D // DBLK, H)

    # generation-aware VMEM limit (v5e/v6e: 128 MiB physical, v7x: 64 MiB)
    try:
        vmem_cap = int(pltpu.get_tpu_info().vmem_capacity_bytes)
    except Exception:
        vmem_cap = 64 * 1024 * 1024
    vmem_limit = max(32 * 1024 * 1024, int(vmem_cap * 0.85))

    def _run(single_buffer_weights):
        def rep(shape):
            n = len(shape)
            idx = lambda b, d, h, _n=n: (0,) * _n
            if single_buffer_weights:
                # grid-invariant -> a single VMEM buffer is enough (halves weight footprint)
                return pl.BlockSpec(shape, idx, pipeline_mode=pl.Buffered(1))
            return pl.BlockSpec(shape, idx)

        r_spec = pl.BlockSpec((None, None, T, T, F), lambda b, d, h: (b, h, 0, 0, 0))
        mask_specs = ([pl.BlockSpec((None, T, T), lambda b, d, h: (b, 0, 0))]
                      if has_mask else [])

        in_specs = ([pl.BlockSpec((None, DBLK, T, C), lambda b, d, h: (b, d, 0, 0)),   # x
                     r_spec, r_spec, r_spec]                                           # Rk, Rq, Rv
                    + mask_specs
                    + [rep((C, G)), rep((G, C)),                                       # groupnorm one-hots
                       rep((1, C)), rep((1, C)),                                       # gn weight / bias
                       rep((C, 3 * C)), rep((1, 3 * C)),                               # qkv W^T / bias
                       rep((C, C)), rep((1, C))])                                      # proj W^T / bias

        grid_spec = pltpu.PrefetchScalarGridSpec(
            num_scalar_prefetch=0,
            grid=grid,
            in_specs=in_specs,
            out_specs=pl.BlockSpec((None, DBLK, T, C), lambda b, d, h: (b, d, 0, 0)),
            scratch_shapes=[
                pltpu.VMEM((DBLK, T, C), jnp.float32),        # normalized x (residual)
                pltpu.VMEM((H, M, F), compute_dtype),         # q  (head-major)
                pltpu.VMEM((H, M, F), compute_dtype),         # k
                pltpu.VMEM((H, M, F), compute_dtype),         # v
                pltpu.VMEM((H, M, F), compute_dtype),         # per-head attention output
                pltpu.VMEM((M, C), compute_dtype),            # lane-packed attention output
            ])

        return pl.pallas_call(
            kernel,
            out_shape=jax.ShapeDtypeStruct((B, D, T, C), jnp.float32),
            grid_spec=grid_spec,
            compiler_params=pltpu.CompilerParams(
                dimension_semantics=("parallel", "parallel", "arbitrary"),
                vmem_limit_bytes=vmem_limit),
        )(x_tc, Rk, Rq, Rv, *mask_args, gmat, gmat_t, gnw, gnb, wqkv, bqkv, wp, bp)

    try:
        out_tc = _run(True)            # single-buffer the grid-invariant weight inputs
    except Exception:
        out_tc = _run(False)           # fallback: default double-buffering

    return jnp.transpose(out_tc, (0, 1, 3, 2))               # back to (B, D, C, T)


# ------------------------------------------------------------------- pure-JAX reference
def reference_forward(x, temb, frame_indices, params, attn_mask=None):
    B, D, C, T = x.shape
    H = params["num_heads"]
    Fh = C // H
    scale = Fh ** -0.5
    G = NUM_GROUPS if C % NUM_GROUPS == 0 else C

    xr = x.reshape(B * D, G, (C // G) * T)
    mean = xr.mean(-1, keepdims=True)
    var = ((xr - mean) ** 2).mean(-1, keepdims=True)
    xn = (xr - mean) / jnp.sqrt(var + GN_EPS)
    xn = xn.reshape(B, D, C, T) * params["gn_w"][None, None, :, None] \
        + params["gn_b"][None, None, :, None]
    xt = jnp.einsum("bdct->bdtc", xn)

    qkv = xt @ params["w_qkv"].T + params["b_qkv"]
    qkv = qkv.reshape(B, D, T, 3, H, Fh)
    qkv = jnp.transpose(qkv, (3, 0, 1, 4, 2, 5))              # (3, B, D, H, T, F)
    q, k, v = qkv[0], qkv[1], qkv[2]
    q = q * scale
    attn = jnp.einsum("bdhtf,bdhsf->bdhts", q, k)

    pd = frame_indices[:, :, None] - frame_indices[:, None, :]

    def rpe_R(p):
        d = pd.astype(jnp.float32)
        de = jnp.stack([jnp.log1p(jnp.maximum(d, 0.0)),
                        jnp.log1p(jnp.maximum(-d, 0.0)),
                        (pd == 0).astype(jnp.float32)], axis=-1)
        t_emb = temb @ p["w_t"].T + p["b_t"]
        emb = t_emb[:, :, None, :] + de @ p["w_d"].T + p["b_d"]
        r = jax.nn.silu(emb) @ p["w_o"].T + p["b_o"]
        return r.reshape(B, T, T, H, Fh)

    Rk = rpe_R(params["rpe_k"])
    Rq = rpe_R(params["rpe_q"])
    Rv = rpe_R(params["rpe_v"])

    attn = attn + jnp.einsum("bdhtf,btshf->bdhts", q, Rk)
    attn = attn + jnp.swapaxes(jnp.einsum("bdhtf,btshf->bdhts", k * scale, Rq), -1, -2)
    if attn_mask is not None:
        m = attn_mask.astype(jnp.float32)
        allowed = m[:, None, :] * m[:, :, None] + (1 - m[:, None, :]) * (1 - m[:, :, None])
        attn = attn - jnp.where(allowed > 0, 0.0, jnp.inf)[:, None, None, :, :]
    attn = jax.nn.softmax(attn, axis=-1)

    out = jnp.einsum("bdhts,bdhsf->bdhtf", attn, v)
    out = out + jnp.einsum("bdhts,btshf->bdhtf", attn, Rv)
    out = jnp.einsum("bdhtf->bdthf", out).reshape(B, D, T, C)
    out = out @ params["w_proj"].T + params["b_proj"]
    res = xt + out
    return jnp.einsum("bdtc->bdct", res)


# ------------------------------------------------------------------------------- params
def init_params(key, C, H, time_embed_dim):
    ks = jax.random.split(key, 7)

    def lin(k, out_f, in_f, s=0.2):
        kw, kb = jax.random.split(k)
        return (jax.random.normal(kw, (out_f, in_f), jnp.float32) * s,
                jax.random.normal(kb, (out_f,), jnp.float32) * s)

    def rpe_net(k):
        k1, k2, k3 = jax.random.split(k, 3)
        w_d, b_d = lin(k1, C, 3)
        w_t, b_t = lin(k2, C, time_embed_dim)
        w_o, b_o = lin(k3, C, C, s=0.05)   # torch zero-inits this; nonzero for testing
        return dict(w_d=w_d, b_d=b_d, w_t=w_t, b_t=b_t, w_o=w_o, b_o=b_o)

    w_qkv, b_qkv = lin(ks[0], 3 * C, C)
    w_proj, b_proj = lin(ks[1], C, C, s=0.05)  # torch zero_module'd; nonzero for testing
    gn_w = 1.0 + 0.1 * jax.random.normal(ks[2], (C,), jnp.float32)
    gn_b = 0.1 * jax.random.normal(ks[3], (C,), jnp.float32)
    return dict(num_heads=H, gn_w=gn_w, gn_b=gn_b,
                w_qkv=w_qkv, b_qkv=b_qkv, w_proj=w_proj, b_proj=b_proj,
                rpe_q=rpe_net(ks[4]), rpe_k=rpe_net(ks[5]), rpe_v=rpe_net(ks[6]))


if __name__ == "__main__":
    B, D, C, T = 2, 4, 32, 8
    H = 4
    TIME_EMBED_DIM = 16

    key = jax.random.PRNGKey(0)
    kx, kt, kf, kp, km = jax.random.split(key, 5)
    x = jax.random.normal(kx, (B, D, C, T), jnp.float32)
    temb = jax.random.normal(kt, (B, T, TIME_EMBED_DIM), jnp.float32)
    frame_indices = jax.random.randint(kf, (B, T), 0, 32, jnp.int32)
    params = init_params(kp, C, H, TIME_EMBED_DIM)

    ref = reference_forward(x, temb, frame_indices, params, attn_mask=None)

    # --- f32 validation, no mask, two d-blocks ---
    out = jax.block_until_ready(rpe_attention_forward(
        x, temb, frame_indices, params, attn_mask=None, d_block=2,
        compute_dtype=jnp.float32))
    err = float(jnp.max(jnp.abs(out - ref)))
    assert jnp.allclose(out, ref, atol=5e-3, rtol=5e-3), f"no-mask max abs err = {err}"

    # --- f32 validation, masked ---
    mask = jax.random.bernoulli(km, 0.7, (B, T)).astype(jnp.int32)
    ref_m = reference_forward(x, temb, frame_indices, params, attn_mask=mask)
    out_m = jax.block_until_ready(rpe_attention_forward(
        x, temb, frame_indices, params, attn_mask=mask, d_block=2,
        compute_dtype=jnp.float32))
    err_m = float(jnp.max(jnp.abs(out_m - ref_m)))
    assert jnp.allclose(out_m, ref_m, atol=5e-3, rtol=5e-3), f"mask max abs err = {err_m}"

    # --- default path: bf16 MXU operands (f32 accumulation), auto d_block ---
    out_bf16 = jax.block_until_ready(rpe_attention_forward(
        x, temb, frame_indices, params, attn_mask=None))
    err_b = float(jnp.max(jnp.abs(out_bf16 - ref)))
    assert err_b < 0.25, f"bf16 path diverged, max abs err = {err_b}"

    print("KERNEL_OK")
</pallas_src>

<mosaic_0001>
module attributes {stable_mosaic.version = 11 : i64} {
  func.func @kernel(%arg0: i32, %arg1: i32, %arg2: i32, %arg3: memref<1x2x8x32xf32, #tpu.memory_space<vmem>>, %arg4: memref<1x1x8x8x8xf32, #tpu.memory_space<vmem>>, %arg5: memref<1x1x8x8x8xf32, #tpu.memory_space<vmem>>, %arg6: memref<1x1x8x8x8xf32, #tpu.memory_space<vmem>>, %arg7: memref<32x32xf32, #tpu.memory_space<vmem>>, %arg8: memref<32x32xf32, #tpu.memory_space<vmem>>, %arg9: memref<1x32xf32, #tpu.memory_space<vmem>>, %arg10: memref<1x32xf32, #tpu.memory_space<vmem>>, %arg11: memref<32x96xf32, #tpu.memory_space<vmem>>, %arg12: memref<1x96xf32, #tpu.memory_space<vmem>>, %arg13: memref<32x32xf32, #tpu.memory_space<vmem>>, %arg14: memref<1x32xf32, #tpu.memory_space<vmem>>, %arg15: memref<1x2x8x32xf32, #tpu.memory_space<vmem>>, %arg16: memref<2x8x32xf32, #tpu.memory_space<vmem>>, %arg17: memref<4x16x8xf32, #tpu.memory_space<vmem>>, %arg18: memref<4x16x8xf32, #tpu.memory_space<vmem>>, %arg19: memref<4x16x8xf32, #tpu.memory_space<vmem>>, %arg20: memref<4x16x8xf32, #tpu.memory_space<vmem>>, %arg21: memref<16x32xf32, #tpu.memory_space<vmem>>) attributes {dimension_semantics = [#tpu.dimension_semantics<parallel>, #tpu.dimension_semantics<parallel>, #tpu.dimension_semantics<arbitrary>], iteration_bounds = array<i64: 2, 2, 4>, scalar_prefetch = 0 : i64, scratch_operands = 6 : i64, tpu.core_type = #tpu.core_type<tc>, window_params = [{transform_indices = @transform_0, window_bounds = array<i64: 1, 2, 8, 32>}, {transform_indices = @transform_1, window_bounds = array<i64: 1, 1, 8, 8, 8>}, {transform_indices = @transform_2, window_bounds = array<i64: 1, 1, 8, 8, 8>}, {transform_indices = @transform_3, window_bounds = array<i64: 1, 1, 8, 8, 8>}, {pipeline_mode = #tpu.pipeline_mode<synchronous>, transform_indices = @transform_4, window_bounds = array<i64: 32, 32>}, {pipeline_mode = #tpu.pipeline_mode<synchronous>, transform_indices = @transform_5, window_bounds = array<i64: 32, 32>}, {pipeline_mode = #tpu.pipeline_mode<synchronous>, transform_indices = @transform_6, window_bounds = array<i64: 1, 32>}, {pipeline_mode = #tpu.pipeline_mode<synchronous>, transform_indices = @transform_7, window_bounds = array<i64: 1, 32>}, {pipeline_mode = #tpu.pipeline_mode<synchronous>, transform_indices = @transform_8, window_bounds = array<i64: 32, 96>}, {pipeline_mode = #tpu.pipeline_mode<synchronous>, transform_indices = @transform_9, window_bounds = array<i64: 1, 96>}, {pipeline_mode = #tpu.pipeline_mode<synchronous>, transform_indices = @transform_10, window_bounds = array<i64: 32, 32>}, {pipeline_mode = #tpu.pipeline_mode<synchronous>, transform_indices = @transform_11, window_bounds = array<i64: 1, 32>}, {transform_indices = @transform_12, window_bounds = array<i64: 1, 2, 8, 32>}]} {
    %c0_i32 = arith.constant 0 : i32
    %0 = arith.cmpi eq, %arg2, %c0_i32 : i32
    %1 = arith.extui %0 : i1 to i32
    %c0_i32_0 = arith.constant 0 : i32
    %2 = arith.cmpi ne, %1, %c0_i32_0 : i32
    scf.if %2 {
      %c0_30 = arith.constant 0 : index
      %c0_31 = arith.constant 0 : index
      %c0_32 = arith.constant 0 : index
      %c0_33 = arith.constant 0 : index
      %54 = vector.load %arg3[%c0_30, %c0_31, %c0_32, %c0_33] : memref<1x2x8x32xf32, #tpu.memory_space<vmem>>, vector<1x2x8x32xf32>
      %55 = vector.shape_cast %54 : vector<1x2x8x32xf32> to vector<2x8x32xf32>
      %c0_34 = arith.constant 0 : index
      %c0_35 = arith.constant 0 : index
      %56 = vector.load %arg7[%c0_34, %c0_35] : memref<32x32xf32, #tpu.memory_space<vmem>>, vector<32x32xf32>
      %c0_36 = arith.constant 0 : index
      %c0_37 = arith.constant 0 : index
      %57 = vector.load %arg8[%c0_36, %c0_37] : memref<32x32xf32, #tpu.memory_space<vmem>>, vector<32x32xf32>
      %cst_38 = arith.constant dense<0.000000e+00> : vector<2x32xf32>
      %58 = vector.multi_reduction <add>, %55, %cst_38 [1] : vector<2x8x32xf32> to vector<2x32xf32>
      %cst_39 = arith.constant dense<0.000000e+00> : vector<2x32xf32>
      %59 = tpu.matmul %58, %56, %cst_39 {dimension_numbers = #tpu.dot_dimension_numbers<[1], [0], [0], [1], [0, 0, 1, 1], [], []>} : vector<2x32xf32>, vector<32x32xf32>, vector<2x32xf32> -> vector<2x32xf32>
      %cst_40 = arith.constant 1.250000e-01 : f32
      %60 = vector.broadcast %cst_40 : f32 to vector<2x32xf32>
      %61 = arith.mulf %59, %60 : vector<2x32xf32>
      %cst_41 = arith.constant dense<0.000000e+00> : vector<2x32xf32>
      %62 = tpu.matmul %61, %57, %cst_41 {dimension_numbers = #tpu.dot_dimension_numbers<[1], [0], [0], [1], [0, 0, 1, 1], [], []>} : vector<2x32xf32>, vector<32x32xf32>, vector<2x32xf32> -> vector<2x32xf32>
      %63 = vector.shape_cast %62 : vector<2x32xf32> to vector<2x1x32xf32>
      %64 = vector.broadcast %63 : vector<2x1x32xf32> to vector<2x8x32xf32>
      %65 = arith.subf %55, %64 : vector<2x8x32xf32>
      %66 = arith.mulf %65, %65 : vector<2x8x32xf32>
      %cst_42 = arith.constant dense<0.000000e+00> : vector<2x32xf32>
      %67 = vector.multi_reduction <add>, %66, %cst_42 [1] : vector<2x8x32xf32> to vector<2x32xf32>
      %cst_43 = arith.constant dense<0.000000e+00> : vector<2x32xf32>
      %68 = tpu.matmul %67, %56, %cst_43 {dimension_numbers = #tpu.dot_dimension_numbers<[1], [0], [0], [1], [0, 0, 1, 1], [], []>} : vector<2x32xf32>, vector<32x32xf32>, vector<2x32xf32> -> vector<2x32xf32>
      %cst_44 = arith.constant 1.250000e-01 : f32
      %69 = vector.broadcast %cst_44 : f32 to vector<2x32xf32>
      %70 = arith.mulf %68, %69 : vector<2x32xf32>
      %cst_45 = arith.constant 9.99999974E-6 : f32
      %71 = vector.broadcast %cst_45 : f32 to vector<2x32xf32>
      %72 = arith.addf %70, %71 : vector<2x32xf32>
      %73 = math.rsqrt %72 : vector<2x32xf32>
      %cst_46 = arith.constant dense<0.000000e+00> : vector<2x32xf32>
      %74 = tpu.matmul %73, %57, %cst_46 {dimension_numbers = #tpu.dot_dimension_numbers<[1], [0], [0], [1], [0, 0, 1, 1], [], []>} : vector<2x32xf32>, vector<32x32xf32>, vector<2x32xf32> -> vector<2x32xf32>
      %75 = vector.shape_cast %74 : vector<2x32xf32> to vector<2x1x32xf32>
      %76 = vector.broadcast %75 : vector<2x1x32xf32> to vector<2x8x32xf32>
      %77 = arith.mulf %65, %76 : vector<2x8x32xf32>
      %c0_47 = arith.constant 0 : index
      %c0_48 = arith.constant 0 : index
      %78 = vector.load %arg9[%c0_47, %c0_48] : memref<1x32xf32, #tpu.memory_space<vmem>>, vector<1x32xf32>
      %79 = vector.shape_cast %78 : vector<1x32xf32> to vector<1x1x32xf32>
      %80 = vector.broadcast %79 : vector<1x1x32xf32> to vector<2x8x32xf32>
      %81 = arith.mulf %77, %80 : vector<2x8x32xf32>
      %c0_49 = arith.constant 0 : index
      %c0_50 = arith.constant 0 : index
      %82 = vector.load %arg10[%c0_49, %c0_50] : memref<1x32xf32, #tpu.memory_space<vmem>>, vector<1x32xf32>
      %83 = vector.shape_cast %82 : vector<1x32xf32> to vector<1x1x32xf32>
      %84 = vector.broadcast %83 : vector<1x1x32xf32> to vector<2x8x32xf32>
      %85 = arith.addf %81, %84 : vector<2x8x32xf32>
      %c0_51 = arith.constant 0 : index
      %c0_52 = arith.constant 0 : index
      %c0_53 = arith.constant 0 : index
      %86 = vector.load %arg16[%c0_51, %c0_52, %c0_53] : memref<2x8x32xf32, #tpu.memory_space<vmem>>, vector<2x8x32xf32>
      tpu.vector_store %arg16[%c0_51, %c0_52, %c0_53], %85 {strides = array<i32>} : memref<2x8x32xf32, #tpu.memory_space<vmem>>, vector<2x8x32xf32>,
      %87 = vector.shape_cast %85 : vector<2x8x32xf32> to vector<16x32xf32>
      %c0_54 = arith.constant 0 : index
      %c0_55 = arith.constant 0 : index
      %88 = vector.load %arg11[%c0_54, %c0_55] : memref<32x96xf32, #tpu.memory_space<vmem>>, vector<32x96xf32>
      %cst_56 = arith.constant dense<0.000000e+00> : vector<16x96xf32>
      %89 = tpu.matmul %87, %88, %cst_56 {dimension_numbers = #tpu.dot_dimension_numbers<[1], [0], [0], [1], [0, 0, 1, 1], [], []>} : vector<16x32xf32>, vector<32x96xf32>, vector<16x96xf32> -> vector<16x96xf32>
      %c0_57 = arith.constant 0 : index
      %c0_58 = arith.constant 0 : index
      %90 = vector.load %arg12[%c0_57, %c0_58] : memref<1x96xf32, #tpu.memory_space<vmem>>, vector<1x96xf32>
      %91 = vector.broadcast %90 : vector<1x96xf32> to vector<16x96xf32>
      %92 = arith.addf %89, %91 : vector<16x96xf32>
      %93 = vector.extract_strided_slice %92 {offsets = [0, 0], sizes = [16, 8], strides = [1, 1]} : vector<16x96xf32> to vector<16x8xf32>
      %c0_59 = arith.constant 0 : index
      %c0_60 = arith.constant 0 : index
      %c0_61 = arith.constant 0 : index
      %94 = vector.load %arg17[%c0_59, %c0_60, %c0_61] : memref<4x16x8xf32, #tpu.memory_space<vmem>>, vector<1x16x8xf32>
      %95 = vector.shape_cast %94 : vector<1x16x8xf32> to vector<16x8xf32>
      %96 = vector.shape_cast %93 : vector<16x8xf32> to vector<1x16x8xf32>
      tpu.vector_store %arg17[%c0_59, %c0_60, %c0_61], %96 {strides = array<i32>} : memref<4x16x8xf32, #tpu.memory_space<vmem>>, vector<1x16x8xf32>,
      %97 = vector.extract_strided_slice %92 {offsets = [0, 32], sizes = [16, 8], strides = [1, 1]} : vector<16x96xf32> to vector<16x8xf32>
      %c0_62 = arith.constant 0 : index
      %c0_63 = arith.constant 0 : index
      %c0_64 = arith.constant 0 : index
      %98 = vector.load %arg18[%c0_62, %c0_63, %c0_64] : memref<4x16x8xf32, #tpu.memory_space<vmem>>, vector<1x16x8xf32>
      %99 = vector.shape_cast %98 : vector<1x16x8xf32> to vector<16x8xf32>
      %100 = vector.shape_cast %97 : vector<16x8xf32> to vector<1x16x8xf32>
      tpu.vector_store %arg18[%c0_62, %c0_63, %c0_64], %100 {strides = array<i32>} : memref<4x16x8xf32, #tpu.memory_space<vmem>>, vector<1x16x8xf32>,
      %101 = vector.extract_strided_slice %92 {offsets = [0, 64], sizes = [16, 8], strides = [1, 1]} : vector<16x96xf32> to vector<16x8xf32>
      %c0_65 = arith.constant 0 : index
      %c0_66 = arith.constant 0 : index
      %c0_67 = arith.constant 0 : index
      %102 = vector.load %arg19[%c0_65, %c0_66, %c0_67] : memref<4x16x8xf32, #tpu.memory_space<vmem>>, vector<1x16x8xf32>
      %103 = vector.shape_cast %102 : vector<1x16x8xf32> to vector<16x8xf32>
      %104 = vector.shape_cast %101 : vector<16x8xf32> to vector<1x16x8xf32>
      tpu.vector_store %arg19[%c0_65, %c0_66, %c0_67], %104 {strides = array<i32>} : memref<4x16x8xf32, #tpu.memory_space<vmem>>, vector<1x16x8xf32>,
      %105 = vector.extract_strided_slice %92 {offsets = [0, 8], sizes = [16, 8], strides = [1, 1]} : vector<16x96xf32> to vector<16x8xf32>
      %c1 = arith.constant 1 : index
      %c0_68 = arith.constant 0 : index
      %c0_69 = arith.constant 0 : index
      %106 = vector.load %arg17[%c1, %c0_68, %c0_69] : memref<4x16x8xf32, #tpu.memory_space<vmem>>, vector<1x16x8xf32>
      %107 = vector.shape_cast %106 : vector<1x16x8xf32> to vector<16x8xf32>
      %108 = vector.shape_cast %105 : vector<16x8xf32> to vector<1x16x8xf32>
      tpu.vector_store %arg17[%c1, %c0_68, %c0_69], %108 {strides = array<i32>} : memref<4x16x8xf32, #tpu.memory_space<vmem>>, vector<1x16x8xf32>,
      %109 = vector.extract_strided_slice %92 {offsets = [0, 40], sizes = [16, 8], strides = [1, 1]} : vector<16x96xf32> to vector<16x8xf32>
      %c1_70 = arith.constant 1 : index
      %c0_71 = arith.constant 0 : index
      %c0_72 = arith.constant 0 : index
      %110 = vector.load %arg18[%c1_70, %c0_71, %c0_72] : memref<4x16x8xf32, #tpu.memory_space<vmem>>, vector<1x16x8xf32>
      %111 = vector.shape_cast %110 : vector<1x16x8xf32> to vector<16x8xf32>
      %112 = vector.shape_cast %109 : vector<16x8xf32> to vector<1x16x8xf32>
      tpu.vector_store %arg18[%c1_70, %c0_71, %c0_72], %112 {strides = array<i32>} : memref<4x16x8xf32, #tpu.memory_space<vmem>>, vector<1x16x8xf32>,
      %113 = vector.extract_strided_slice %92 {offsets = [0, 72], sizes = [16, 8], strides = [1, 1]} : vector<16x96xf32> to vector<16x8xf32>
      %c1_73 = arith.constant 1 : index
      %c0_74 = arith.constant 0 : index
      %c0_75 = arith.constant 0 : index
      %114 = vector.load %arg19[%c1_73, %c0_74, %c0_75] : memref<4x16x8xf32, #tpu.memory_space<vmem>>, vector<1x16x8xf32>
      %115 = vector.shape_cast %114 : vector<1x16x8xf32> to vector<16x8xf32>
      %116 = vector.shape_cast %113 : vector<16x8xf32> to vector<1x16x8xf32>
      tpu.vector_store %arg19[%c1_73, %c0_74, %c0_75], %116 {strides = array<i32>} : memref<4x16x8xf32, #tpu.memory_space<vmem>>, vector<1x16x8xf32>,
      %117 = vector.extract_strided_slice %92 {offsets = [0, 16], sizes = [16, 8], strides = [1, 1]} : vector<16x96xf32> to vector<16x8xf32>
      %c2 = arith.constant 2 : index
      %c0_76 = arith.constant 0 : index
      %c0_77 = arith.constant 0 : index
      %118 = vector.load %arg17[%c2, %c0_76, %c0_77] : memref<4x16x8xf32, #tpu.memory_space<vmem>>, vector<1x16x8xf32>
      %119 = vector.shape_cast %118 : vector<1x16x8xf32> to vector<16x8xf32>
      %120 = vector.shape_cast %117 : vector<16x8xf32> to vector<1x16x8xf32>
      tpu.vector_store %arg17[%c2, %c0_76, %c0_77], %120 {strides = array<i32>} : memref<4x16x8xf32, #tpu.memory_space<vmem>>, vector<1x16x8xf32>,
      %121 = vector.extract_strided_slice %92 {offsets = [0, 48], sizes = [16, 8], strides = [1, 1]} : vector<16x96xf32> to vector<16x8xf32>
      %c2_78 = arith.constant 2 : index
      %c0_79 = arith.constant 0 : index
      %c0_80 = arith.constant 0 : index
      %122 = vector.load %arg18[%c2_78, %c0_79, %c0_80] : memref<4x16x8xf32, #tpu.memory_space<vmem>>, vector<1x16x8xf32>
      %123 = vector.shape_cast %122 : vector<1x16x8xf32> to vector<16x8xf32>
      %124 = vector.shape_cast %121 : vector<16x8xf32> to vector<1x16x8xf32>
      tpu.vector_store %arg18[%c2_78, %c0_79, %c0_80], %124 {strides = array<i32>} : memref<4x16x8xf32, #tpu.memory_space<vmem>>, vector<1x16x8xf32>,
      %125 = vector.extract_strided_slice %92 {offsets = [0, 80], sizes = [16, 8], strides = [1, 1]} : vector<16x96xf32> to vector<16x8xf32>
      %c2_81 = arith.constant 2 : index
      %c0_82 = arith.constant 0 : index
      %c0_83 = arith.constant 0 : index
      %126 = vector.load %arg19[%c2_81, %c0_82, %c0_83] : memref<4x16x8xf32, #tpu.memory_space<vmem>>, vector<1x16x8xf32>
      %127 = vector.shape_cast %126 : vector<1x16x8xf32> to vector<16x8xf32>
      %128 = vector.shape_cast %125 : vector<16x8xf32> to vector<1x16x8xf32>
      tpu.vector_store %arg19[%c2_81, %c0_82, %c0_83], %128 {strides = array<i32>} : memref<4x16x8xf32, #tpu.memory_space<vmem>>, vector<1x16x8xf32>,
      %129 = vector.extract_strided_slice %92 {offsets = [0, 24], sizes = [16, 8], strides = [1, 1]} : vector<16x96xf32> to vector<16x8xf32>
      %c3 = arith.constant 3 : index
      %c0_84 = arith.constant 0 : index
      %c0_85 = arith.constant 0 : index
      %130 = vector.load %arg17[%c3, %c0_84, %c0_85] : memref<4x16x8xf32, #tpu.memory_space<vmem>>, vector<1x16x8xf32>
      %131 = vector.shape_cast %130 : vector<1x16x8xf32> to vector<16x8xf32>
      %132 = vector.shape_cast %129 : vector<16x8xf32> to vector<1x16x8xf32>
      tpu.vector_store %arg17[%c3, %c0_84, %c0_85], %132 {strides = array<i32>} : memref<4x16x8xf32, #tpu.memory_space<vmem>>, vector<1x16x8xf32>,
      %133 = vector.extract_strided_slice %92 {offsets = [0, 56], sizes = [16, 8], strides = [1, 1]} : vector<16x96xf32> to vector<16x8xf32>
      %c3_86 = arith.constant 3 : index
      %c0_87 = arith.constant 0 : index
      %c0_88 = arith.constant 0 : index
      %134 = vector.load %arg18[%c3_86, %c0_87, %c0_88] : memref<4x16x8xf32, #tpu.memory_space<vmem>>, vector<1x16x8xf32>
      %135 = vector.shape_cast %134 : vector<1x16x8xf32> to vector<16x8xf32>
      %136 = vector.shape_cast %133 : vector<16x8xf32> to vector<1x16x8xf32>
      tpu.vector_store %arg18[%c3_86, %c0_87, %c0_88], %136 {strides = array<i32>} : memref<4x16x8xf32, #tpu.memory_space<vmem>>, vector<1x16x8xf32>,
      %137 = vector.extract_strided_slice %92 {offsets = [0, 88], sizes = [16, 8], strides = [1, 1]} : vector<16x96xf32> to vector<16x8xf32>
      %c3_89 = arith.constant 3 : index
      %c0_90 = arith.constant 0 : index
      %c0_91 = arith.constant 0 : index
      %138 = vector.load %arg19[%c3_89, %c0_90, %c0_91] : memref<4x16x8xf32, #tpu.memory_space<vmem>>, vector<1x16x8xf32>
      %139 = vector.shape_cast %138 : vector<1x16x8xf32> to vector<16x8xf32>
      %140 = vector.shape_cast %137 : vector<16x8xf32> to vector<1x16x8xf32>
      tpu.vector_store %arg19[%c3_89, %c0_90, %c0_91], %140 {strides = array<i32>} : memref<4x16x8xf32, #tpu.memory_space<vmem>>, vector<1x16x8xf32>,
    } else {
    }
    %3 = arith.index_cast %arg2 : i32 to index
    %c0 = arith.constant 0 : index
    %c0_1 = arith.constant 0 : index
    %4 = vector.load %arg17[%3, %c0, %c0_1] : memref<4x16x8xf32, #tpu.memory_space<vmem>>, vector<1x16x8xf32>
    %5 = vector.shape_cast %4 : vector<1x16x8xf32> to vector<16x8xf32>
    %6 = vector.shape_cast %5 : vector<16x8xf32> to vector<2x8x8xf32>
    %7 = arith.index_cast %arg2 : i32 to index
    %c0_2 = arith.constant 0 : index
    %c0_3 = arith.constant 0 : index
    %8 = vector.load %arg18[%7, %c0_2, %c0_3] : memref<4x16x8xf32, #tpu.memory_space<vmem>>, vector<1x16x8xf32>
    %9 = vector.shape_cast %8 : vector<1x16x8xf32> to vector<16x8xf32>
    %10 = vector.shape_cast %9 : vector<16x8xf32> to vector<2x8x8xf32>
    %11 = arith.index_cast %arg2 : i32 to index
    %c0_4 = arith.constant 0 : index
    %c0_5 = arith.constant 0 : index
    %12 = vector.load %arg19[%11, %c0_4, %c0_5] : memref<4x16x8xf32, #tpu.memory_space<vmem>>, vector<1x16x8xf32>
    %13 = vector.shape_cast %12 : vector<1x16x8xf32> to vector<16x8xf32>
    %14 = vector.shape_cast %13 : vector<16x8xf32> to vector<2x8x8xf32>
    %c0_6 = arith.constant 0 : index
    %c0_7 = arith.constant 0 : index
    %c0_8 = arith.constant 0 : index
    %c0_9 = arith.constant 0 : index
    %c0_10 = arith.constant 0 : index
    %15 = vector.load %arg4[%c0_6, %c0_7, %c0_8, %c0_9, %c0_10] : memref<1x1x8x8x8xf32, #tpu.memory_space<vmem>>, vector<1x1x8x8x8xf32>
    %16 = vector.shape_cast %15 : vector<1x1x8x8x8xf32> to vector<8x8x8xf32>
    %c0_11 = arith.constant 0 : index
    %c0_12 = arith.constant 0 : index
    %c0_13 = arith.constant 0 : index
    %c0_14 = arith.constant 0 : index
    %c0_15 = arith.constant 0 : index
    %17 = vector.load %arg5[%c0_11, %c0_12, %c0_13, %c0_14, %c0_15] : memref<1x1x8x8x8xf32, #tpu.memory_space<vmem>>, vector<1x1x8x8x8xf32>
    %18 = vector.shape_cast %17 : vector<1x1x8x8x8xf32> to vector<8x8x8xf32>
    %c0_16 = arith.constant 0 : index
    %c0_17 = arith.constant 0 : index
    %c0_18 = arith.constant 0 : index
    %c0_19 = arith.constant 0 : index
    %c0_20 = arith.constant 0 : index
    %19 = vector.load %arg6[%c0_16, %c0_17, %c0_18, %c0_19, %c0_20] : memref<1x1x8x8x8xf32, #tpu.memory_space<vmem>>, vector<1x1x8x8x8xf32>
    %20 = vector.shape_cast %19 : vector<1x1x8x8x8xf32> to vector<8x8x8xf32>
    %cst = arith.constant dense<0.000000e+00> : vector<2x8x8xf32>
    %21 = tpu.matmul %6, %10, %cst {dimension_numbers = #tpu.dot_dimension_numbers<[2], [2], [1], [1], [0, 0, 0, 1, 1, 1], [0], [0]>} : vector<2x8x8xf32>, vector<2x8x8xf32>, vector<2x8x8xf32> -> vector<2x8x8xf32>
    %22 = tpu.transpose %6, [1, 0, 2] : vector<2x8x8xf32> -> vector<8x2x8xf32>
    %cst_21 = arith.constant dense<0.000000e+00> : vector<8x2x8xf32>
    %23 = tpu.matmul %22, %16, %cst_21 {dimension_numbers = #tpu.dot_dimension_numbers<[2], [2], [1], [1], [0, 0, 0, 1, 1, 1], [0], [0]>} : vector<8x2x8xf32>, vector<8x8x8xf32>, vector<8x2x8xf32> -> vector<8x2x8xf32>
    %24 = tpu.transpose %23, [1, 0, 2] : vector<8x2x8xf32> -> vector<2x8x8xf32>
    %25 = arith.addf %21, %24 : vector<2x8x8xf32>
    %26 = tpu.transpose %10, [1, 0, 2] : vector<2x8x8xf32> -> vector<8x2x8xf32>
    %cst_22 = arith.constant dense<0.000000e+00> : vector<8x2x8xf32>
    %27 = tpu.matmul %26, %18, %cst_22 {dimension_numbers = #tpu.dot_dimension_numbers<[2], [2], [1], [1], [0, 0, 0, 1, 1, 1], [0], [0]>} : vector<8x2x8xf32>, vector<8x8x8xf32>, vector<8x2x8xf32> -> vector<8x2x8xf32>
    %28 = tpu.transpose %27, [1, 0, 2] : vector<8x2x8xf32> -> vector<2x8x8xf32>
    %29 = tpu.transpose %28, [0, 2, 1] : vector<2x8x8xf32> -> vector<2x8x8xf32>
    %30 = arith.addf %25, %29 : vector<2x8x8xf32>
    %cst_23 = arith.constant dense<0xFF800000> : vector<2x8xf32>
    %31 = vector.multi_reduction <maximumf>, %30, %cst_23 [2] : vector<2x8x8xf32> to vector<2x8xf32>
    %32 = vector.shape_cast %31 : vector<2x8xf32> to vector<2x8x1xf32>
    %33 = vector.broadcast %32 : vector<2x8x1xf32> to vector<2x8x8xf32>
    %34 = arith.subf %30, %33 : vector<2x8x8xf32>
    %35 = math.exp %34 : vector<2x8x8xf32>
    %cst_24 = arith.constant dense<0.000000e+00> : vector<2x8xf32>
    %36 = vector.multi_reduction <add>, %35, %cst_24 [2] : vector<2x8x8xf32> to vector<2x8xf32>
    %37 = vector.shape_cast %36 : vector<2x8xf32> to vector<2x8x1xf32>
    %38 = tpu.reciprocal %37 {approx = true} : vector<2x8x1xf32> -> vector<2x8x1xf32>
    %39 = vector.broadcast %38 : vector<2x8x1xf32> to vector<2x8x8xf32>
    %40 = arith.mulf %35, %39 : vector<2x8x8xf32>
    %cst_25 = arith.constant dense<0.000000e+00> : vector<2x8x8xf32>
    %41 = tpu.matmul %40, %14, %cst_25 {dimension_numbers = #tpu.dot_dimension_numbers<[2], [1], [1], [2], [0, 0, 0, 1, 1, 2], [0], [0]>} : vector<2x8x8xf32>, vector<2x8x8xf32>, vector<2x8x8xf32> -> vector<2x8x8xf32>
    %42 = tpu.transpose %40, [1, 0, 2] : vector<2x8x8xf32> -> vector<8x2x8xf32>
    %cst_26 = arith.constant dense<0.000000e+00> : vector<8x2x8xf32>
    %43 = tpu.matmul %42, %20, %cst_26 {dimension_numbers = #tpu.dot_dimension_numbers<[2], [1], [1], [2], [0, 0, 0, 1, 1, 2], [0], [0]>} : vector<8x2x8xf32>, vector<8x8x8xf32>, vector<8x2x8xf32> -> vector<8x2x8xf32>
    %44 = tpu.transpose %43, [1, 0, 2] : vector<8x2x8xf32> -> vector<2x8x8xf32>
    %45 = arith.addf %41, %44 : vector<2x8x8xf32>
    %46 = vector.shape_cast %45 : vector<2x8x8xf32> to vector<16x8xf32>
    %47 = arith.index_cast %arg2 : i32 to index
    %c0_27 = arith.constant 0 : index
    %c0_28 = arith.constant 0 : index
    %48 = vector.load %arg20[%47, %c0_27, %c0_28] : memref<4x16x8xf32, #tpu.memory_space<vmem>>, vector<1x16x8xf32>
    %49 = vector.shape_cast %48 : vector<1x16x8xf32> to vector<16x8xf32>
    %50 = vector.shape_cast %46 : vector<16x8xf32> to vector<1x16x8xf32>
    tpu.vector_store %arg20[%47, %c0_27, %c0_28], %50 {strides = array<i32>} : memref<4x16x8xf32, #tpu.memory_space<vmem>>, vector<1x16x8xf32>,
    %c3_i32 = arith.constant 3 : i32
    %51 = arith.cmpi eq, %arg2, %c3_i32 : i32
    %52 = arith.extui %51 : i1 to i32
    %c0_i32_29 = arith.constant 0 : i32
    %53 = arith.cmpi ne, %52, %c0_i32_29 : i32
    scf.if %53 {
      %c0_30 = arith.constant 0 : index
      %c0_31 = arith.constant 0 : index
      %c0_32 = arith.constant 0 : index
      %54 = vector.load %arg20[%c0_30, %c0_31, %c0_32] : memref<4x16x8xf32, #tpu.memory_space<vmem>>, vector<1x16x8xf32>
      %55 = vector.shape_cast %54 : vector<1x16x8xf32> to vector<16x8xf32>
      %c0_33 = arith.constant 0 : index
      %c0_34 = arith.constant 0 : index
      %56 = vector.load %arg21[%c0_33, %c0_34] : memref<16x32xf32, #tpu.memory_space<vmem>>, vector<16x8xf32>
      tpu.vector_store %arg21[%c0_33, %c0_34], %55 {strides = array<i32>} : memref<16x32xf32, #tpu.memory_space<vmem>>, vector<16x8xf32>,
      %c1 = arith.constant 1 : index
      %c0_35 = arith.constant 0 : index
      %c0_36 = arith.constant 0 : index
      %57 = vector.load %arg20[%c1, %c0_35, %c0_36] : memref<4x16x8xf32, #tpu.memory_space<vmem>>, vector<1x16x8xf32>
      %58 = vector.shape_cast %57 : vector<1x16x8xf32> to vector<16x8xf32>
      %c0_37 = arith.constant 0 : index
      %c8 = arith.constant 8 : index
      %59 = vector.load %arg21[%c0_37, %c8] : memref<16x32xf32, #tpu.memory_space<vmem>>, vector<16x8xf32>
      tpu.vector_store %arg21[%c0_37, %c8], %58 {strides = array<i32>} : memref<16x32xf32, #tpu.memory_space<vmem>>, vector<16x8xf32>,
      %c2 = arith.constant 2 : index
      %c0_38 = arith.constant 0 : index
      %c0_39 = arith.constant 0 : index
      %60 = vector.load %arg20[%c2, %c0_38, %c0_39] : memref<4x16x8xf32, #tpu.memory_space<vmem>>, vector<1x16x8xf32>
      %61 = vector.shape_cast %60 : vector<1x16x8xf32> to vector<16x8xf32>
      %c0_40 = arith.constant 0 : index
      %c16 = arith.constant 16 : index
      %62 = vector.load %arg21[%c0_40, %c16] : memref<16x32xf32, #tpu.memory_space<vmem>>, vector<16x8xf32>
      tpu.vector_store %arg21[%c0_40, %c16], %61 {strides = array<i32>} : memref<16x32xf32, #tpu.memory_space<vmem>>, vector<16x8xf32>,
      %c3 = arith.constant 3 : index
      %c0_41 = arith.constant 0 : index
      %c0_42 = arith.constant 0 : index
      %63 = vector.load %arg20[%c3, %c0_41, %c0_42] : memref<4x16x8xf32, #tpu.memory_space<vmem>>, vector<1x16x8xf32>
      %64 = vector.shape_cast %63 : vector<1x16x8xf32> to vector<16x8xf32>
      %c0_43 = arith.constant 0 : index
      %c24 = arith.constant 24 : index
      %65 = vector.load %arg21[%c0_43, %c24] : memref<16x32xf32, #tpu.memory_space<vmem>>, vector<16x8xf32>
      tpu.vector_store %arg21[%c0_43, %c24], %64 {strides = array<i32>} : memref<16x32xf32, #tpu.memory_space<vmem>>, vector<16x8xf32>,
      %c0_44 = arith.constant 0 : index
      %c0_45 = arith.constant 0 : index
      %66 = vector.load %arg21[%c0_44, %c0_45] : memref<16x32xf32, #tpu.memory_space<vmem>>, vector<16x32xf32>
      %c0_46 = arith.constant 0 : index
      %c0_47 = arith.constant 0 : index
      %67 = vector.load %arg13[%c0_46, %c0_47] : memref<32x32xf32, #tpu.memory_space<vmem>>, vector<32x32xf32>
      %cst_48 = arith.constant dense<0.000000e+00> : vector<16x32xf32>
      %68 = tpu.matmul %66, %67, %cst_48 {dimension_numbers = #tpu.dot_dimension_numbers<[1], [0], [0], [1], [0, 0, 1, 1], [], []>} : vector<16x32xf32>, vector<32x32xf32>, vector<16x32xf32> -> vector<16x32xf32>
      %c0_49 = arith.constant 0 : index
      %c0_50 = arith.constant 0 : index
      %69 = vector.load %arg14[%c0_49, %c0_50] : memref<1x32xf32, #tpu.memory_space<vmem>>, vector<1x32xf32>
      %70 = vector.broadcast %69 : vector<1x32xf32> to vector<16x32xf32>
      %71 = arith.addf %68, %70 : vector<16x32xf32>
      %c0_51 = arith.constant 0 : index
      %c0_52 = arith.constant 0 : index
      %c0_53 = arith.constant 0 : index
      %72 = vector.load %arg16[%c0_51, %c0_52, %c0_53] : memref<2x8x32xf32, #tpu.memory_space<vmem>>, vector<2x8x32xf32>
      %73 = vector.shape_cast %72 : vector<2x8x32xf32> to vector<16x32xf32>
      %74 = arith.addf %73, %71 : vector<16x32xf32>
      %75 = vector.shape_cast %74 : vector<16x32xf32> to vector<2x8x32xf32>
      %c0_54 = arith.constant 0 : index
      %c0_55 = arith.constant 0 : index
      %c0_56 = arith.constant 0 : index
      %c0_57 = arith.constant 0 : index
      %76 = vector.load %arg15[%c0_54, %c0_55, %c0_56, %c0_57] : memref<1x2x8x32xf32, #tpu.memory_space<vmem>>, vector<1x2x8x32xf32>
      %77 = vector.shape_cast %76 : vector<1x2x8x32xf32> to vector<2x8x32xf32>
      %78 = vector.shape_cast %75 : vector<2x8x32xf32> to vector<1x2x8x32xf32>
      tpu.vector_store %arg15[%c0_54, %c0_55, %c0_56, %c0_57], %78 {strides = array<i32>} : memref<1x2x8x32xf32, #tpu.memory_space<vmem>>, vector<1x2x8x32xf32>,
    } else {
    }
    return
  }
  func.func @transform_0(%arg0: i32, %arg1: i32, %arg2: i32) -> (i32, i32, i32, i32) {
    %c0_i32 = arith.constant 0 : i32
    %c0_i32_0 = arith.constant 0 : i32
    %c0_i32_1 = arith.constant 0 : i32
    return %arg0, %arg1, %c0_i32, %c0_i32_0 : i32, i32, i32, i32
  }
  func.func @transform_1(%arg0: i32, %arg1: i32, %arg2: i32) -> (i32, i32, i32, i32, i32) {
    %c0_i32 = arith.constant 0 : i32
    %c0_i32_0 = arith.constant 0 : i32
    %c0_i32_1 = arith.constant 0 : i32
    %c0_i32_2 = arith.constant 0 : i32
    return %arg0, %arg2, %c0_i32, %c0_i32_0, %c0_i32_1 : i32, i32, i32, i32, i32
  }
  func.func @transform_2(%arg0: i32, %arg1: i32, %arg2: i32) -> (i32, i32, i32, i32, i32) {
    %c0_i32 = arith.constant 0 : i32
    %c0_i32_0 = arith.constant 0 : i32
    %c0_i32_1 = arith.constant 0 : i32
    %c0_i32_2 = arith.constant 0 : i32
    return %arg0, %arg2, %c0_i32, %c0_i32_0, %c0_i32_1 : i32, i32, i32, i32, i32
  }
  func.func @transform_3(%arg0: i32, %arg1: i32, %arg2: i32) -> (i32, i32, i32, i32, i32) {
    %c0_i32 = arith.constant 0 : i32
    %c0_i32_0 = arith.constant 0 : i32
    %c0_i32_1 = arith.constant 0 : i32
    %c0_i32_2 = arith.constant 0 : i32
    return %arg0, %arg2, %c0_i32, %c0_i32_0, %c0_i32_1 : i32, i32, i32, i32, i32
  }
  func.func @transform_4(%arg0: i32, %arg1: i32, %arg2: i32) -> (i32, i32) {
    %c0_i32 = arith.constant 0 : i32
    %c0_i32_0 = arith.constant 0 : i32
    %c0_i32_1 = arith.constant 0 : i32
    return %c0_i32, %c0_i32_0 : i32, i32
  }
  func.func @transform_5(%arg0: i32, %arg1: i32, %arg2: i32) -> (i32, i32) {
    %c0_i32 = arith.constant 0 : i32
    %c0_i32_0 = arith.constant 0 : i32
    %c0_i32_1 = arith.constant 0 : i32
    return %c0_i32, %c0_i32_0 : i32, i32
  }
  func.func @transform_6(%arg0: i32, %arg1: i32, %arg2: i32) -> (i32, i32) {
    %c0_i32 = arith.constant 0 : i32
    %c0_i32_0 = arith.constant 0 : i32
    %c0_i32_1 = arith.constant 0 : i32
    return %c0_i32, %c0_i32_0 : i32, i32
  }
  func.func @transform_7(%arg0: i32, %arg1: i32, %arg2: i32) -> (i32, i32) {
    %c0_i32 = arith.constant 0 : i32
    %c0_i32_0 = arith.constant 0 : i32
    %c0_i32_1 = arith.constant 0 : i32
    return %c0_i32, %c0_i32_0 : i32, i32
  }
  func.func @transform_8(%arg0: i32, %arg1: i32, %arg2: i32) -> (i32, i32) {
    %c0_i32 = arith.constant 0 : i32
    %c0_i32_0 = arith.constant 0 : i32
    %c0_i32_1 = arith.constant 0 : i32
    return %c0_i32, %c0_i32_0 : i32, i32
  }
  func.func @transform_9(%arg0: i32, %arg1: i32, %arg2: i32) -> (i32, i32) {
    %c0_i32 = arith.constant 0 : i32
    %c0_i32_0 = arith.constant 0 : i32
    %c0_i32_1 = arith.constant 0 : i32
    return %c0_i32, %c0_i32_0 : i32, i32
  }
  func.func @transform_10(%arg0: i32, %arg1: i32, %arg2: i32) -> (i32, i32) {
    %c0_i32 = arith.constant 0 : i32
    %c0_i32_0 = arith.constant 0 : i32
    %c0_i32_1 = arith.constant 0 : i32
    return %c0_i32, %c0_i32_0 : i32, i32
  }
  func.func @transform_11(%arg0: i32, %arg1: i32, %arg2: i32) -> (i32, i32) {
    %c0_i32 = arith.constant 0 : i32
    %c0_i32_0 = arith.constant 0 : i32
    %c0_i32_1 = arith.constant 0 : i32
    return %c0_i32, %c0_i32_0 : i32, i32
  }
  func.func @transform_12(%arg0: i32, %arg1: i32, %arg2: i32) -> (i32, i32, i32, i32) {
    %c0_i32 = arith.constant 0 : i32
    %c0_i32_0 = arith.constant 0 : i32
    %c0_i32_1 = arith.constant 0 : i32
    return %arg0, %arg1, %c0_i32, %c0_i32_0 : i32, i32, i32, i32
  }
}

module attributes {stable_mosaic.version = 11 : i64} {
  func.func @kernel(%arg0: i32, %arg1: i32, %arg2: i32, %arg3: memref<1x2x8x32xf32, #tpu.memory_space<vmem>>, %arg4: memref<1x1x8x8x8xf32, #tpu.memory_space<vmem>>, %arg5: memref<1x1x8x8x8xf32, #tpu.memory_space<vmem>>, %arg6: memref<1x1x8x8x8xf32, #tpu.memory_space<vmem>>, %arg7: memref<32x32xf32, #tpu.memory_space<vmem>>, %arg8: memref<32x32xf32, #tpu.memory_space<vmem>>, %arg9: memref<1x32xf32, #tpu.memory_space<vmem>>, %arg10: memref<1x32xf32, #tpu.memory_space<vmem>>, %arg11: memref<32x96xf32, #tpu.memory_space<vmem>>, %arg12: memref<1x96xf32, #tpu.memory_space<vmem>>, %arg13: memref<32x32xf32, #tpu.memory_space<vmem>>, %arg14: memref<1x32xf32, #tpu.memory_space<vmem>>, %arg15: memref<1x2x8x32xf32, #tpu.memory_space<vmem>>, %arg16: memref<2x8x32xf32, #tpu.memory_space<vmem>>, %arg17: memref<4x16x8xf32, #tpu.memory_space<vmem>>, %arg18: memref<4x16x8xf32, #tpu.memory_space<vmem>>, %arg19: memref<4x16x8xf32, #tpu.memory_space<vmem>>, %arg20: memref<4x16x8xf32, #tpu.memory_space<vmem>>, %arg21: memref<16x32xf32, #tpu.memory_space<vmem>>) attributes {dimension_semantics = [#tpu.dimension_semantics<parallel>, #tpu.dimension_semantics<parallel>, #tpu.dimension_semantics<arbitrary>], iteration_bounds = array<i64: 2, 2, 4>, scalar_prefetch = 0 : i64, scratch_operands = 6 : i64, tpu.core_type = #tpu.core_type<tc>, window_params = [{transform_indices = @transform_0, window_bounds = array<i64: 1, 2, 8, 32>}, {transform_indices = @transform_1, window_bounds = array<i64: 1, 1, 8, 8, 8>}, {transform_indices = @transform_2, window_bounds = array<i64: 1, 1, 8, 8, 8>}, {transform_indices = @transform_3, window_bounds = array<i64: 1, 1, 8, 8, 8>}, {pipeline_mode = #tpu.pipeline_mode<synchronous>, transform_indices = @transform_4, window_bounds = array<i64: 32, 32>}, {pipeline_mode = #tpu.pipeline_mode<synchronous>, transform_indices = @transform_5, window_bounds = array<i64: 32, 32>}, {pipeline_mode = #tpu.pipeline_mode<synchronous>, transform_indices = @transform_6, window_bounds = array<i64: 1, 32>}, {pipeline_mode = #tpu.pipeline_mode<synchronous>, transform_indices = @transform_7, window_bounds = array<i64: 1, 32>}, {pipeline_mode = #tpu.pipeline_mode<synchronous>, transform_indices = @transform_8, window_bounds = array<i64: 32, 96>}, {pipeline_mode = #tpu.pipeline_mode<synchronous>, transform_indices = @transform_9, window_bounds = array<i64: 1, 96>}, {pipeline_mode = #tpu.pipeline_mode<synchronous>, transform_indices = @transform_10, window_bounds = array<i64: 32, 32>}, {pipeline_mode = #tpu.pipeline_mode<synchronous>, transform_indices = @transform_11, window_bounds = array<i64: 1, 32>}, {transform_indices = @transform_12, window_bounds = array<i64: 1, 2, 8, 32>}]} {
    %c0_i32 = arith.constant 0 : i32
    %0 = arith.cmpi eq, %arg2, %c0_i32 : i32
    %1 = arith.extui %0 : i1 to i32
    %c0_i32_0 = arith.constant 0 : i32
    %2 = arith.cmpi ne, %1, %c0_i32_0 : i32
    scf.if %2 {
      %c0_30 = arith.constant 0 : index
      %c0_31 = arith.constant 0 : index
      %c0_32 = arith.constant 0 : index
      %c0_33 = arith.constant 0 : index
      %54 = vector.load %arg3[%c0_30, %c0_31, %c0_32, %c0_33] : memref<1x2x8x32xf32, #tpu.memory_space<vmem>>, vector<1x2x8x32xf32>
      %55 = vector.shape_cast %54 : vector<1x2x8x32xf32> to vector<2x8x32xf32>
      %c0_34 = arith.constant 0 : index
      %c0_35 = arith.constant 0 : index
      %56 = vector.load %arg7[%c0_34, %c0_35] : memref<32x32xf32, #tpu.memory_space<vmem>>, vector<32x32xf32>
      %c0_36 = arith.constant 0 : index
      %c0_37 = arith.constant 0 : index
      %57 = vector.load %arg8[%c0_36, %c0_37] : memref<32x32xf32, #tpu.memory_space<vmem>>, vector<32x32xf32>
      %cst_38 = arith.constant dense<0.000000e+00> : vector<2x32xf32>
      %58 = vector.multi_reduction <add>, %55, %cst_38 [1] : vector<2x8x32xf32> to vector<2x32xf32>
      %cst_39 = arith.constant dense<0.000000e+00> : vector<2x32xf32>
      %59 = tpu.matmul %58, %56, %cst_39 {dimension_numbers = #tpu.dot_dimension_numbers<[1], [0], [0], [1], [0, 0, 1, 1], [], []>} : vector<2x32xf32>, vector<32x32xf32>, vector<2x32xf32> -> vector<2x32xf32>
      %cst_40 = arith.constant 1.250000e-01 : f32
      %60 = vector.broadcast %cst_40 : f32 to vector<2x32xf32>
      %61 = arith.mulf %59, %60 : vector<2x32xf32>
      %cst_41 = arith.constant dense<0.000000e+00> : vector<2x32xf32>
      %62 = tpu.matmul %61, %57, %cst_41 {dimension_numbers = #tpu.dot_dimension_numbers<[1], [0], [0], [1], [0, 0, 1, 1], [], []>} : vector<2x32xf32>, vector<32x32xf32>, vector<2x32xf32> -> vector<2x32xf32>
      %63 = vector.shape_cast %62 : vector<2x32xf32> to vector<2x1x32xf32>
      %64 = vector.broadcast %63 : vector<2x1x32xf32> to vector<2x8x32xf32>
      %65 = arith.subf %55, %64 : vector<2x8x32xf32>
      %66 = arith.mulf %65, %65 : vector<2x8x32xf32>
      %cst_42 = arith.constant dense<0.000000e+00> : vector<2x32xf32>
      %67 = vector.multi_reduction <add>, %66, %cst_42 [1] : vector<2x8x32xf32> to vector<2x32xf32>
      %cst_43 = arith.constant dense<0.000000e+00> : vector<2x32xf32>
      %68 = tpu.matmul %67, %56, %cst_43 {dimension_numbers = #tpu.dot_dimension_numbers<[1], [0], [0], [1], [0, 0, 1, 1], [], []>} : vector<2x32xf32>, vector<32x32xf32>, vector<2x32xf32> -> vector<2x32xf32>
      %cst_44 = arith.constant 1.250000e-01 : f32
      %69 = vector.broadcast %cst_44 : f32 to vector<2x32xf32>
      %70 = arith.mulf %68, %69 : vector<2x32xf32>
      %cst_45 = arith.constant 9.99999974E-6 : f32
      %71 = vector.broadcast %cst_45 : f32 to vector<2x32xf32>
      %72 = arith.addf %70, %71 : vector<2x32xf32>
      %73 = math.rsqrt %72 : vector<2x32xf32>
      %cst_46 = arith.constant dense<0.000000e+00> : vector<2x32xf32>
      %74 = tpu.matmul %73, %57, %cst_46 {dimension_numbers = #tpu.dot_dimension_numbers<[1], [0], [0], [1], [0, 0, 1, 1], [], []>} : vector<2x32xf32>, vector<32x32xf32>, vector<2x32xf32> -> vector<2x32xf32>
      %75 = vector.shape_cast %74 : vector<2x32xf32> to vector<2x1x32xf32>
      %76 = vector.broadcast %75 : vector<2x1x32xf32> to vector<2x8x32xf32>
      %77 = arith.mulf %65, %76 : vector<2x8x32xf32>
      %c0_47 = arith.constant 0 : index
      %c0_48 = arith.constant 0 : index
      %78 = vector.load %arg9[%c0_47, %c0_48] : memref<1x32xf32, #tpu.memory_space<vmem>>, vector<1x32xf32>
      %79 = vector.shape_cast %78 : vector<1x32xf32> to vector<1x1x32xf32>
      %80 = vector.broadcast %79 : vector<1x1x32xf32> to vector<2x8x32xf32>
      %81 = arith.mulf %77, %80 : vector<2x8x32xf32>
      %c0_49 = arith.constant 0 : index
      %c0_50 = arith.constant 0 : index
      %82 = vector.load %arg10[%c0_49, %c0_50] : memref<1x32xf32, #tpu.memory_space<vmem>>, vector<1x32xf32>
      %83 = vector.shape_cast %82 : vector<1x32xf32> to vector<1x1x32xf32>
      %84 = vector.broadcast %83 : vector<1x1x32xf32> to vector<2x8x32xf32>
      %85 = arith.addf %81, %84 : vector<2x8x32xf32>
      %c0_51 = arith.constant 0 : index
      %c0_52 = arith.constant 0 : index
      %c0_53 = arith.constant 0 : index
      %86 = vector.load %arg16[%c0_51, %c0_52, %c0_53] : memref<2x8x32xf32, #tpu.memory_space<vmem>>, vector<2x8x32xf32>
      tpu.vector_store %arg16[%c0_51, %c0_52, %c0_53], %85 {strides = array<i32>} : memref<2x8x32xf32, #tpu.memory_space<vmem>>, vector<2x8x32xf32>,
      %87 = vector.shape_cast %85 : vector<2x8x32xf32> to vector<16x32xf32>
      %c0_54 = arith.constant 0 : index
      %c0_55 = arith.constant 0 : index
      %88 = vector.load %arg11[%c0_54, %c0_55] : memref<32x96xf32, #tpu.memory_space<vmem>>, vector<32x96xf32>
      %cst_56 = arith.constant dense<0.000000e+00> : vector<16x96xf32>
      %89 = tpu.matmul %87, %88, %cst_56 {dimension_numbers = #tpu.dot_dimension_numbers<[1], [0], [0], [1], [0, 0, 1, 1], [], []>} : vector<16x32xf32>, vector<32x96xf32>, vector<16x96xf32> -> vector<16x96xf32>
      %c0_57 = arith.constant 0 : index
      %c0_58 = arith.constant 0 : index
      %90 = vector.load %arg12[%c0_57, %c0_58] : memref<1x96xf32, #tpu.memory_space<vmem>>, vector<1x96xf32>
      %91 = vector.broadcast %90 : vector<1x96xf32> to vector<16x96xf32>
      %92 = arith.addf %89, %91 : vector<16x96xf32>
      %93 = vector.extract_strided_slice %92 {offsets = [0, 0], sizes = [16, 8], strides = [1, 1]} : vector<16x96xf32> to vector<16x8xf32>
      %c0_59 = arith.constant 0 : index
      %c0_60 = arith.constant 0 : index
      %c0_61 = arith.constant 0 : index
      %94 = vector.load %arg17[%c0_59, %c0_60, %c0_61] : memref<4x16x8xf32, #tpu.memory_space<vmem>>, vector<1x16x8xf32>
      %95 = vector.shape_cast %94 : vector<1x16x8xf32> to vector<16x8xf32>
      %96 = vector.shape_cast %93 : vector<16x8xf32> to vector<1x16x8xf32>
      tpu.vector_store %arg17[%c0_59, %c0_60, %c0_61], %96 {strides = array<i32>} : memref<4x16x8xf32, #tpu.memory_space<vmem>>, vector<1x16x8xf32>,
      %97 = vector.extract_strided_slice %92 {offsets = [0, 32], sizes = [16, 8], strides = [1, 1]} : vector<16x96xf32> to vector<16x8xf32>
      %c0_62 = arith.constant 0 : index
      %c0_63 = arith.constant 0 : index
      %c0_64 = arith.constant 0 : index
      %98 = vector.load %arg18[%c0_62, %c0_63, %c0_64] : memref<4x16x8xf32, #tpu.memory_space<vmem>>, vector<1x16x8xf32>
      %99 = vector.shape_cast %98 : vector<1x16x8xf32> to vector<16x8xf32>
      %100 = vector.shape_cast %97 : vector<16x8xf32> to vector<1x16x8xf32>
      tpu.vector_store %arg18[%c0_62, %c0_63, %c0_64], %100 {strides = array<i32>} : memref<4x16x8xf32, #tpu.memory_space<vmem>>, vector<1x16x8xf32>,
      %101 = vector.extract_strided_slice %92 {offsets = [0, 64], sizes = [16, 8], strides = [1, 1]} : vector<16x96xf32> to vector<16x8xf32>
      %c0_65 = arith.constant 0 : index
      %c0_66 = arith.constant 0 : index
      %c0_67 = arith.constant 0 : index
      %102 = vector.load %arg19[%c0_65, %c0_66, %c0_67] : memref<4x16x8xf32, #tpu.memory_space<vmem>>, vector<1x16x8xf32>
      %103 = vector.shape_cast %102 : vector<1x16x8xf32> to vector<16x8xf32>
      %104 = vector.shape_cast %101 : vector<16x8xf32> to vector<1x16x8xf32>
      tpu.vector_store %arg19[%c0_65, %c0_66, %c0_67], %104 {strides = array<i32>} : memref<4x16x8xf32, #tpu.memory_space<vmem>>, vector<1x16x8xf32>,
      %105 = vector.extract_strided_slice %92 {offsets = [0, 8], sizes = [16, 8], strides = [1, 1]} : vector<16x96xf32> to vector<16x8xf32>
      %c1 = arith.constant 1 : index
      %c0_68 = arith.constant 0 : index
      %c0_69 = arith.constant 0 : index
      %106 = vector.load %arg17[%c1, %c0_68, %c0_69] : memref<4x16x8xf32, #tpu.memory_space<vmem>>, vector<1x16x8xf32>
      %107 = vector.shape_cast %106 : vector<1x16x8xf32> to vector<16x8xf32>
      %108 = vector.shape_cast %105 : vector<16x8xf32> to vector<1x16x8xf32>
      tpu.vector_store %arg17[%c1, %c0_68, %c0_69], %108 {strides = array<i32>} : memref<4x16x8xf32, #tpu.memory_space<vmem>>, vector<1x16x8xf32>,
      %109 = vector.extract_strided_slice %92 {offsets = [0, 40], sizes = [16, 8], strides = [1, 1]} : vector<16x96xf32> to vector<16x8xf32>
      %c1_70 = arith.constant 1 : index
      %c0_71 = arith.constant 0 : index
      %c0_72 = arith.constant 0 : index
      %110 = vector.load %arg18[%c1_70, %c0_71, %c0_72] : memref<4x16x8xf32, #tpu.memory_space<vmem>>, vector<1x16x8xf32>
      %111 = vector.shape_cast %110 : vector<1x16x8xf32> to vector<16x8xf32>
      %112 = vector.shape_cast %109 : vector<16x8xf32> to vector<1x16x8xf32>
      tpu.vector_store %arg18[%c1_70, %c0_71, %c0_72], %112 {strides = array<i32>} : memref<4x16x8xf32, #tpu.memory_space<vmem>>, vector<1x16x8xf32>,
      %113 = vector.extract_strided_slice %92 {offsets = [0, 72], sizes = [16, 8], strides = [1, 1]} : vector<16x96xf32> to vector<16x8xf32>
      %c1_73 = arith.constant 1 : index
      %c0_74 = arith.constant 0 : index
      %c0_75 = arith.constant 0 : index
      %114 = vector.load %arg19[%c1_73, %c0_74, %c0_75] : memref<4x16x8xf32, #tpu.memory_space<vmem>>, vector<1x16x8xf32>
      %115 = vector.shape_cast %114 : vector<1x16x8xf32> to vector<16x8xf32>
      %116 = vector.shape_cast %113 : vector<16x8xf32> to vector<1x16x8xf32>
      tpu.vector_store %arg19[%c1_73, %c0_74, %c0_75], %116 {strides = array<i32>} : memref<4x16x8xf32, #tpu.memory_space<vmem>>, vector<1x16x8xf32>,
      %117 = vector.extract_strided_slice %92 {offsets = [0, 16], sizes = [16, 8], strides = [1, 1]} : vector<16x96xf32> to vector<16x8xf32>
      %c2 = arith.constant 2 : index
      %c0_76 = arith.constant 0 : index
      %c0_77 = arith.constant 0 : index
      %118 = vector.load %arg17[%c2, %c0_76, %c0_77] : memref<4x16x8xf32, #tpu.memory_space<vmem>>, vector<1x16x8xf32>
      %119 = vector.shape_cast %118 : vector<1x16x8xf32> to vector<16x8xf32>
      %120 = vector.shape_cast %117 : vector<16x8xf32> to vector<1x16x8xf32>
      tpu.vector_store %arg17[%c2, %c0_76, %c0_77], %120 {strides = array<i32>} : memref<4x16x8xf32, #tpu.memory_space<vmem>>, vector<1x16x8xf32>,
      %121 = vector.extract_strided_slice %92 {offsets = [0, 48], sizes = [16, 8], strides = [1, 1]} : vector<16x96xf32> to vector<16x8xf32>
      %c2_78 = arith.constant 2 : index
      %c0_79 = arith.constant 0 : index
      %c0_80 = arith.constant 0 : index
      %122 = vector.load %arg18[%c2_78, %c0_79, %c0_80] : memref<4x16x8xf32, #tpu.memory_space<vmem>>, vector<1x16x8xf32>
      %123 = vector.shape_cast %122 : vector<1x16x8xf32> to vector<16x8xf32>
      %124 = vector.shape_cast %121 : vector<16x8xf32> to vector<1x16x8xf32>
      tpu.vector_store %arg18[%c2_78, %c0_79, %c0_80], %124 {strides = array<i32>} : memref<4x16x8xf32, #tpu.memory_space<vmem>>, vector<1x16x8xf32>,
      %125 = vector.extract_strided_slice %92 {offsets = [0, 80], sizes = [16, 8], strides = [1, 1]} : vector<16x96xf32> to vector<16x8xf32>
      %c2_81 = arith.constant 2 : index
      %c0_82 = arith.constant 0 : index
      %c0_83 = arith.constant 0 : index
      %126 = vector.load %arg19[%c2_81, %c0_82, %c0_83] : memref<4x16x8xf32, #tpu.memory_space<vmem>>, vector<1x16x8xf32>
      %127 = vector.shape_cast %126 : vector<1x16x8xf32> to vector<16x8xf32>
      %128 = vector.shape_cast %125 : vector<16x8xf32> to vector<1x16x8xf32>
      tpu.vector_store %arg19[%c2_81, %c0_82, %c0_83], %128 {strides = array<i32>} : memref<4x16x8xf32, #tpu.memory_space<vmem>>, vector<1x16x8xf32>,
      %129 = vector.extract_strided_slice %92 {offsets = [0, 24], sizes = [16, 8], strides = [1, 1]} : vector<16x96xf32> to vector<16x8xf32>
      %c3 = arith.constant 3 : index
      %c0_84 = arith.constant 0 : index
      %c0_85 = arith.constant 0 : index
      %130 = vector.load %arg17[%c3, %c0_84, %c0_85] : memref<4x16x8xf32, #tpu.memory_space<vmem>>, vector<1x16x8xf32>
      %131 = vector.shape_cast %130 : vector<1x16x8xf32> to vector<16x8xf32>
      %132 = vector.shape_cast %129 : vector<16x8xf32> to vector<1x16x8xf32>
      tpu.vector_store %arg17[%c3, %c0_84, %c0_85], %132 {strides = array<i32>} : memref<4x16x8xf32, #tpu.memory_space<vmem>>, vector<1x16x8xf32>,
      %133 = vector.extract_strided_slice %92 {offsets = [0, 56], sizes = [16, 8], strides = [1, 1]} : vector<16x96xf32> to vector<16x8xf32>
      %c3_86 = arith.constant 3 : index
      %c0_87 = arith.constant 0 : index
      %c0_88 = arith.constant 0 : index
      %134 = vector.load %arg18[%c3_86, %c0_87, %c0_88] : memref<4x16x8xf32, #tpu.memory_space<vmem>>, vector<1x16x8xf32>
      %135 = vector.shape_cast %134 : vector<1x16x8xf32> to vector<16x8xf32>
      %136 = vector.shape_cast %133 : vector<16x8xf32> to vector<1x16x8xf32>
      tpu.vector_store %arg18[%c3_86, %c0_87, %c0_88], %136 {strides = array<i32>} : memref<4x16x8xf32, #tpu.memory_space<vmem>>, vector<1x16x8xf32>,
      %137 = vector.extract_strided_slice %92 {offsets = [0, 88], sizes = [16, 8], strides = [1, 1]} : vector<16x96xf32> to vector<16x8xf32>
      %c3_89 = arith.constant 3 : index
      %c0_90 = arith.constant 0 : index
      %c0_91 = arith.constant 0 : index
      %138 = vector.load %arg19[%c3_89, %c0_90, %c0_91] : memref<4x16x8xf32, #tpu.memory_space<vmem>>, vector<1x16x8xf32>
      %139 = vector.shape_cast %138 : vector<1x16x8xf32> to vector<16x8xf32>
      %140 = vector.shape_cast %137 : vector<16x8xf32> to vector<1x16x8xf32>
      tpu.vector_store %arg19[%c3_89, %c0_90, %c0_91], %140 {strides = array<i32>} : memref<4x16x8xf32, #tpu.memory_space<vmem>>, vector<1x16x8xf32>,
    } else {
    }
    %3 = arith.index_cast %arg2 : i32 to index
    %c0 = arith.constant 0 : index
    %c0_1 = arith.constant 0 : index
    %4 = vector.load %arg17[%3, %c0, %c0_1] : memref<4x16x8xf32, #tpu.memory_space<vmem>>, vector<1x16x8xf32>
    %5 = vector.shape_cast %4 : vector<1x16x8xf32> to vector<16x8xf32>
    %6 = vector.shape_cast %5 : vector<16x8xf32> to vector<2x8x8xf32>
    %7 = arith.index_cast %arg2 : i32 to index
    %c0_2 = arith.constant 0 : index
    %c0_3 = arith.constant 0 : index
    %8 = vector.load %arg18[%7, %c0_2, %c0_3] : memref<4x16x8xf32, #tpu.memory_space<vmem>>, vector<1x16x8xf32>
    %9 = vector.shape_cast %8 : vector<1x16x8xf32> to vector<16x8xf32>
    %10 = vector.shape_cast %9 : vector<16x8xf32> to vector<2x8x8xf32>
    %11 = arith.index_cast %arg2 : i32 to index
    %c0_4 = arith.constant 0 : index
    %c0_5 = arith.constant 0 : index
    %12 = vector.load %arg19[%11, %c0_4, %c0_5] : memref<4x16x8xf32, #tpu.memory_space<vmem>>, vector<1x16x8xf32>
    %13 = vector.shape_cast %12 : vector<1x16x8xf32> to vector<16x8xf32>
    %14 = vector.shape_cast %13 : vector<16x8xf32> to vector<2x8x8xf32>
    %c0_6 = arith.constant 0 : index
    %c0_7 = arith.constant 0 : index
    %c0_8 = arith.constant 0 : index
    %c0_9 = arith.constant 0 : index
    %c0_10 = arith.constant 0 : index
    %15 = vector.load %arg4[%c0_6, %c0_7, %c0_8, %c0_9, %c0_10] : memref<1x1x8x8x8xf32, #tpu.memory_space<vmem>>, vector<1x1x8x8x8xf32>
    %16 = vector.shape_cast %15 : vector<1x1x8x8x8xf32> to vector<8x8x8xf32>
    %c0_11 = arith.constant 0 : index
    %c0_12 = arith.constant 0 : index
    %c0_13 = arith.constant 0 : index
    %c0_14 = arith.constant 0 : index
    %c0_15 = arith.constant 0 : index
    %17 = vector.load %arg5[%c0_11, %c0_12, %c0_13, %c0_14, %c0_15] : memref<1x1x8x8x8xf32, #tpu.memory_space<vmem>>, vector<1x1x8x8x8xf32>
    %18 = vector.shape_cast %17 : vector<1x1x8x8x8xf32> to vector<8x8x8xf32>
    %c0_16 = arith.constant 0 : index
    %c0_17 = arith.constant 0 : index
    %c0_18 = arith.constant 0 : index
    %c0_19 = arith.constant 0 : index
    %c0_20 = arith.constant 0 : index
    %19 = vector.load %arg6[%c0_16, %c0_17, %c0_18, %c0_19, %c0_20] : memref<1x1x8x8x8xf32, #tpu.memory_space<vmem>>, vector<1x1x8x8x8xf32>
    %20 = vector.shape_cast %19 : vector<1x1x8x8x8xf32> to vector<8x8x8xf32>
    %cst = arith.constant dense<0.000000e+00> : vector<2x8x8xf32>
    %21 = tpu.matmul %6, %10, %cst {dimension_numbers = #tpu.dot_dimension_numbers<[2], [2], [1], [1], [0, 0, 0, 1, 1, 1], [0], [0]>} : vector<2x8x8xf32>, vector<2x8x8xf32>, vector<2x8x8xf32> -> vector<2x8x8xf32>
    %22 = tpu.transpose %6, [1, 0, 2] : vector<2x8x8xf32> -> vector<8x2x8xf32>
    %cst_21 = arith.constant dense<0.000000e+00> : vector<8x2x8xf32>
    %23 = tpu.matmul %22, %16, %cst_21 {dimension_numbers = #tpu.dot_dimension_numbers<[2], [2], [1], [1], [0, 0, 0, 1, 1, 1], [0], [0]>} : vector<8x2x8xf32>, vector<8x8x8xf32>, vector<8x2x8xf32> -> vector<8x2x8xf32>
    %24 = tpu.transpose %23, [1, 0, 2] : vector<8x2x8xf32> -> vector<2x8x8xf32>
    %25 = arith.addf %21, %24 : vector<2x8x8xf32>
    %26 = tpu.transpose %10, [1, 0, 2] : vector<2x8x8xf32> -> vector<8x2x8xf32>
    %cst_22 = arith.constant dense<0.000000e+00> : vector<8x2x8xf32>
    %27 = tpu.matmul %26, %18, %cst_22 {dimension_numbers = #tpu.dot_dimension_numbers<[2], [2], [1], [1], [0, 0, 0, 1, 1, 1], [0], [0]>} : vector<8x2x8xf32>, vector<8x8x8xf32>, vector<8x2x8xf32> -> vector<8x2x8xf32>
    %28 = tpu.transpose %27, [1, 0, 2] : vector<8x2x8xf32> -> vector<2x8x8xf32>
    %29 = tpu.transpose %28, [0, 2, 1] : vector<2x8x8xf32> -> vector<2x8x8xf32>
    %30 = arith.addf %25, %29 : vector<2x8x8xf32>
    %cst_23 = arith.constant dense<0xFF800000> : vector<2x8xf32>
    %31 = vector.multi_reduction <maximumf>, %30, %cst_23 [2] : vector<2x8x8xf32> to vector<2x8xf32>
    %32 = vector.shape_cast %31 : vector<2x8xf32> to vector<2x8x1xf32>
    %33 = vector.broadcast %32 : vector<2x8x1xf32> to vector<2x8x8xf32>
    %34 = arith.subf %30, %33 : vector<2x8x8xf32>
    %35 = math.exp %34 : vector<2x8x8xf32>
    %cst_24 = arith.constant dense<0.000000e+00> : vector<2x8xf32>
    %36 = vector.multi_reduction <add>, %35, %cst_24 [2] : vector<2x8x8xf32> to vector<2x8xf32>
    %37 = vector.shape_cast %36 : vector<2x8xf32> to vector<2x8x1xf32>
    %38 = tpu.reciprocal %37 {approx = true} : vector<2x8x1xf32> -> vector<2x8x1xf32>
    %39 = vector.broadcast %38 : vector<2x8x1xf32> to vector<2x8x8xf32>
    %40 = arith.mulf %35, %39 : vector<2x8x8xf32>
    %cst_25 = arith.constant dense<0.000000e+00> : vector<2x8x8xf32>
    %41 = tpu.matmul %40, %14, %cst_25 {dimension_numbers = #tpu.dot_dimension_numbers<[2], [1], [1], [2], [0, 0, 0, 1, 1, 2], [0], [0]>} : vector<2x8x8xf32>, vector<2x8x8xf32>, vector<2x8x8xf32> -> vector<2x8x8xf32>
    %42 = tpu.transpose %40, [1, 0, 2] : vector<2x8x8xf32> -> vector<8x2x8xf32>
    %cst_26 = arith.constant dense<0.000000e+00> : vector<8x2x8xf32>
    %43 = tpu.matmul %42, %20, %cst_26 {dimension_numbers = #tpu.dot_dimension_numbers<[2], [1], [1], [2], [0, 0, 0, 1, 1, 2], [0], [0]>} : vector<8x2x8xf32>, vector<8x8x8xf32>, vector<8x2x8xf32> -> vector<8x2x8xf32>
    %44 = tpu.transpose %43, [1, 0, 2] : vector<8x2x8xf32> -> vector<2x8x8xf32>
    %45 = arith.addf %41, %44 : vector<2x8x8xf32>
    %46 = vector.shape_cast %45 : vector<2x8x8xf32> to vector<16x8xf32>
    %47 = arith.index_cast %arg2 : i32 to index
    %c0_27 = arith.constant 0 : index
    %c0_28 = arith.constant 0 : index
    %48 = vector.load %arg20[%47, %c0_27, %c0_28] : memref<4x16x8xf32, #tpu.memory_space<vmem>>, vector<1x16x8xf32>
    %49 = vector.shape_cast %48 : vector<1x16x8xf32> to vector<16x8xf32>
    %50 = vector.shape_cast %46 : vector<16x8xf32> to vector<1x16x8xf32>
    tpu.vector_store %arg20[%47, %c0_27, %c0_28], %50 {strides = array<i32>} : memref<4x16x8xf32, #tpu.memory_space<vmem>>, vector<1x16x8xf32>,
    %c3_i32 = arith.constant 3 : i32
    %51 = arith.cmpi eq, %arg2, %c3_i32 : i32
    %52 = arith.extui %51 : i1 to i32
    %c0_i32_29 = arith.constant 0 : i32
    %53 = arith.cmpi ne, %52, %c0_i32_29 : i32
    scf.if %53 {
      %c0_30 = arith.constant 0 : index
      %c0_31 = arith.constant 0 : index
      %c0_32 = arith.constant 0 : index
      %54 = vector.load %arg20[%c0_30, %c0_31, %c0_32] : memref<4x16x8xf32, #tpu.memory_space<vmem>>, vector<1x16x8xf32>
      %55 = vector.shape_cast %54 : vector<1x16x8xf32> to vector<16x8xf32>
      %c0_33 = arith.constant 0 : index
      %c0_34 = arith.constant 0 : index
      %56 = vector.load %arg21[%c0_33, %c0_34] : memref<16x32xf32, #tpu.memory_space<vmem>>, vector<16x8xf32>
      tpu.vector_store %arg21[%c0_33, %c0_34], %55 {strides = array<i32>} : memref<16x32xf32, #tpu.memory_space<vmem>>, vector<16x8xf32>,
      %c1 = arith.constant 1 : index
      %c0_35 = arith.constant 0 : index
      %c0_36 = arith.constant 0 : index
      %57 = vector.load %arg20[%c1, %c0_35, %c0_36] : memref<4x16x8xf32, #tpu.memory_space<vmem>>, vector<1x16x8xf32>
      %58 = vector.shape_cast %57 : vector<1x16x8xf32> to vector<16x8xf32>
      %c0_37 = arith.constant 0 : index
      %c8 = arith.constant 8 : index
      %59 = vector.load %arg21[%c0_37, %c8] : memref<16x32xf32, #tpu.memory_space<vmem>>, vector<16x8xf32>
      tpu.vector_store %arg21[%c0_37, %c8], %58 {strides = array<i32>} : memref<16x32xf32, #tpu.memory_space<vmem>>, vector<16x8xf32>,
      %c2 = arith.constant 2 : index
      %c0_38 = arith.constant 0 : index
      %c0_39 = arith.constant 0 : index
      %60 = vector.load %arg20[%c2, %c0_38, %c0_39] : memref<4x16x8xf32, #tpu.memory_space<vmem>>, vector<1x16x8xf32>
      %61 = vector.shape_cast %60 : vector<1x16x8xf32> to vector<16x8xf32>
      %c0_40 = arith.constant 0 : index
      %c16 = arith.constant 16 : index
      %62 = vector.load %arg21[%c0_40, %c16] : memref<16x32xf32, #tpu.memory_space<vmem>>, vector<16x8xf32>
      tpu.vector_store %arg21[%c0_40, %c16], %61 {strides = array<i32>} : memref<16x32xf32, #tpu.memory_space<vmem>>, vector<16x8xf32>,
      %c3 = arith.constant 3 : index
      %c0_41 = arith.constant 0 : index
      %c0_42 = arith.constant 0 : index
      %63 = vector.load %arg20[%c3, %c0_41, %c0_42] : memref<4x16x8xf32, #tpu.memory_space<vmem>>, vector<1x16x8xf32>
      %64 = vector.shape_cast %63 : vector<1x16x8xf32> to vector<16x8xf32>
      %c0_43 = arith.constant 0 : index
      %c24 = arith.constant 24 : index
      %65 = vector.load %arg21[%c0_43, %c24] : memref<16x32xf32, #tpu.memory_space<vmem>>, vector<16x8xf32>
      tpu.vector_store %arg21[%c0_43, %c24], %64 {strides = array<i32>} : memref<16x32xf32, #tpu.memory_space<vmem>>, vector<16x8xf32>,
      %c0_44 = arith.constant 0 : index
      %c0_45 = arith.constant 0 : index
      %66 = vector.load %arg21[%c0_44, %c0_45] : memref<16x32xf32, #tpu.memory_space<vmem>>, vector<16x32xf32>
      %c0_46 = arith.constant 0 : index
      %c0_47 = arith.constant 0 : index
      %67 = vector.load %arg13[%c0_46, %c0_47] : memref<32x32xf32, #tpu.memory_space<vmem>>, vector<32x32xf32>
      %cst_48 = arith.constant dense<0.000000e+00> : vector<16x32xf32>
      %68 = tpu.matmul %66, %67, %cst_48 {dimension_numbers = #tpu.dot_dimension_numbers<[1], [0], [0], [1], [0, 0, 1, 1], [], []>} : vector<16x32xf32>, vector<32x32xf32>, vector<16x32xf32> -> vector<16x32xf32>
      %c0_49 = arith.constant 0 : index
      %c0_50 = arith.constant 0 : index
      %69 = vector.load %arg14[%c0_49, %c0_50] : memref<1x32xf32, #tpu.memory_space<vmem>>, vector<1x32xf32>
      %70 = vector.broadcast %69 : vector<1x32xf32> to vector<16x32xf32>
      %71 = arith.addf %68, %70 : vector<16x32xf32>
      %c0_51 = arith.constant 0 : index
      %c0_52 = arith.constant 0 : index
      %c0_53 = arith.constant 0 : index
      %72 = vector.load %arg16[%c0_51, %c0_52, %c0_53] : memref<2x8x32xf32, #tpu.memory_space<vmem>>, vector<2x8x32xf32>
      %73 = vector.shape_cast %72 : vector<2x8x32xf32> to vector<16x32xf32>
      %74 = arith.addf %73, %71 : vector<16x32xf32>
      %75 = vector.shape_cast %74 : vector<16x32xf32> to vector<2x8x32xf32>
      %c0_54 = arith.constant 0 : index
      %c0_55 = arith.constant 0 : index
      %c0_56 = arith.constant 0 : index
      %c0_57 = arith.constant 0 : index
      %76 = vector.load %arg15[%c0_54, %c0_55, %c0_56, %c0_57] : memref<1x2x8x32xf32, #tpu.memory_space<vmem>>, vector<1x2x8x32xf32>
      %77 = vector.shape_cast %76 : vector<1x2x8x32xf32> to vector<2x8x32xf32>
      %78 = vector.shape_cast %75 : vector<2x8x32xf32> to vector<1x2x8x32xf32>
      tpu.vector_store %arg15[%c0_54, %c0_55, %c0_56, %c0_57], %78 {strides = array<i32>} : memref<1x2x8x32xf32, #tpu.memory_space<vmem>>, vector<1x2x8x32xf32>,
    } else {
    }
    return
  }
  func.func @transform_0(%arg0: i32, %arg1: i32, %arg2: i32) -> (i32, i32, i32, i32) {
    %c0_i32 = arith.constant 0 : i32
    %c0_i32_0 = arith.constant 0 : i32
    %c0_i32_1 = arith.constant 0 : i32
    return %arg0, %arg1, %c0_i32, %c0_i32_0 : i32, i32, i32, i32
  }
  func.func @transform_1(%arg0: i32, %arg1: i32, %arg2: i32) -> (i32, i32, i32, i32, i32) {
    %c0_i32 = arith.constant 0 : i32
    %c0_i32_0 = arith.constant 0 : i32
    %c0_i32_1 = arith.constant 0 : i32
    %c0_i32_2 = arith.constant 0 : i32
    return %arg0, %arg2, %c0_i32, %c0_i32_0, %c0_i32_1 : i32, i32, i32, i32, i32
  }
  func.func @transform_2(%arg0: i32, %arg1: i32, %arg2: i32) -> (i32, i32, i32, i32, i32) {
    %c0_i32 = arith.constant 0 : i32
    %c0_i32_0 = arith.constant 0 : i32
    %c0_i32_1 = arith.constant 0 : i32
    %c0_i32_2 = arith.constant 0 : i32
    return %arg0, %arg2, %c0_i32, %c0_i32_0, %c0_i32_1 : i32, i32, i32, i32, i32
  }
  func.func @transform_3(%arg0: i32, %arg1: i32, %arg2: i32) -> (i32, i32, i32, i32, i32) {
    %c0_i32 = arith.constant 0 : i32
    %c0_i32_0 = arith.constant 0 : i32
    %c0_i32_1 = arith.constant 0 : i32
    %c0_i32_2 = arith.constant 0 : i32
    return %arg0, %arg2, %c0_i32, %c0_i32_0, %c0_i32_1 : i32, i32, i32, i32, i32
  }
  func.func @transform_4(%arg0: i32, %arg1: i32, %arg2: i32) -> (i32, i32) {
    %c0_i32 = arith.constant 0 : i32
    %c0_i32_0 = arith.constant 0 : i32
    %c0_i32_1 = arith.constant 0 : i32
    return %c0_i32, %c0_i32_0 : i32, i32
  }
  func.func @transform_5(%arg0: i32, %arg1: i32, %arg2: i32) -> (i32, i32) {
    %c0_i32 = arith.constant 0 : i32
    %c0_i32_0 = arith.constant 0 : i32
    %c0_i32_1 = arith.constant 0 : i32
    return %c0_i32, %c0_i32_0 : i32, i32
  }
  func.func @transform_6(%arg0: i32, %arg1: i32, %arg2: i32) -> (i32, i32) {
    %c0_i32 = arith.constant 0 : i32
    %c0_i32_0 = arith.constant 0 : i32
    %c0_i32_1 = arith.constant 0 : i32
    return %c0_i32, %c0_i32_0 : i32, i32
  }
  func.func @transform_7(%arg0: i32, %arg1: i32, %arg2: i32) -> (i32, i32) {
    %c0_i32 = arith.constant 0 : i32
    %c0_i32_0 = arith.constant 0 : i32
    %c0_i32_1 = arith.constant 0 : i32
    return %c0_i32, %c0_i32_0 : i32, i32
  }
  func.func @transform_8(%arg0: i32, %arg1: i32, %arg2: i32) -> (i32, i32) {
    %c0_i32 = arith.constant 0 : i32
    %c0_i32_0 = arith.constant 0 : i32
    %c0_i32_1 = arith.constant 0 : i32
    return %c0_i32, %c0_i32_0 : i32, i32
  }
  func.func @transform_9(%arg0: i32, %arg1: i32, %arg2: i32) -> (i32, i32) {
    %c0_i32 = arith.constant 0 : i32
    %c0_i32_0 = arith.constant 0 : i32
    %c0_i32_1 = arith.constant 0 : i32
    return %c0_i32, %c0_i32_0 : i32, i32
  }
  func.func @transform_10(%arg0: i32, %arg1: i32, %arg2: i32) -> (i32, i32) {
    %c0_i32 = arith.constant 0 : i32
    %c0_i32_0 = arith.constant 0 : i32
    %c0_i32_1 = arith.constant 0 : i32
    return %c0_i32, %c0_i32_0 : i32, i32
  }
  func.func @transform_11(%arg0: i32, %arg1: i32, %arg2: i32) -> (i32, i32) {
    %c0_i32 = arith.constant 0 : i32
    %c0_i32_0 = arith.constant 0 : i32
    %c0_i32_1 = arith.constant 0 : i32
    return %c0_i32, %c0_i32_0 : i32, i32
  }
  func.func @transform_12(%arg0: i32, %arg1: i32, %arg2: i32) -> (i32, i32, i32, i32) {
    %c0_i32 = arith.constant 0 : i32
    %c0_i32_0 = arith.constant 0 : i32
    %c0_i32_1 = arith.constant 0 : i32
    return %arg0, %arg1, %c0_i32, %c0_i32_0 : i32, i32, i32, i32
  }
}

</mosaic_0001>

<bundles_post_ra>
// kernel: tpu_custom_call.1
= control target key start
LH: loop header
LB: loop body
LE: loop exit
PB: predicated region body
PF: predicated region fallthrough
CT: control target
= control target key end

     0   :  { %s6172_s0 = inlined_call_operand.hbm [shape: f32[2,4,8,32], index: 0, kind: input, shape index: {}]   ;;  %s6173_s1 = inlined_call_operand.hbm [shape: f32[2,4,8,8,8], index: 1, kind: input, shape index: {}]   ;;  %s6174_s2 = inlined_call_operand.hbm [shape: f32[2,4,8,8,8], index: 2, kind: input, shape index: {}]   ;;  %s6175_s3 = inlined_call_operand.hbm [shape: f32[2,4,8,8,8], index: 3, kind: input, shape index: {}]   ;;  %s6176_s4 = inlined_call_operand.hbm [shape: f32[32,32], index: 4, kind: input, shape index: {}]   ;;  %s6177_s5 = inlined_call_operand.hbm [shape: f32[32,32], index: 5, kind: input, shape index: {}]   ;;  %s6178_s6 = inlined_call_operand.vmem [shape: f32[1,32], index: 6, kind: input, shape index: {}]   ;;  %s6179_s7 = inlined_call_operand.vmem [shape: f32[1,32], index: 7, kind: input, shape index: {}]   ;;  %s6180_s8 = inlined_call_operand.hbm [shape: f32[32,96], index: 8, kind: input, shape index: {}]   ;;  %s6181_s9 = inlined_call_operand.vmem [shape: f32[1,96], index: 9, kind: input, shape index: {}]   ;;  %s6182_s10 = inlined_call_operand.vmem [shape: f32[32,32], index: 10, kind: input, shape index: {}]   ;;  %s6183_s11 = inlined_call_operand.vmem [shape: f32[1,32], index: 11, kind: input, shape index: {}]   ;;  %s6184_s12 = inlined_call_operand.hbm [shape: f32[2,4,8,32], index: 12, kind: output, shape index: {}]  }
   0x1   :  { %6226 = sst [smem:[#allocation43_spill]] %s6173_s1 }
   0x2   :  { %6227 = sst [smem:[#allocation44_spill]] %s6174_s2 }
   0x3   :  { %6228 = sst [smem:[#allocation45_spill]] %s6175_s3 }
   0x4   :  { %6229 = sst [smem:[#allocation46_spill]] %s6176_s4 }
   0x5   :  { %6230 = sst [smem:[#allocation47_spill]] %s6177_s5 }
   0x6   :  { %6231 = sst [smem:[#allocation48_spill]] %s6178_s6 }
   0x7   :  { %6232 = sst [smem:[#allocation49_spill]] %s6179_s7 }
   0x8   :  { %6233 = sst [smem:[#allocation50_spill]] %s6180_s8 }
   0x9   :  { %6234 = sst [smem:[#allocation51_spill]] %s6181_s9 }
   0xa   :  { %6235 = sst [smem:[#allocation52_spill]] %s6182_s10 }
   0xb   :  { %6236 = sst [smem:[#allocation53_spill]] %s6183_s11 }
   0xc   :  { %6237 = sst [smem:[#allocation54_spill]] %s6184_s12 }
   0xd   :  { %17 = vsyncpa [#allocation9], 0 }
   0xe   :  { %19 = vsyncpa [#allocation9 + $0x1], 0 }
   0xf   :  { %20 = vsyncpa [#allocation12], 0 }
  0x10   :  { %22 = vsyncpa [#allocation12 + $0x1], 0 }
  0x11   :  { %23 = vsyncpa [#allocation15], 0 }
  0x12   :  { %25 = vsyncpa [#allocation15 + $0x1], 0 }
  0x13   :  { %26 = vsyncpa [#allocation18], 0 }
  0x14   :  { %27 = vsyncpa [#allocation10], 0 }
  0x15   :  { %29 = vsyncpa [#allocation10 + $0x1], 0  ;;  %s5303_s21 = smov 0   ;;  %s5305_s22 = smov 0  }
  0x16   :  { %s5307_s23 = smov 0   ;;  %s5309_s24 = smov 0  }
  0x17   :  { %s5311_s25 = smov 0   ;;  %s5313_s26 = smov 0  }
  0x18   :  { %s5315_s27 = smov 0   ;;  %s5317_s28 = smov 0  }
  0x19   :  { %s5319_s29 = smov 0   ;;  %s5321_s30 = smov 0  }
  0x1a   :  { %s5323_s13 = smov 0   ;;  %s5325_s14 = smov 0  }
  0x1b   :  { %s5327_s15 = smov 0  }
  0x1c LB: > { %6238 = sst [smem:[#allocation27_spill]] %s5158_s22  ;;  %s5367_s16 = sadd.s32 4294967295, %s5202_s15   ;;  %s5202_s15 = sphi %s5327_s15, %s35_s15   ;;  %s5198_s14 = sphi %s5325_s14, %s6328_s14   ;;  %s5194_s13 = sphi %s5323_s13, %s6320_s13   ;;  %s5190_s30 = sphi %s5321_s30, %s6327_s30   ;;  %s5186_s29 = sphi %s5319_s29, %s6326_s29   ;;  %s5182_s28 = sphi %s5317_s28, %s6319_s28   ;;  %s5178_s27 = sphi %s5315_s27, %s6325_s27   ;;  %s5174_s26 = sphi %s5313_s26, %s6324_s26   ;;  %s5170_s25 = sphi %s5311_s25, %s6323_s25   ;;  %s5166_s24 = sphi %s5309_s24, %s6318_s24   ;;  %s5162_s23 = sphi %s5307_s23, %s6322_s23   ;;  %s5158_s22 = sphi %s5305_s22, %s6321_s22   ;;  %s5154_s21 = sphi %s5303_s21, %s6317_s21  }
  0x1d   : > { %6239 = sst [smem:[#allocation28_spill]] %s5166_s24  ;;  %s4210_s17 = sadd.s32 4294967294, %s5202_s15  }
  0x1e   : > { %6240 = sst [smem:[#allocation29_spill]] %s5170_s25  ;;  %p76_p0 = scmp.ne.s32.totalorder %s5170_s25, %s5166_s24 }
  0x1f   : > { %6241 = sst [smem:[#allocation30_spill]] %s5178_s27  ;;  %p6189_p1 = scmp.eq.s32.totalorder %s5367_s16, 0 }
  0x20   : > { %6242 = sst [smem:[#allocation31_spill]] %s5182_s28  ;;  %p104_p2 = scmp.ne.s32.totalorder %s5158_s22, %s5154_s21 }
  0x21   : > { %6243 = sst [smem:[#allocation32_spill]] %s5186_s29  ;;  %p5377_p4 = por %p6189_p1, %p76_p0 }
  0x22   : > { %6244 = sst [smem:[#allocation33_spill]] %s5194_s13  ;;  %p360_p5 = scmp.eq.s32.totalorder %s4210_s17, 15 }
  0x23   : > { %6245 = sst [smem:[#allocation34_spill]] %s5367_s16  ;;  %p5383_p6 = por %p104_p2, %p6189_p1 }
  0x24   : > { %s6246_s18 = scalar_select %p5377_p4, 1, 0 }
  0x25   : > { %s6248_s19 = scalar_select %p5383_p6, 1, 0 }
  0x26   : > { %6247 = sst [smem:[#allocation35_spill]] %s6246_s18  ;;  %p4211_p7 = scmp.ge.s32.totalorder %s5202_s15, 1 }
  0x27   : > { %6249 = sst [smem:[#allocation36_spill]] %s6248_s19  ;;  %p5388_p8 = por %p360_p5, %p76_p0 }
  0x28   : > { %p367_p9 = scmp.lt.s32.totalorder %s5202_s15, 17  ;;  %s5204_s24 = smov [#allocation16]  }
  0x29   : > { %s6250_s20 = scalar_select %p5388_p8, 1, 0 }
  0x2a   : > { %p5393_p10 = pnand %p4211_p7, %p367_p9  ;;  %s379_s12 = sshll.u32 %s5204_s24, 4  ;;  %s380_s12 = int_to_ptr.vmem [resolvable:$true] %s379_s12 }
  0x2b   : > { %6251 = sst [smem:[#allocation37_spill]] %s6250_s20  ;;  %s5205_s29 = smov [#allocation17]  }
  0x2c   : > { %s6252_s21 = scalar_select %p5393_p10, 1, 0 }
  0x2d   : > { %p4666_p11 = pneg %p5393_p10  ;;  %s392_s28 = sshll.u32 %s5205_s29, 4  ;;  %s5405_s28 = int_to_ptr.vmem [resolvable:$true] %s392_s28 }
  0x2e   : > { %6253 = sst [smem:[#allocation38_spill]] %s6252_s21  ;;  %s6255_s4 = sld [smem:[#allocation46_spill]] }
  0x2f   : > { %p5401_p12 = pnand %p4666_p11, %p6189_p1 }
  0x31   : > { %s6254_s17 = scalar_select %p5401_p12, 1, 0 }
  0x32   : > { %p5415_p0 = pneg %p5401_p12 }
  0x34   : > { %s4844_s10 = scalar_lea.hbm %s6255_s4, 512 }
  0x35   : > { %p4845_p13 = scmp.ne.s32.totalorder %s6255_s4, %s4844_s10  ;;  %p4851_p7 = scmp.lt.u32.totalorder %s4844_s10, %s6255_s4 }
  0x36   : > { %s6256_s24 = scalar_select %p5415_p0, 1, 0 }
  0x37   : > { %p4847_p2 = pnand %p5415_p0, %p4845_p13 }
  0x39   : > { %p4848_p5 = pneg %p4847_p2 }
  0x3b   : > { %p4853_p9 = pnand %p4851_p7, %p4848_p5 }
  0x3d   : > { %4856 = shalt.err (!%p4853_p9)
}
  0x3e   : > { %s4857_s11 = scalar_lea.vmem %s380_s12, 512  ;;  %p4865_p8 = scmp.lt.s32.totalorder %s380_s12, %s380_s12 }
  0x3f   : > { %p4858_p11 = scmp.ne.s32.totalorder %s380_s12, %s4857_s11  ;;  %p4866_p6 = scmp.lt.s32.totalorder %s4857_s11, %s4857_s11 }
  0x41   : > { %p4860_p1 = pnand %p4858_p11, %p5415_p0  ;;  %p4867_p4 = por %p4866_p6, %p4865_p8 }
  0x43   : > { %p4861_p3 = pneg %p4860_p1 }
  0x45   : > { %p4868_p10 = pnand %p4867_p4, %p4861_p3 }
  0x47   : > { %4871 = shalt.err (!%p4868_p10)
}
  0x48   : > { %s6199_s7 = smov 128   ;;  %s6201_s9 = smov 8  }
  0x49   : > { %4669 = dma.hbm_to_vmem [thread:$0]  (!%p5401_p12), %s6255_s4, 512, %s380_s12, [#allocation15], %s6199_s7, %s6199_s7, %s6201_s9  }
  0x4a   : > { %s6257_s5 = sld [smem:[#allocation47_spill]] }
  0x50   : > { %s4872_s27 = scalar_lea.hbm %s6257_s5, 512 }
  0x51   : > { %p4873_p1 = scmp.ne.s32.totalorder %s6257_s5, %s4872_s27  ;;  %p4879_p6 = scmp.lt.u32.totalorder %s4872_s27, %s6257_s5 }
  0x53   : > { %p4875_p3 = pnand %p4873_p1, %p5415_p0 }
  0x55   : > { %p4876_p4 = pneg %p4875_p3 }
  0x57   : > { %p4881_p8 = pnand %p4879_p6, %p4876_p4 }
  0x59   : > { %4884 = shalt.err (!%p4881_p8)
}
  0x5a   : > { %s4885_s12 = scalar_lea.vmem %s5405_s28, 512  ;;  %p4893_p5 = scmp.lt.s32.totalorder %s5405_s28, %s5405_s28 }
  0x5b   : > { %p4886_p10 = scmp.ne.s32.totalorder %s5405_s28, %s4885_s12  ;;  %p4894_p7 = scmp.lt.s32.totalorder %s4885_s12, %s4885_s12 }
  0x5d   : > { %p4888_p13 = pnand %p4886_p10, %p5415_p0  ;;  %p4895_p9 = por %p4894_p7, %p4893_p5 }
  0x5f   : > { %p4889_p2 = pneg %p4888_p13 }
  0x61   : > { %p4896_p11 = pnand %p4895_p9, %p4889_p2 }
  0x63   : > { %4899 = shalt.err (!%p4896_p11)
}
  0x64   : > { %4672 = dma.hbm_to_vmem [thread:$0]  (!%p5401_p12), %s6257_s5, 512, %s5405_s28, [#allocation18], %s6199_s7, %s6199_s7, %s6201_s9  }
  0x65   : > { %s47_s19 = sadd.s32 1, %s5190_s30  ;;  %p6206_p3 = scmp.eq.s32.totalorder %s5202_s15, 0 }
  0x66   : > { %p5462_p1 = scmp.ge.s32.totalorder %s47_s19, 4  ;;  %p98_p4 = scmp.ne.s32.totalorder %s5162_s23, %s5158_s22 }
  0x67   : > { %p6205_p8 = scmp.lt.s32.totalorder %s5202_s15, 16  ;;  %s6207_s29 = sand.u32 1, %s5202_s15  }
  0x68   : > { %s6258_s6 = scalar_select %p5462_p1, 1, 0 }
  0x69   : > { %s6330_s19 = smov (%p5462_p1, %s47_s19), 0  ;;  %p5476_p6 = por %p98_p4, %p6206_p3 }
  0x6a   : > { %s459_s11 = sand.u32 1, %s5162_s23   ;;  %s4221_s27 = sshll.u32 %s5190_s30, 3 }
  0x6b   : > { %s5485_s12 = sshll.u32 %s459_s11, 6  ;;  %s4222_s18 = sshll.u32 %s5198_s14, 5 }
  0x6c   : > { %s467_s10 = sadd.s32 %s4222_s18, %s4221_s27  ;;  %s461_s21 = scalar_lea.vmem [#allocation11], %s5485_s12 }
  0x6d   : > { %s470_s7 = sshll.u32 %s461_s21, 4  ;;  %s5490_s9 = sshll.u32 %s467_s10, 7  ;;  %s5492_s7 = int_to_ptr.vmem [resolvable:$true] %s470_s7 }
  0x6e   : > { %s6260_s1 = sld [smem:[#allocation43_spill]]  ;;  %p5504_p10 = pnand %p6205_p8, %p5476_p6 }
  0x6f   : > { %s5208_s21 = smov [#allocation19]   ;;  %s5512_s27 = scalar_lea.sflag [#allocation12], %s6207_s29 }
  0x70   : > { %s6261_s11 = scalar_select %p5504_p10, 1, 0 }
  0x71   : > { %s5508_s10 = sshll.u32 %s5208_s21, 4  ;;  %6263 = sst [smem:[#allocation40_spill]] %s5512_s27  ;;  %s412_s10 = int_to_ptr.vmem [resolvable:$true] %s5508_s10 }
  0x72   : > { %6262 = sst [smem:[#allocation39_spill]] %s6261_s11  ;;  %p5518_p2 = pneg %p5504_p10 }
  0x74   : > { %s5498_s22 = scalar_lea.hbm %s6260_s1, %s5490_s9  ;;  %s4905_s28 = scalar_lea.hbm %s6260_s1, 8192 }
  0x75   : > { %s4900_s4 = scalar_lea.hbm %s5498_s22, 1024  ;;  %p4906_p9 = scmp.lt.u32.totalorder %s5498_s22, %s6260_s1 }
  0x76   : > { %p4901_p13 = scmp.ne.s32.totalorder %s5498_s22, %s4900_s4  ;;  %p4907_p11 = scmp.lt.u32.totalorder %s4905_s28, %s4900_s4 }
  0x77   : > { %p4909_p6 = scmp.lt.u32.totalorder %s4900_s4, %s5498_s22 }
  0x78   : > { %p4903_p5 = pnand %p5518_p2, %p4901_p13  ;;  %p4908_p4 = por %p4907_p11, %p4906_p9 }
  0x7a   : > { %p4904_p7 = pneg %p4903_p5  ;;  %p4910_p8 = por %p4909_p6, %p4908_p4 }
  0x7c   : > { %p4911_p3 = pnand %p4910_p8, %p4904_p7 }
  0x7e   : > { %4914 = shalt.err (!%p4911_p3)
}
  0x7f   : > { %s4915_s29 = scalar_lea.vmem %s5492_s7, 1024  ;;  %s5209_s20 = smov [#allocation11]  }
  0x80   : > { %p4916_p13 = scmp.ne.s32.totalorder %s5492_s7, %s4915_s29  ;;  %s4920_s18 = sshll.u32 %s5209_s20, 4  ;;  %s4921_s18 = int_to_ptr.vmem [resolvable:$false] %s4920_s18 }
  0x81   : > { %s4922_s3 = scalar_lea.vmem %s4921_s18, 2048  ;;  %p4923_p12 = scmp.lt.s32.totalorder %s5492_s7, %s4921_s18 }
  0x82   : > { %p4918_p5 = pnand %p4916_p13, %p5518_p2  ;;  %p4924_p0 = scmp.lt.s32.totalorder %s4922_s3, %s4915_s29 }
  0x84   : > { %p4919_p1 = pneg %p4918_p5  ;;  %p4925_p9 = por %p4924_p0, %p4923_p12 }
  0x86   : > { %p4926_p11 = pnand %p4925_p9, %p4919_p1 }
  0x88   : > { %4929 = shalt.err (!%p4926_p11)
}
  0x89   : > { %s6265_s28 = smov 8   ;;  %s6266_s4 = smov 128  }
  0x8a   : > { %4682 = dma.hbm_to_vmem [thread:$0]  (!%p5504_p10), %s5498_s22, 1024, %s5492_s7, %s5512_s27, %s6266_s4, %s6266_s4, %s6265_s28  }
  0x8b   : > { %s6267_s8 = sld [smem:[#allocation50_spill]]  ;;  %p6268_p0 = scmp.ne.s32.totalorder %s6256_s24, 0 }
  0x91   : > { %s4930_s18 = scalar_lea.hbm %s6267_s8, 512 }
  0x92   : > { %p4931_p12 = scmp.ne.s32.totalorder %s6267_s8, %s4930_s18  ;;  %p4937_p8 = scmp.lt.u32.totalorder %s4930_s18, %s6267_s8 }
  0x94   : > { %p4933_p1 = pnand %p4931_p12, %p6268_p0 }
  0x96   : > { %p4934_p3 = pneg %p4933_p1 }
  0x98   : > { %p4939_p7 = pnand %p4937_p8, %p4934_p3 }
  0x9a   : > { %4942 = shalt.err (!%p4939_p7)
}
  0x9b   : > { %s4943_s2 = scalar_lea.vmem %s412_s10, 512  ;;  %p4951_p5 = scmp.lt.s32.totalorder %s412_s10, %s412_s10 }
  0x9c   : > { %p4944_p4 = scmp.ne.s32.totalorder %s412_s10, %s4943_s2  ;;  %p4952_p9 = scmp.lt.s32.totalorder %s4943_s2, %s4943_s2 }
  0x9e   : > { %p4946_p6 = pnand %p4944_p4, %p6268_p0  ;;  %p4953_p11 = por %p4952_p9, %p4951_p5 }
  0xa0   : > { %p4947_p13 = pneg %p4946_p6 }
  0xa2   : > { %p4954_p10 = pnand %p4953_p11, %p4947_p13 }
  0xa4   : > { %4957 = shalt.err (!%p4954_p10)
}
  0xa5   : > { %p6269_p12 = scmp.ne.s32.totalorder %s6254_s17, 0  ;;  %s63_s2 = sadd.s32 1, %s5174_s26 }
  0xa6   : > { %s50_s17 = sadd.s32 1, %s5194_s13  ;;  %p70_p10 = scmp.ne.s32.totalorder %s5174_s26, %s5170_s25 }
  0xa7   : > { %4675 = dma.hbm_to_vmem [thread:$0]  (!%p6269_p12), %s6267_s8, 512, %s412_s10, [#allocation18], %s6266_s4, %s6266_s4, %s6265_s28  }
  0xa8   : > { %p6270_p0 = scmp.ne.s32.totalorder %s6258_s6, 0  ;;  %p6271_p1 = scmp.eq.s32.totalorder %s5202_s15, 0 }
  0xa9   : > { %p6273_p8 = scmp.eq.s32.totalorder %s5367_s16, 15  ;;  %s434_s11 = sand.u32 1, %s5174_s26  }
  0xaa   : > { %s6332_s17 = smov (!%p6270_p0, %s50_s17), %s5194_s13  ;;  %p5576_p3 = por %p6271_p1, %p70_p10 }
  0xab   : > { %p5582_p7 = por %p6273_p8, %p70_p10  ;;  %p52_p4 = scmp.ge.s32.totalorder %s6332_s17, 2 }
  0xac   : > { %s4216_s10 = sshll.u32 %s434_s11, 4  ;;  %s6277_s6 = sadd.s32 1, %s5198_s14 }
  0xad   : > { %s6274_s7 = scalar_select %p5582_p7, 1, 0 }
  0xae   : > { %s6334_s17 = smov (%p52_p4, %s6332_s17), 0  ;;  %s6336_s6 = smov (!%p52_p4, %s6277_s6), %s5198_s14 }
  0xaf   : > { %6275 = sst [smem:[#allocation41_spill]] %s6274_s7  ;;  %s59_s21 = ssub.s32 %s5194_s13, %s6334_s17 }
  0xb0   : > { %6276 = sst [smem:[#allocation42_spill]] %s6334_s17  ;;  %p56_p6 = scmp.ge.s32.totalorder %s6336_s6, 2 }
  0xb1   : > { %s4217_s20 = sshll.u32 %s5194_s13, 1  ;;  %s4218_s18 = sshll.u32 %s5198_s14, 2 }
  0xb2   : > { %s438_s29 = scalar_lea.vmem [#allocation8], %s4216_s10  ;;  %s6338_s6 = smov (%p56_p6, %s6336_s6), 0 }
  0xb3   : > { %s447_s3 = sshll.u32 %s438_s29, 4  ;;  %s444_s1 = sadd.s32 %s4218_s18, %s4217_s20  ;;  %s5598_s3 = int_to_ptr.vmem [resolvable:$true] %s447_s3 }
  0xb4   : > { %s58_s22 = ssub.s32 %s5198_s14, %s6338_s6  ;;  %s4219_s8 = sshll.u32 %s444_s1, 7 }
  0xb5   : > { %s60_s7 = sor.u32 %s59_s21, %s58_s22  ;;  %s6278_s17 = ssub.s32 %s5190_s30, %s6330_s19 }
  0xb6   : > { %s88_s16 = sor.u32 %s6278_s17, %s58_s22  ;;  %p61_p13 = scmp.eq.s32.totalorder %s60_s7, 0 }
  0xb7   : > { %p89_p5 = scmp.eq.s32.totalorder %s88_s16, 0  ;;  %s5608_s27 = scalar_lea.hbm %s6172_s0, %s4219_s8 }
  0xb8   : > { %p6279_p9 = scmp.lt.s32.totalorder %s5202_s15, 16  ;;  %s6281_s16 = sadd.s32 1, %s5162_s23 }
  0xb9   : > { %s5619_s17 = scalar_select %p61_p13, %s5174_s26, %s63_s2  }
  0xba   : > { %p5614_p11 = pnand %p6279_p9, %p5576_p3  ;;  %s5626_s25 = scalar_lea.sflag [#allocation9], %s434_s11 }
  0xbb   : > { %s5624_s7 = scalar_select %p89_p5, %s5162_s23, %s6281_s16  }
  0xbc   : > { %s4958_s8 = scalar_lea.hbm %s5608_s27, 256  ;;  %p4960_p10 = pneg %p5614_p11 }
  0xbd   : > { %p4959_p12 = scmp.ne.s32.totalorder %s5608_s27, %s4958_s8  ;;  %s4963_s21 = scalar_lea.hbm %s6172_s0, 1024 }
  0xbe   : > { %p4964_p3 = scmp.lt.u32.totalorder %s5608_s27, %s6172_s0  ;;  %p4965_p8 = scmp.lt.u32.totalorder %s4963_s21, %s4958_s8 }
  0xbf   : > { %p4961_p0 = pnand %p4960_p10, %p4959_p12  ;;  %p4967_p6 = scmp.lt.u32.totalorder %s4958_s8, %s5608_s27 }
  0xc0   : > { %p4966_p4 = por %p4965_p8, %p4964_p3 }
  0xc1   : > { %p4962_p1 = pneg %p4961_p0 }
  0xc2   : > { %p4968_p13 = por %p4967_p6, %p4966_p4 }
  0xc4   : > { %p4969_p5 = pnand %p4968_p13, %p4962_p1 }
  0xc6   : > { %4972 = shalt.err (!%p4969_p5)
}
  0xc7   : > { %s4973_s11 = scalar_lea.vmem %s5598_s3, 256  ;;  %s5210_s18 = smov [#allocation8]  }
  0xc8   : > { %p4974_p9 = scmp.ne.s32.totalorder %s5598_s3, %s4973_s11  ;;  %s4978_s29 = sshll.u32 %s5210_s18, 4  ;;  %s4979_s29 = int_to_ptr.vmem [resolvable:$false] %s4978_s29 }
  0xc9   : > { %s4980_s1 = scalar_lea.vmem %s4979_s29, 512  ;;  %p4981_p7 = scmp.lt.s32.totalorder %s5598_s3, %s4979_s29 }
  0xca   : > { %p4976_p12 = pnand %p4974_p9, %p4960_p10  ;;  %p4982_p3 = scmp.lt.s32.totalorder %s4980_s1, %s4973_s11 }
  0xcc   : > { %p4977_p0 = pneg %p4976_p12  ;;  %p4983_p8 = por %p4982_p3, %p4981_p7 }
  0xce   : > { %p4984_p4 = pnand %p4983_p8, %p4977_p0 }
  0xd0   : > { %4987 = shalt.err (!%p4984_p4)
}
  0xd1   : > { %4679 = dma.hbm_to_vmem [thread:$0]  (!%p5614_p11), %s5608_s27, 256, %s5598_s3, %s5626_s25, %s6266_s4, %s6266_s4, %s6265_s28  }
  0xd2   : > { %s6282_s8 = sld [smem:[#allocation44_spill]]  ;;  %s484_s10 = scalar_lea.vmem [#allocation13], %s5485_s12 }
  0xd3   : > { %s493_s24 = sshll.u32 %s484_s10, 4  ;;  %s5664_s24 = int_to_ptr.vmem [resolvable:$true] %s493_s24 }
  0xd8   : > { %s5661_s13 = scalar_lea.hbm %s6282_s8, %s5490_s9  ;;  %s4993_s3 = scalar_lea.hbm %s6282_s8, 8192 }
  0xd9   : > { %s4988_s21 = scalar_lea.hbm %s5661_s13, 1024  ;;  %p4994_p11 = scmp.lt.u32.totalorder %s5661_s13, %s6282_s8 }
  0xda   : > { %p4989_p7 = scmp.ne.s32.totalorder %s5661_s13, %s4988_s21  ;;  %p4995_p6 = scmp.lt.u32.totalorder %s4993_s3, %s4988_s21 }
  0xdb   : > { %p4997_p5 = scmp.lt.u32.totalorder %s4988_s21, %s5661_s13 }
  0xdc   : > { %p4991_p10 = pnand %p4989_p7, %p5518_p2  ;;  %p4996_p13 = por %p4995_p6, %p4994_p11 }
  0xde   : > { %p4992_p1 = pneg %p4991_p10  ;;  %p4998_p9 = por %p4997_p5, %p4996_p13 }
  0xe0   : > { %p4999_p12 = pnand %p4998_p9, %p4992_p1 }
  0xe2   : > { %5002 = shalt.err (!%p4999_p12)
}
  0xe3   : > { %s5003_s11 = scalar_lea.vmem %s5664_s24, 1024  ;;  %s5211_s18 = smov [#allocation13]  }
  0xe4   : > { %p5004_p0 = scmp.ne.s32.totalorder %s5664_s24, %s5003_s11  ;;  %s5008_s29 = sshll.u32 %s5211_s18, 4  ;;  %s5009_s29 = int_to_ptr.vmem [resolvable:$false] %s5008_s29 }
  0xe5   : > { %s5010_s1 = scalar_lea.vmem %s5009_s29, 2048  ;;  %p5011_p4 = scmp.lt.s32.totalorder %s5664_s24, %s5009_s29 }
  0xe6   : > { %p5006_p3 = pnand %p5004_p0, %p5518_p2  ;;  %p5012_p7 = scmp.lt.s32.totalorder %s5010_s1, %s5003_s11 }
  0xe8   : > { %p5007_p8 = pneg %p5006_p3  ;;  %p5013_p10 = por %p5012_p7, %p5011_p4 }
  0xea   : > { %p5014_p11 = pnand %p5013_p10, %p5007_p8 }
  0xec   : > { %5017 = shalt.err (!%p5014_p11)
}
  0xed   : > { %s6283_s22 = sld [smem:[#allocation39_spill]]  ;;  %s6285_s16 = sld [smem:[#allocation40_spill]] }
  0xee   : > { %s6286_s20 = sld [smem:[#allocation45_spill]]  ;;  %s507_s3 = scalar_lea.vmem [#allocation14], %s5485_s12 }
  0xef   : > { %s516_s25 = sshll.u32 %s507_s3, 4  ;;  %s6287_s2 = sand.u32 1, %s5202_s15   ;;  %s5698_s25 = int_to_ptr.vmem [resolvable:$true] %s516_s25 }
  0xf0   : > { %s5702_s11 = scalar_lea.sflag [#allocation15], %s6287_s2 }
  0xf3   : > { %p6284_p1 = scmp.ne.s32.totalorder %s6283_s22, 0 }
  0xf4   : > { %s5695_s27 = scalar_lea.hbm %s6286_s20, %s5490_s9  ;;  %s5023_s9 = scalar_lea.hbm %s6286_s20, 8192 }
  0xf5   : > { %4685 = dma.hbm_to_vmem [thread:$0]  (!%p6284_p1), %s5661_s13, 1024, %s5664_s24, %s6285_s16, %s6266_s4, %s6266_s4, %s6265_s28  }
  0xf6   : > { %s5018_s18 = scalar_lea.hbm %s5695_s27, 1024  ;;  %p5024_p9 = scmp.lt.u32.totalorder %s5695_s27, %s6286_s20 }
  0xf7   : > { %p5019_p6 = scmp.ne.s32.totalorder %s5695_s27, %s5018_s18  ;;  %p5025_p12 = scmp.lt.u32.totalorder %s5023_s9, %s5018_s18 }
  0xf8   : > { %p5027_p3 = scmp.lt.u32.totalorder %s5018_s18, %s5695_s27 }
  0xf9   : > { %p5021_p13 = pnand %p5019_p6, %p5518_p2  ;;  %p5026_p0 = por %p5025_p12, %p5024_p9 }
  0xfb   : > { %p5022_p5 = pneg %p5021_p13  ;;  %p5028_p8 = por %p5027_p3, %p5026_p0 }
  0xfd   : > { %p5029_p4 = pnand %p5028_p8, %p5022_p5 }
  0xff   : > { %5032 = shalt.err (!%p5029_p4)
}
 0x100   : > { %s5033_s12 = scalar_lea.vmem %s5698_s25, 1024  ;;  %s5212_s16 = smov [#allocation14]  }
 0x101   : > { %p5034_p7 = scmp.ne.s32.totalorder %s5698_s25, %s5033_s12  ;;  %s5038_s10 = sshll.u32 %s5212_s16, 4  ;;  %s5039_s10 = int_to_ptr.vmem [resolvable:$false] %s5038_s10 }
 0x102   : > { %s5040_s21 = scalar_lea.vmem %s5039_s10, 2048  ;;  %p5041_p6 = scmp.lt.s32.totalorder %s5698_s25, %s5039_s10 }
 0x103   : > { %p5036_p10 = pnand %p5034_p7, %p5518_p2  ;;  %p5042_p13 = scmp.lt.s32.totalorder %s5040_s21, %s5033_s12 }
 0x105   : > { %p5037_p11 = pneg %p5036_p10  ;;  %p5043_p9 = por %p5042_p13, %p5041_p6 }
 0x107   : > { %p5044_p12 = pnand %p5043_p9, %p5037_p11 }
 0x109   : > { %5047 = shalt.err (!%p5044_p12)
}
 0x10a   : > { %4688 = dma.hbm_to_vmem [thread:$0]  (!%p6284_p1), %s5695_s27, 1024, %s5698_s25, %s5702_s11, %s6266_s4, %s6266_s4, %s6265_s28  }
 0x10b   : > { %s6288_s5 = sld [smem:[#allocation38_spill]] }
 0x111   : > { %p6289_p2 = scmp.ne.s32.totalorder %s6288_s5, 0 }
 0x112   : > { %s6290_s3 = sld [smem:[#allocation29_spill]] (!%p6289_p2) }
 0x113   : > { %528 = sbr.rel (%p6289_p2) target bundleno = 2955 (0xb8b), region = 68  ;;  %s6291_s2 = sld [smem:[#allocation35_spill]] (!%p6289_p2) }
 0x118   : > { %s5732_s18 = sand.u32 (!%p6289_p2), 1, %s6290_s3  }
 0x119   : > { %s4233_s13 = sshll.u32 (!%p6289_p2), %s5732_s18, 4  ;;  %s531_s24 = scalar_lea.sflag (!%p6289_p2), [#allocation9], %s5732_s18 }
 0x11a   : > { %s5736_s9 = scalar_lea.vmem [#allocation8], %s4233_s13  ;;  %p6292_p5 = scmp.ne.s32.totalorder %s6291_s2, 0 }
 0x11c   : > { %5129 = dma.done.wait (%p6292_p5), %s531_s24, 256  }
 0x11d   : > { %5131 = vsyncadd (%p6292_p5), %s531_s24, 4294967040  ;;  %s6293_s22 = sld [smem:[#allocation34_spill]]  ;;  %s6295_s4 = sld [smem:[#allocation36_spill]] }
 0x11e   : > { %s6294_s28 = sld [smem:[#allocation27_spill]] }
 0x123   : > { %s539_s27 = sand.u32 1, %s6293_s22   ;;  %p6296_p1 = scmp.ne.s32.totalorder %s6295_s4, 0 }
 0x124   : > { %s541_s25 = sand.u32 1, %s6294_s28   ;;  %s540_s29 = scalar_lea.sflag [#allocation12], %s539_s27 }
 0x125   : > { %s4234_s11 = sshll.u32 %s541_s25, 6 }
 0x126   : > { %s5744_s1 = scalar_lea.vmem [#allocation11], %s4234_s11 }
 0x127   : > { %5133 = dma.done.wait (%p6296_p1), %s540_s29, 2048  }
 0x128   : > { %5135 = vsyncadd (%p6296_p1), %s540_s29, 4294965248  ;;  %s5750_s12 = scalar_lea.vmem [#allocation13], %s4234_s11  ;;  %s558_s16 = scalar_lea.sflag [#allocation15], %s539_s27 }
 0x129   : > { %s5752_s10 = scalar_lea.vmem [#allocation14], %s4234_s11 }
 0x12a   : > { %5137 = dma.done.wait (%p6296_p1), %s558_s16, 1024  }
 0x12b   : > { %5139 = vsyncadd (%p6296_p1), %s558_s16, 4294966272  ;;  %p6297_p0 = scmp.eq.s32.totalorder %s6293_s22, 0 }
 0x12d   : > { %5141 = dma.done.wait (%p6297_p0), [#allocation15], 512   ;;  %p6298_p3 = pmov %p6297_p0 }
 0x12e   : > { %p6299_p8 = pmov %p6297_p0 }
 0x12f   : > { %5143 = vsyncadd (%p6298_p3), [#allocation15], 4294966784 }
 0x130   : > { %5145 = dma.done.wait (%p6299_p8), [#allocation18], 1024   ;;  %p6300_p4 = pmov %p6297_p0 }
 0x131   : > { %s5766_s21 = scalar_lea.vmem [#allocation20], %s4233_s13  ;;  %s6301_s5 = sld [smem:[#allocation30_spill]] }
 0x132   : > { %5147 = vsyncadd (%p6300_p4), [#allocation18], 4294966272 }
 0x137   : > { %p4241_p7 = scmp.ne.s32.totalorder %s6301_s5, 0 }
 0x138   : > { %v637_v0 = vld [vmem:[#allocation16] sm:$0xff] (!%p4241_p7)  ;;  %v638_v1 = vld [vmem:[#allocation16 + $0x8] sm:$0xff] (!%p4241_p7)  ;;  %v639_v2 = vld [vmem:[#allocation16 + $0x10] sm:$0xff] (!%p4241_p7)  ;;  %v5213_v3 = vmov (!%p4241_p7), 0.0|0.0   ;;  %vm5214_vm0 = vmmov (!%p4241_p7), 0   ;;  %v5215_v6 = vmov (!%p4241_p7), 0.0   ;;  %v814_v36 = vlaneseq (!%p4241_p7) }
 0x139   : > { %634 = sbr.rel (%p4241_p7) target bundleno = 1604 (0x644), region = 100  ;;  %4604 = vmatprep.subr.bf16.mxu0 (!%p4241_p7), %v5213_v3  ;;  %v4605_v4 = vpack.c.bf16 (!%p4241_p7), %v638_v1, %v637_v0  ;;  %v640_v5 = vld [vmem:[#allocation16 + $0x18] sm:$0xff] (!%p4241_p7)  ;;  %4406 = vmatprep.mubr.msk.f32.mxu0 (!%p4241_p7), %vm5214_vm0, %v5215_v6  ;;  %v5771_v7 = vld [vmem:[%s5736_s9] sm:$0xff] (!%p4241_p7)  ;;  %vm645_vm1 = vcmask (!%p4241_p7), 261120   ;;  %v642_v12 = vld [vmem:[#allocation17 + $0x8] sm:$0xff] (!%p4241_p7)  ;;  %vm662_vm2 = vcmask (!%p4241_p7), 1041409  }
 0x13a   : > { %v5774_v8 = vld [vmem:[%s5736_s9 + $0x8] sm:$0xff] (!%p4241_p7)  ;;  %v646_v9 = vsel (!%p4241_p7), %vm645_vm1, %v5771_v7, 0.0  ;;  %4610 = vmatprep.subr.bf16.mxu1 (!%p4241_p7), %v5213_v3  ;;  %v641_v11 = vld [vmem:[#allocation17] sm:$0xff] (!%p4241_p7)  ;;  %4417 = vmatprep.mubr.msk.f32.mxu1 (!%p4241_p7), %vm5214_vm0, %v5215_v6  ;;  %v4608_v13 = vpack.c.bf16 (!%p4241_p7), %v640_v5, %v639_v2  ;;  %v643_v28 = vld [vmem:[#allocation17 + $0x10] sm:$0xff] (!%p4241_p7)  ;;  %v5216_v34 = vmov (!%p4241_p7), 1966171168  }
 0x13b   : > { %v653_v10 = vsel (!%p4241_p7), %vm645_vm1, %v5774_v8, 0.0  ;;  %4606 = vmatpush3.bf16.msra.mxu0 (!%p4241_p7), %v4605_v4  ;;  %v647_v14 = vrot.slane (!%p4241_p7), %v646_v9, 4  ;;  %v4611_v16 = vpack.c.bf16 (!%p4241_p7), %v642_v12, %v641_v11  ;;  %v644_v29 = vld [vmem:[#allocation17 + $0x18] sm:$0xff] (!%p4241_p7)  ;;  %v812_v35 = vunpack.c.l.s4 (!%p4241_p7), %v5216_v34  ;;  %v1069_v12 = vld [vmem:[#allocation19 + $0x10] sm:$0xff] (!%p4241_p7)  ;;  %s6302_s13 = sld [smem:[#allocation48_spill]] (!%p4241_p7)  ;;  %s6303_s22 = sld [smem:[#allocation49_spill]] (!%p4241_p7) }
 0x13c   : > { %v654_v15 = vrot.slane (!%p4241_p7), %v653_v10, 4  ;;  %4607 = vmatprep.subr.bf16.mxu0 (!%p4241_p7), %v5213_v3  ;;  %v4614_v30 = vpack.c.bf16 (!%p4241_p7), %v644_v29, %v643_v28  ;;  %v815_v38 = vshrl.u32 (!%p4241_p7), %v814_v36, 7  ;;  %s6304_s27 = sld [smem:[#allocation51_spill]] (!%p4241_p7)  ;;  %vm1159_vm3 = vcmask (!%p4241_p7), 64512   ;;  %s5217_s25 = smov (!%p4241_p7), 64  }
 0x13d   : > { %v648_v17 = vadd.f32 (!%p4241_p7), %v647_v14, %v646_v9  ;;  %4612 = vmatpush3.bf16.msra.mxu1 (!%p4241_p7), %v4611_v16  ;;  %v813_v37 = vunpack.c.0.s8 (!%p4241_p7), %v812_v35  ;;  %v1067_v9 = vld [vmem:[#allocation19] sm:$0xff] (!%p4241_p7)  ;;  %s5218_s11 = smov (!%p4241_p7), 96   ;;  %s5219_s29 = smov (!%p4241_p7), 120  }
 0x13e   : > { %v655_v18 = vadd.f32 (!%p4241_p7), %v654_v15, %v653_v10  ;;  %4613 = vmatprep.subr.bf16.mxu1 (!%p4241_p7), %v5213_v3  ;;  %v835_v42 = vsub.s32 (!%p4241_p7), 0, %v815_v38  ;;  %v1068_v10 = vld [vmem:[#allocation19 + $0x8] sm:$0xff] (!%p4241_p7)  ;;  %s5220_s16 = smov (!%p4241_p7), 88   ;;  %s5221_s5 = smov (!%p4241_p7), 56  }
 0x13f   : > { %4609 = vmatpush3.bf16.msra.mxu0 (!%p4241_p7), %v4608_v13  ;;  %v649_v19 = vrot.slane (!%p4241_p7), %v648_v17, 2  ;;  %v816_v39 = vsub.s32 (!%p4241_p7), %v813_v37, %v815_v38  ;;  %v4628_v11 = vpack.c.bf16 (!%p4241_p7), %v1068_v10, %v1067_v9  ;;  %s5222_s3 = smov (!%p4241_p7), 112   ;;  %s5223_s2 = smov (!%p4241_p7), 80  }
 0x140   : > { %v656_v20 = vrot.slane %v655_v18, 2  ;;  %4616 = vmatprep.subr.bf16.mxu0 %v5213_v3  ;;  %s5225_s24 = smov 104   ;;  %s5226_s9 = smov 72  }
 0x141   : > { %v650_v21 = vadd.f32 %v649_v19, %v648_v17  ;;  %4615 = vmatpush3.bf16.msra.mxu1 %v4614_v30 }
 0x142   : > { %v657_v22 = vadd.f32 %v656_v20, %v655_v18  ;;  %4622 = vmatprep.subr.bf16.mxu1 %v5213_v3 }
 0x143   : > { %v651_v23 = vrot.slane %v650_v21, 1 }
 0x144   : > { %v658_v24 = vrot.slane %v657_v22, 1 }
 0x145   : > { %v652_v25 = vadd.f32 %v651_v23, %v650_v21 }
 0x146   : > { %v659_v26 = vadd.f32 %v658_v24, %v657_v22  ;;  %v4246_v22 = vld [vmem:[%s6302_s13] ss:$0 sm:$0xff]  ;;  %s5224_s13 = smov 48  }
 0x148   : > { %v663_v27 = vsel %vm662_vm2, %v659_v26, %v652_v25  ;;  %v4247_v25 = vld [vmem:[%s6303_s22] ss:$0 sm:$0xff]  ;;  %s5227_s22 = smov 40  }
 0x149   : > { %4407 = vmatmul.mubr.msk.f32.vlgmr.msra.gmra.mrb[0].mxu0 %vm645_vm1, %v663_v27 }
 0x14a   : > { %4618 = vmatpush3.bf16.msra.mxu0 %v4605_v4  ;;  %4428 = vmatprep.mubr.msk.f32.mxu0 %vm5214_vm0, %v5215_v6 }
 0x14b   : > { %4619 = vmatprep.subr.bf16.mxu0 %v5213_v3 }
 0x14e   : > { %4621 = vmatpush3.bf16.msra.mxu0 %v4608_v13  ;;  %v1070_v13 = vld [vmem:[#allocation19 + $0x18] sm:$0xff] }
 0x14f   : > { %4629 = vmatprep.subr.bf16.mxu0 %v4628_v11  ;;  %v4632_v14 = vpack.c.bf16 %v1070_v13, %v1069_v12 }
 0x21c   : > { %v732_v31 = vpop.f32.mrb[0].mxu0 }
 0x21d   : > { %v736_v32 = vmul.f32 0.125, %v732_v31  ;;  %v4408_v33 = vpop.f32.mrb[1].mxu0  ;;  %v4248_v31 = vld [vmem:[%s6304_s27] ss:$0 sm:$0xff] }
 0x21f   : > { %4418 = vmatmul.mubr.msk.f32.vlgmr.msra.gmra.mrb[0].mxu1 %vm645_vm1, %v736_v32 }
 0x220   : > { %4624 = vmatpush3.bf16.msra.mxu1 %v4611_v16  ;;  %4439 = vmatprep.mubr.msk.f32.mxu1 %vm5214_vm0, %v5215_v6 }
 0x221   : > { %4625 = vmatprep.subr.bf16.mxu1 %v5213_v3 }
 0x224   : > { %4627 = vmatpush3.bf16.msra.mxu1 %v4614_v30 }
 0x2f2   : > { %v806_v40 = vpop.f32.mrb[0].mxu1 }
 0x2f3   : > { %v817_v41 = vrot.slane %v806_v40, %v816_v39  ;;  %v4419_v43 = vpop.f32.mrb[1].mxu1 }
 0x2f5   : > { %v818_v44 = vcombine.high %v817_v41, %v817_v41  ;;  %v825_v45 = vrot.slane %v817_v41, %v816_v39 }
 0x2f7   : > { %v832_v46 = vrot.slane %v818_v44, %v816_v39  ;;  %v836_v47 = vrot.slane %v825_v45, %v835_v42 }
 0x2f9   : > { %v840_v48 = vrot.slane %v832_v46, %v835_v42  ;;  %v843_v49 = vsub.f32 %v5771_v7, %v836_v47 }
 0x2fb   : > { %v844_v50 = vsub.f32 %v5774_v8, %v840_v48  ;;  %v845_v51 = vmul.f32 %v843_v49, %v843_v49 }
 0x2fd   : > { %v846_v52 = vmul.f32 %v844_v50, %v844_v50  ;;  %v847_v53 = vsel %vm645_vm1, %v845_v51, 0.0 }
 0x2fe   : > { %v848_v54 = vrot.slane %v847_v53, 4 }
 0x2ff   : > { %v854_v55 = vsel %vm645_vm1, %v846_v52, 0.0 }
 0x300   : > { %v849_v56 = vadd.f32 %v848_v54, %v847_v53  ;;  %v855_v57 = vrot.slane %v854_v55, 4 }
 0x302   : > { %v850_v58 = vrot.slane %v849_v56, 2  ;;  %v856_v59 = vadd.f32 %v855_v57, %v854_v55 }
 0x304   : > { %v851_v60 = vadd.f32 %v850_v58, %v849_v56  ;;  %v857_v61 = vrot.slane %v856_v59, 2 }
 0x306   : > { %v852_v62 = vrot.slane %v851_v60, 1  ;;  %v858_v63 = vadd.f32 %v857_v61, %v856_v59 }
 0x308   : > { %v859_v0 = vrot.slane %v858_v63, 1  ;;  %v853_v1 = vadd.f32 %v852_v62, %v851_v60 }
 0x30a   : > { %v860_v2 = vadd.f32 %v859_v0, %v858_v63 }
 0x30c   : > { %v863_v3 = vsel %vm662_vm2, %v860_v2, %v853_v1 }
 0x30d   : > { %4429 = vmatmul.mubr.msk.f32.vlgmr.msra.gmra.mrb[2].mxu0 %vm645_vm1, %v863_v3 }
 0x30e   : > { %4631 = vmatpush3.bf16.msra.mxu0 %v4628_v11 }
 0x30f   : > { %4633 = vmatprep.subr.bf16.mxu0 %v4632_v14 }
 0x312   : > { %4635 = vmatpush3.bf16.msra.mxu0 %v4632_v14 }
 0x3e0   : > { %v932_v4 = vpop.f32.mrb[2].mxu0 }
 0x3e1   : > { %v936_v5 = vmul.f32 0.125, %v932_v4  ;;  %v4430_v6 = vpop.f32.mrb[3].mxu0 }
 0x3e3   : > { %v937_v7 = vadd.f32 1e-05, %v936_v5 }
 0x3e5   : > { %4834 = vrsqrt.f32 %v937_v7 }
 0x3ef   : > { %v4835_v8 = vpop.eup %4834 }
 0x3f0   : > { %4440 = vmatmul.mubr.msk.f32.vlgmr.msra.gmra.mrb[2].mxu1 %vm645_vm1, %v4835_v8 }
 0x4c3   : > { %v1008_v15 = vpop.f32.mrb[2].mxu1 }
 0x4c4   : > { %v1019_v16 = vrot.slane %v1008_v15, %v816_v39  ;;  %v4441_v17 = vpop.f32.mrb[3].mxu1 }
 0x4c6   : > { %v1020_v18 = vcombine.high %v1019_v16, %v1019_v16  ;;  %v1027_v19 = vrot.slane %v1019_v16, %v816_v39 }
 0x4c8   : > { %v1034_v20 = vrot.slane %v1020_v18, %v816_v39  ;;  %v1038_v21 = vrot.slane %v1027_v19, %v835_v42 }
 0x4ca   : > { %v1042_v23 = vrot.slane %v1034_v20, %v835_v42  ;;  %v1045_v24 = vmul.f32 %v1038_v21, %v843_v49 }
 0x4cc   : > { %v1046_v26 = vmul.f32 %v1042_v23, %v844_v50  ;;  %v1054_v27 = vmul.f32 %v4246_v22, %v1045_v24 }
 0x4ce   : > { %v1055_v28 = vmul.f32 %v4246_v22, %v1046_v26  ;;  %v1063_v29 = vadd.f32 %v4247_v25, %v1054_v27 }
 0x4d0   : > { %v1064_v30 = vadd.f32 %v4247_v25, %v1055_v28  ;;  %1065 = vst.msk [vmem:[#allocation2] sm:$0xff] %vm645_vm1, %v1063_v29  ;;  %4450 = vmatprep.mubr.msk.f32.mxu0 %vm645_vm1, %v1063_v29 }
 0x4d2   : > { %1066 = vst.msk [vmem:[#allocation2 + $0x8] sm:$0xff] %vm645_vm1, %v1064_v30  ;;  %4451 = vmatmul.mubr.msk.f32.vlgmr.msra.gmra.mrb[4].mxu0 %vm645_vm1, %v1064_v30 }
 0x5a5   : > { %v4452_v32 = vpop.f32.mrb[4].mxu0 }
 0x5a6   : > { %v1156_v33 = vadd.f32 %v4452_v32, %v4248_v31  ;;  %v1150_v34 = vpop.f32.mrb[5].mxu0 }
 0x5a7   : > { %v1151_v35 = vadd.f32 %v4248_v31, %v1150_v34 }
 0x5a8   : > { %1161 = vst.msk [vmem:[#allocation3 + $0x8] sm:$0xff] %vm1159_vm3, %v1156_v33  ;;  %1174 = vrot.lane.b32.xlu1 %v1156_v33, %s5217_s25  ;;  %1166 = vrot.lane.b32.xlu0 %v1156_v33, %s5218_s11 }
 0x5a9   : > { %1160 = vst.msk [vmem:[#allocation3] sm:$0xff] %vm1159_vm3, %v1151_v35 }
 0x5ac   : > { %1182 = vrot.lane.b32.xlu1 %v1156_v33, %s5219_s29  ;;  %1164 = vrot.lane.b32.xlu0 %v1151_v35, %s5218_s11 }
 0x5b0   : > { %1191 = vrot.lane.b32.xlu1 %v1156_v33, %s5220_s16  ;;  %1180 = vrot.lane.b32.xlu0 %v1151_v35, %s5219_s29 }
 0x5b4   : > { %1200 = vrot.lane.b32.xlu1 %v1156_v33, %s5221_s5  ;;  %1189 = vrot.lane.b32.xlu0 %v1151_v35, %s5220_s16 }
 0x5b8   : > { %1209 = vrot.lane.b32.xlu1 %v1156_v33, %s5222_s3  ;;  %1198 = vrot.lane.b32.xlu0 %v1151_v35, %s5221_s5 }
 0x5bc   : > { %1218 = vrot.lane.b32.xlu1 %v1156_v33, %s5223_s2  ;;  %1207 = vrot.lane.b32.xlu0 %v1151_v35, %s5222_s3 }
 0x5c0   : > { %1227 = vrot.lane.b32.xlu1 %v1156_v33, %s5224_s13  ;;  %1216 = vrot.lane.b32.xlu0 %v1151_v35, %s5223_s2 }
 0x5c4   : > { %1236 = vrot.lane.b32.xlu1 %v1156_v33, %s5225_s24  ;;  %1225 = vrot.lane.b32.xlu0 %v1151_v35, %s5224_s13 }
 0x5c8   : > { %1245 = vrot.lane.b32.xlu1 %v1156_v33, %s5226_s9  ;;  %1234 = vrot.lane.b32.xlu0 %v1151_v35, %s5225_s24 }
 0x5cc   : > { %1172 = vrot.lane.b32.xlu1 %v1151_v35, %s5217_s25  ;;  %1243 = vrot.lane.b32.xlu0 %v1151_v35, %s5226_s9 }
 0x5d0   : > { %1254 = vrot.lane.b32.xlu1 %v1156_v33, %s5227_s22  ;;  %1252 = vrot.lane.b32.xlu0 %v1151_v35, %s5227_s22 }
 0x61a   : > { %v1175_v36 = vpop.permute.xlu1 %1174  ;;  %v1167_v37 = vpop.permute.xlu0 %1166 }
 0x61b   : > { %1179 = vst.msk [vmem:[#allocation5 + $0x8] sm:$0xff] %vm1159_vm3, %v1175_v36  ;;  %1171 = vst.msk [vmem:[#allocation4 + $0x8] sm:$0xff] %vm1159_vm3, %v1167_v37 }
 0x61e   : > { %v1183_v38 = vpop.permute.xlu1 %1182  ;;  %v1165_v39 = vpop.permute.xlu0 %1164 }
 0x61f   : > { %1188 = vst.msk [vmem:[#allocation3 + $0x18] sm:$0xff] %vm1159_vm3, %v1183_v38  ;;  %1170 = vst.msk [vmem:[#allocation4] sm:$0xff] %vm1159_vm3, %v1165_v39 }
 0x622   : > { %v1192_v40 = vpop.permute.xlu1 %1191  ;;  %v1181_v41 = vpop.permute.xlu0 %1180 }
 0x623   : > { %1197 = vst.msk [vmem:[#allocation4 + $0x18] sm:$0xff] %vm1159_vm3, %v1192_v40  ;;  %1187 = vst.msk [vmem:[#allocation3 + $0x10] sm:$0xff] %vm1159_vm3, %v1181_v41 }
 0x626   : > { %v1201_v42 = vpop.permute.xlu1 %1200  ;;  %v1190_v43 = vpop.permute.xlu0 %1189 }
 0x627   : > { %1206 = vst.msk [vmem:[#allocation5 + $0x18] sm:$0xff] %vm1159_vm3, %v1201_v42  ;;  %1196 = vst.msk [vmem:[#allocation4 + $0x10] sm:$0xff] %vm1159_vm3, %v1190_v43 }
 0x62a   : > { %v1210_v44 = vpop.permute.xlu1 %1209  ;;  %v1199_v45 = vpop.permute.xlu0 %1198 }
 0x62b   : > { %1215 = vst.msk [vmem:[#allocation3 + $0x28] sm:$0xff] %vm1159_vm3, %v1210_v44  ;;  %1205 = vst.msk [vmem:[#allocation5 + $0x10] sm:$0xff] %vm1159_vm3, %v1199_v45 }
 0x62e   : > { %v1219_v46 = vpop.permute.xlu1 %1218  ;;  %v1208_v47 = vpop.permute.xlu0 %1207 }
 0x62f   : > { %1224 = vst.msk [vmem:[#allocation4 + $0x28] sm:$0xff] %vm1159_vm3, %v1219_v46  ;;  %1214 = vst.msk [vmem:[#allocation3 + $0x20] sm:$0xff] %vm1159_vm3, %v1208_v47 }
 0x632   : > { %v1228_v48 = vpop.permute.xlu1 %1227  ;;  %v1217_v49 = vpop.permute.xlu0 %1216 }
 0x633   : > { %1233 = vst.msk [vmem:[#allocation5 + $0x28] sm:$0xff] %vm1159_vm3, %v1228_v48  ;;  %1223 = vst.msk [vmem:[#allocation4 + $0x20] sm:$0xff] %vm1159_vm3, %v1217_v49 }
 0x636   : > { %v1237_v50 = vpop.permute.xlu1 %1236  ;;  %v1226_v51 = vpop.permute.xlu0 %1225 }
 0x637   : > { %1242 = vst.msk [vmem:[#allocation3 + $0x38] sm:$0xff] %vm1159_vm3, %v1237_v50  ;;  %1232 = vst.msk [vmem:[#allocation5 + $0x20] sm:$0xff] %vm1159_vm3, %v1226_v51 }
 0x63a   : > { %v1246_v52 = vpop.permute.xlu1 %1245  ;;  %v1235_v53 = vpop.permute.xlu0 %1234 }
 0x63b   : > { %1251 = vst.msk [vmem:[#allocation4 + $0x38] sm:$0xff] %vm1159_vm3, %v1246_v52  ;;  %1241 = vst.msk [vmem:[#allocation3 + $0x30] sm:$0xff] %vm1159_vm3, %v1235_v53 }
 0x63e   : > { %v1173_v54 = vpop.permute.xlu1 %1172  ;;  %v1244_v55 = vpop.permute.xlu0 %1243 }
 0x63f   : > { %1178 = vst.msk [vmem:[#allocation5] sm:$0xff] %vm1159_vm3, %v1173_v54  ;;  %1250 = vst.msk [vmem:[#allocation4 + $0x30] sm:$0xff] %vm1159_vm3, %v1244_v55 }
 0x642   : > { %v1255_v56 = vpop.permute.xlu1 %1254  ;;  %v1253_v57 = vpop.permute.xlu0 %1252 }
 0x643   : > { %1260 = vst.msk [vmem:[#allocation5 + $0x38] sm:$0xff] %vm1159_vm3, %v1255_v56  ;;  %1259 = vst.msk [vmem:[#allocation5 + $0x30] sm:$0xff] %vm1159_vm3, %v1253_v57 }
 0x644 PF: > { %s6305_s28 = sld [smem:[#allocation30_spill]]  ;;  %v1271_v58 = vld [vmem:[%s5744_s1] sm:$0xff]  ;;  %vm1361_vm4 = vcmask 64512   ;;  %v1272_v59 = vld [vmem:[%s5744_s1 + $0x8] sm:$0xff]  ;;  %v1299_v60 = vlaneseq  ;;  %v5228_v61 = vmov 0.0   ;;  %vm5231_vm5 = vmmov 0  }
 0x645   : > { %4453 = vmatprep.subr.mxu0 %v5228_v61  ;;  %4458 = vmatprep.subr.mxu1 %v5228_v61  ;;  %v5229_v62 = vmov 1983009808   ;;  %v5230_v1 = vmov 1934713408   ;;  %v1273_v18 = vld [vmem:[%s5744_s1 + $0x10] sm:$0xff]  ;;  %v1274_v22 = vld [vmem:[%s5744_s1 + $0x18] sm:$0xff] }
 0x646   : > { %4454 = vmatpush3.xpose.msk.msra.mxu0 %vm1361_vm4, %v1271_v58  ;;  %4459 = vmatpush3.xpose.msk.msra.mxu1 %vm1361_vm4, %v1272_v59  ;;  %v1297_v63 = vunpack.c.l.s4 %v5229_v62  ;;  %v1300_v0 = vshrl.u32 %v1299_v60, 7  ;;  %v1328_v2 = vunpack.c.l.s4 %v5230_v1  ;;  %v1275_v23 = vld [vmem:[%s5744_s1 + $0x20] sm:$0xff]  ;;  %v1276_v27 = vld [vmem:[%s5744_s1 + $0x28] sm:$0xff]  ;;  %v1277_v28 = vld [vmem:[%s5744_s1 + $0x30] sm:$0xff] }
 0x647   : > { %4455 = vmatprep.mubr.msk.f32.mxu0 %vm5231_vm5, %v5228_v61  ;;  %4463 = vmatprep.subr.mxu0 %v5228_v61  ;;  %v1278_v33 = vld [vmem:[%s5744_s1 + $0x38] sm:$0xff]  ;;  %v1279_v43 = vld [vmem:[%s5750_s12] sm:$0xff]  ;;  %v1280_v45 = vld [vmem:[%s5750_s12 + $0x8] sm:$0xff] }
 0x648   : > { %v1298_v6 = vunpack.c.0.s8 %v1297_v63  ;;  %v1329_v8 = vunpack.c.0.s8 %v1328_v2  ;;  %4460 = vmatprep.mubr.msk.f32.mxu1 %vm5231_vm5, %v5228_v61  ;;  %4468 = vmatprep.subr.mxu1 %v5228_v61  ;;  %v1281_v47 = vld [vmem:[%s5750_s12 + $0x10] sm:$0xff]  ;;  %v1282_v50 = vld [vmem:[%s5750_s12 + $0x18] sm:$0xff]  ;;  %v1283_v52 = vld [vmem:[%s5750_s12 + $0x20] sm:$0xff] }
 0x649   : > { %v1284_v55 = vld [vmem:[%s5750_s12 + $0x28] sm:$0xff]  ;;  %v1285_v56 = vld [vmem:[%s5750_s12 + $0x30] sm:$0xff]  ;;  %v1286_v59 = vld [vmem:[%s5750_s12 + $0x38] sm:$0xff] }
 0x64a   : > { %s5833_s4 = sshll.u32 %s6305_s28, 4  ;;  %v5854_v9 = vsub.s32 %v1298_v6, %v1300_v0  ;;  %v5856_v10 = vsub.s32 %v1329_v8, %v1300_v0  ;;  %p4300_p10 = scmp.ne.s32.totalorder %s6305_s28, 3 }
 0x64b   : > { %s1262_s27 = scalar_lea.vmem [#allocation3], %s5833_s4  ;;  %s1265_s25 = scalar_lea.vmem [#allocation4], %s5833_s4  ;;  %vm3854_vm6 = vcmask (!%p4300_p10), 130112   ;;  %vm3868_vm7 = vcmask (!%p4300_p10), 195712   ;;  %vm3882_vm8 = vcmask (!%p4300_p10), 261312   ;;  %vm3898_vm9 = vcmask (!%p4300_p10), 261120  }
 0x64c   : > { %v5842_v3 = vld [vmem:[%s1262_s27] sm:$0xff]  ;;  %v5844_v4 = vld [vmem:[%s1262_s27 + $0x8] sm:$0xff]  ;;  %s1268_s1 = scalar_lea.vmem [#allocation5], %s5833_s4  ;;  %s3832_s12 = scalar_lea.vmem [#allocation6], %s5833_s4 }
 0x64d   : > { %v1295_v5 = vcombine.high %v5842_v3, %v5228_v61  ;;  %v1310_v7 = vcombine.high %v5844_v4, %v5228_v61  ;;  %v1302_v11 = vrot.slane %v5842_v3, %v5854_v9  ;;  %v1317_v12 = vrot.slane %v5844_v4, %v5854_v9  ;;  %v4272_v31 = vld.sshfl [vmem:[%s1265_s25] sm:$0xff pattern:$0x76325410]  ;;  %v4273_v32 = vld.sshfl [vmem:[%s1265_s25 + $0x8] sm:$0xff pattern:$0x76325410] }
 0x64e   : > { %v1266_v34 = vld [vmem:[%s1265_s25] sm:$0xff]  ;;  %v1267_v36 = vld [vmem:[%s1265_s25 + $0x8] sm:$0xff]  ;;  %v2204_v39 = vcombine.low %v4272_v31, %v4273_v32  ;;  %v2205_v40 = vcombine.high %v4272_v31, %v4273_v32  ;;  %s5233_s11 = smov (!%p4300_p10), 16   ;;  %s6306_s5 = sld [smem:[#allocation52_spill]] (!%p4300_p10) }
 0x64f   : > { %v1309_v13 = vrot.slane %v1295_v5, %v5854_v9  ;;  %v1324_v14 = vrot.slane %v1310_v7, %v5854_v9  ;;  %v1325_v15 = vcombine.low %v1302_v11, %v1317_v12  ;;  %v1326_v16 = vcombine.high %v1302_v11, %v1317_v12  ;;  %s5234_s28 = smov (!%p4300_p10), 24   ;;  %s6307_s25 = sld [smem:[#allocation53_spill]] (!%p4300_p10) }
 0x650   : > { %v2173_v35 = vcombine.high %v1266_v34, %v5228_v61  ;;  %v2189_v38 = vcombine.high %v1267_v36, %v5228_v61  ;;  %v2212_v44 = vrot.slane %v2204_v39, %v5856_v10  ;;  %v2219_v49 = vrot.slane %v2205_v40, %v5856_v10 }
 0x651   : > { %v1333_v17 = vrot.slane %v1325_v15, %v5856_v10  ;;  %v1340_v19 = vrot.slane %v1326_v16, %v5856_v10  ;;  %v1341_v20 = vcombine.low %v1309_v13, %v1324_v14  ;;  %v1342_v26 = vcombine.high %v1309_v13, %v1324_v14 }
 0x652   : > { %v2187_v41 = vrot.slane %v2173_v35, %v5854_v9  ;;  %v2203_v42 = vrot.slane %v2189_v38, %v5854_v9  ;;  %v2236_v48 = vcombine.high %v2212_v44, %v5228_v61  ;;  %v2237_v53 = vcombine.high %v2219_v49, %v5228_v61 }
 0x653   : > { %4456 = vmatmul.mubr.msk.f32.vlgmr.msra.gmra.mrb[0].mxu0 %vm1361_vm4, %v1333_v17  ;;  %v1357_v21 = vcombine.high %v1333_v17, %v5228_v61  ;;  %v1358_v24 = vcombine.high %v1340_v19, %v5228_v61  ;;  %v1349_v25 = vrot.slane %v1341_v20, %v5856_v10  ;;  %v1356_v30 = vrot.slane %v1342_v26, %v5856_v10 }
 0x654   : > { %4464 = vmatpush3.xpose.msk.msra.mxu0 %vm1361_vm4, %v1273_v18  ;;  %4465 = vmatprep.mubr.msk.f32.mxu0 %vm5231_vm5, %v5228_v61  ;;  %v2220_v46 = vcombine.low %v2187_v41, %v2203_v42  ;;  %v2221_v51 = vcombine.high %v2187_v41, %v2203_v42 }
 0x655   : > { %4461 = vmatmul.mubr.msk.f32.vlgmr.msra.gmra.mrb[0].mxu1 %vm1361_vm4, %v1357_v21  ;;  %4473 = vmatprep.subr.mxu0 %v5228_v61  ;;  %v1359_v29 = vcombine.high %v1349_v25, %v5228_v61  ;;  %v1360_v37 = vcombine.high %v1356_v30, %v5228_v61 }
 0x656   : > { %4469 = vmatpush3.xpose.msk.msra.mxu1 %vm1361_vm4, %v1274_v22  ;;  %4470 = vmatprep.mubr.msk.f32.mxu1 %vm5231_vm5, %v5228_v61  ;;  %v2228_v54 = vrot.slane %v2220_v46, %v5856_v10  ;;  %v2235_v58 = vrot.slane %v2221_v51, %v5856_v10 }
 0x657   : > { %4466 = vmatmul.mubr.msk.f32.vlgmr.msra.gmra.mrb[2].mxu0 %vm1361_vm4, %v1340_v19  ;;  %4478 = vmatprep.subr.mxu1 %v5228_v61 }
 0x658   : > { %4474 = vmatpush3.xpose.msk.msra.mxu0 %vm1361_vm4, %v1275_v23  ;;  %4475 = vmatprep.mubr.msk.f32.mxu0 %vm5231_vm5, %v5228_v61  ;;  %v2238_v57 = vcombine.high %v2228_v54, %v5228_v61  ;;  %v2239_v60 = vcombine.high %v2235_v58, %v5228_v61 }
 0x659   : > { %4471 = vmatmul.mubr.msk.f32.vlgmr.msra.gmra.mrb[2].mxu1 %vm1361_vm4, %v1358_v24  ;;  %4483 = vmatprep.subr.mxu0 %v5228_v61 }
 0x65a   : > { %4479 = vmatpush3.xpose.msk.msra.mxu1 %vm1361_vm4, %v1276_v27  ;;  %4480 = vmatprep.mubr.msk.f32.mxu1 %vm5231_vm5, %v5228_v61 }
 0x65b   : > { %4476 = vmatmul.mubr.msk.f32.vlgmr.msra.gmra.mrb[4].mxu0 %vm1361_vm4, %v1349_v25  ;;  %4488 = vmatprep.subr.mxu1 %v5228_v61 }
 0x65c   : > { %4484 = vmatpush3.xpose.msk.msra.mxu0 %vm1361_vm4, %v1277_v28  ;;  %4485 = vmatprep.mubr.msk.f32.mxu0 %vm5231_vm5, %v5228_v61 }
 0x65d   : > { %4481 = vmatmul.mubr.msk.f32.vlgmr.msra.gmra.mrb[4].mxu1 %vm1361_vm4, %v1359_v29  ;;  %4493 = vmatprep.subr.mxu0 %v5228_v61 }
 0x65e   : > { %4489 = vmatpush3.xpose.msk.msra.mxu1 %vm1361_vm4, %v1278_v33  ;;  %4490 = vmatprep.mubr.msk.f32.mxu1 %vm5231_vm5, %v5228_v61 }
 0x65f   : > { %4486 = vmatmul.mubr.msk.f32.vlgmr.msra.gmra.mrb[6].mxu0 %vm1361_vm4, %v1356_v30  ;;  %4498 = vmatprep.subr.mxu1 %v5228_v61 }
 0x660   : > { %4494 = vmatpush3.xpose.msk.msra.mxu0 %vm1361_vm4, %v1266_v34  ;;  %4495 = vmatprep.mubr.msk.f32.mxu0 %vm5231_vm5, %v5228_v61 }
 0x661   : > { %4491 = vmatmul.mubr.msk.f32.vlgmr.msra.gmra.mrb[6].mxu1 %vm1361_vm4, %v1360_v37  ;;  %4503 = vmatprep.subr.mxu0 %v5228_v61 }
 0x662   : > { %4499 = vmatpush3.xpose.msk.msra.mxu1 %vm1361_vm4, %v1267_v36  ;;  %4500 = vmatprep.mubr.msk.f32.mxu1 %vm5231_vm5, %v5228_v61 }
 0x663   : > { %4496 = vmatmul.mubr.msk.f32.vlgmr.msra.gmra.mrb[8].mxu0 %vm1361_vm4, %v5842_v3  ;;  %4508 = vmatprep.subr.mxu1 %v5228_v61 }
 0x664   : > { %4504 = vmatpush3.xpose.msk.msra.mxu0 %vm1361_vm4, %v1279_v43  ;;  %4505 = vmatprep.mubr.msk.f32.mxu0 %vm5231_vm5, %v5228_v61 }
 0x665   : > { %4501 = vmatmul.mubr.msk.f32.vlgmr.msra.gmra.mrb[8].mxu1 %vm1361_vm4, %v5844_v4  ;;  %4513 = vmatprep.subr.mxu0 %v5228_v61 }
 0x666   : > { %4509 = vmatpush3.xpose.msk.msra.mxu1 %vm1361_vm4, %v1280_v45  ;;  %4510 = vmatprep.mubr.msk.f32.mxu1 %vm5231_vm5, %v5228_v61 }
 0x667   : > { %4506 = vmatmul.mubr.msk.f32.vlgmr.msra.gmra.mrb[10].mxu0 %vm1361_vm4, %v2212_v44  ;;  %4518 = vmatprep.subr.mxu1 %v5228_v61 }
 0x668   : > { %4514 = vmatpush3.xpose.msk.msra.mxu0 %vm1361_vm4, %v1281_v47  ;;  %4515 = vmatprep.mubr.msk.f32.mxu0 %vm5231_vm5, %v5228_v61 }
 0x669   : > { %4511 = vmatmul.mubr.msk.f32.vlgmr.msra.gmra.mrb[10].mxu1 %vm1361_vm4, %v2236_v48  ;;  %4523 = vmatprep.subr.mxu0 %v5228_v61 }
 0x66a   : > { %4519 = vmatpush3.xpose.msk.msra.mxu1 %vm1361_vm4, %v1282_v50  ;;  %4520 = vmatprep.mubr.msk.f32.mxu1 %vm5231_vm5, %v5228_v61 }
 0x66b   : > { %4516 = vmatmul.mubr.msk.f32.vlgmr.msra.gmra.mrb[12].mxu0 %vm1361_vm4, %v2219_v49  ;;  %4528 = vmatprep.subr.mxu1 %v5228_v61 }
 0x66c   : > { %4524 = vmatpush3.xpose.msk.msra.mxu0 %vm1361_vm4, %v1283_v52  ;;  %4525 = vmatprep.mubr.msk.f32.mxu0 %vm5231_vm5, %v5228_v61 }
 0x66d   : > { %4521 = vmatmul.mubr.msk.f32.vlgmr.msra.gmra.mrb[12].mxu1 %vm1361_vm4, %v2237_v53  ;;  %4533 = vmatprep.subr.mxu0 %v5228_v61 }
 0x66e   : > { %4529 = vmatpush3.xpose.msk.msra.mxu1 %vm1361_vm4, %v1284_v55  ;;  %4530 = vmatprep.mubr.msk.f32.mxu1 %vm5231_vm5, %v5228_v61 }
 0x66f   : > { %4526 = vmatmul.mubr.msk.f32.vlgmr.msra.gmra.mrb[14].mxu0 %vm1361_vm4, %v2228_v54  ;;  %4538 = vmatprep.subr.mxu1 %v5228_v61 }
 0x670   : > { %4534 = vmatpush3.xpose.msk.msra.mxu0 %vm1361_vm4, %v1285_v56  ;;  %4535 = vmatprep.mubr.msk.f32.mxu0 %vm5231_vm5, %v5228_v61 }
 0x671   : > { %4531 = vmatmul.mubr.msk.f32.vlgmr.msra.gmra.mrb[14].mxu1 %vm1361_vm4, %v2238_v57  ;;  %4543 = vmatprep.subr.mxu0 %v5228_v61 }
 0x672   : > { %4539 = vmatpush3.xpose.msk.msra.mxu1 %vm1361_vm4, %v1286_v59  ;;  %4540 = vmatprep.mubr.msk.f32.mxu1 %vm5231_vm5, %v5228_v61 }
 0x673   : > { %4536 = vmatmul.mubr.msk.f32.vlgmr.msra.gmra.mrb[16].mxu0 %vm1361_vm4, %v2235_v58  ;;  %4548 = vmatprep.subr.mxu1 %v5228_v61 }
 0x674   : > { %4545 = vmatprep.mubr.msk.f32.mxu0 %vm5231_vm5, %v5228_v61 }
 0x675   : > { %4541 = vmatmul.mubr.msk.f32.vlgmr.msra.gmra.mrb[16].mxu1 %vm1361_vm4, %v2239_v60 }
 0x676   : > { %4550 = vmatprep.mubr.msk.f32.mxu1 %vm5231_vm5, %v5228_v61 }
 0x726   : > { %v1434_v62 = vpop.f32.mrb[0].mxu0 }
 0x727   : > { %v4457_v63 = vpop.f32.mrb[1].mxu0 }
 0x728   : > { %v1510_v0 = vpop.f32.mrb[0].mxu1 }
 0x729   : > { %v4462_v1 = vpop.f32.mrb[1].mxu1 }
 0x72a   : > { %v1586_v2 = vpop.f32.mrb[2].mxu0 }
 0x72b   : > { %v1970_v3 = vcombine.low %v1434_v62, %v1586_v2  ;;  %v4467_v4 = vpop.f32.mrb[3].mxu0 }
 0x72c   : > { %v1662_v5 = vpop.f32.mrb[2].mxu1 }
 0x72d   : > { %v1978_v6 = vcombine.low %v1510_v0, %v1662_v5  ;;  %v4472_v7 = vpop.f32.mrb[3].mxu1  ;;  %v1977_v11 = vrot.slane %v1970_v3, %v5854_v9 }
 0x72e   : > { %v1738_v8 = vpop.f32.mrb[4].mxu0 }
 0x72f   : > { %v1985_v12 = vrot.slane %v1978_v6, %v5854_v9  ;;  %v4477_v13 = vpop.f32.mrb[5].mxu0 }
 0x730   : > { %v1814_v14 = vpop.f32.mrb[4].mxu1 }
 0x731   : > { %v2002_v15 = vcombine.low %v1977_v11, %v1985_v12  ;;  %v4482_v16 = vpop.f32.mrb[5].mxu1 }
 0x732   : > { %v1890_v17 = vpop.f32.mrb[6].mxu0 }
 0x733   : > { %v1986_v18 = vcombine.low %v1738_v8, %v1890_v17  ;;  %v4487_v19 = vpop.f32.mrb[7].mxu0  ;;  %v2009_v31 = vrot.slane %v2002_v15, %v5856_v10 }
 0x734   : > { %v1966_v20 = vpop.f32.mrb[6].mxu1 }
 0x735   : > { %v1994_v21 = vcombine.low %v1814_v14, %v1966_v20  ;;  %v4492_v22 = vpop.f32.mrb[7].mxu1  ;;  %v1993_v24 = vrot.slane %v1986_v18, %v5854_v9 }
 0x736   : > { %v2092_v23 = vpop.f32.mrb[8].mxu0  ;;  %v1288_v22 = vld [vmem:[%s5752_s10 + $0x8] sm:$0xff] }
 0x737   : > { %v2001_v25 = vrot.slane %v1994_v21, %v5854_v9  ;;  %v4497_v26 = vpop.f32.mrb[9].mxu0  ;;  %v1287_v21 = vld [vmem:[%s5752_s10] sm:$0xff]  ;;  %4549 = vmatpush3.msra.mxu1 %v1288_v22 }
 0x738   : > { %v2168_v27 = vpop.f32.mrb[8].mxu1  ;;  %4544 = vmatpush3.msra.mxu0 %v1287_v21  ;;  %4558 = vmatprep.subr.mxu1 %v5228_v61 }
 0x739   : > { %v2010_v28 = vcombine.low %v1993_v24, %v2001_v25  ;;  %v4502_v29 = vpop.f32.mrb[9].mxu1  ;;  %4553 = vmatprep.subr.mxu0 %v5228_v61 }
 0x73a   : > { %v2312_v30 = vpop.f32.mrb[10].mxu0 }
 0x73b   : > { %v2017_v32 = vrot.slane %v2010_v28, %v5856_v10  ;;  %v4507_v33 = vpop.f32.mrb[11].mxu0 }
 0x73c   : > { %v2388_v34 = vpop.f32.mrb[10].mxu1 }
 0x73d   : > { %v2018_v35 = vcombine.low %v2009_v31, %v2017_v32  ;;  %v2019_v36 = vcombine.high %v2009_v31, %v2017_v32  ;;  %v4512_v37 = vpop.f32.mrb[11].mxu1 }
 0x73e   : > { %v2464_v38 = vpop.f32.mrb[12].mxu0  ;;  %v1289_v37 = vld [vmem:[%s5752_s10 + $0x10] sm:$0xff] }
 0x73f   : > { %v2093_v39 = vadd.f32 %v2092_v23, %v2018_v35  ;;  %v2169_v40 = vadd.f32 %v2168_v27, %v2019_v36  ;;  %v2848_v41 = vcombine.low %v2312_v30, %v2464_v38  ;;  %v4517_v42 = vpop.f32.mrb[13].mxu0 }
 0x740   : > { %v2540_v43 = vpop.f32.mrb[12].mxu1 }
 0x741   : > { %v2856_v44 = vcombine.low %v2388_v34, %v2540_v43  ;;  %v4522_v45 = vpop.f32.mrb[13].mxu1  ;;  %v2855_v47 = vrot.slane %v2848_v41, %v5854_v9  ;;  %v1291_v43 = vld [vmem:[%s5752_s10 + $0x20] sm:$0xff] }
 0x742   : > { %v2616_v46 = vpop.f32.mrb[14].mxu0  ;;  %v1292_v45 = vld [vmem:[%s5752_s10 + $0x28] sm:$0xff] }
 0x743   : > { %v2863_v48 = vrot.slane %v2856_v44, %v5854_v9  ;;  %v4527_v49 = vpop.f32.mrb[15].mxu0 }
 0x744   : > { %v2692_v50 = vpop.f32.mrb[14].mxu1 }
 0x745   : > { %v4532_v51 = vpop.f32.mrb[15].mxu1  ;;  %v2880_v52 = vcombine.low %v2855_v47, %v2863_v48  ;;  %v1293_v48 = vld [vmem:[%s5752_s10 + $0x30] sm:$0xff] }
 0x746   : > { %v2768_v53 = vpop.f32.mrb[16].mxu0 }
 0x747   : > { %v2864_v54 = vcombine.low %v2616_v46, %v2768_v53  ;;  %v4537_v55 = vpop.f32.mrb[17].mxu0  ;;  %v2887_v63 = vrot.slane %v2880_v52, %v5856_v10  ;;  %v1269_v52 = vld [vmem:[%s1268_s1] sm:$0xff] }
 0x748   : > { %v2844_v56 = vpop.f32.mrb[16].mxu1 }
 0x749   : > { %v2872_v57 = vcombine.low %v2692_v50, %v2844_v56  ;;  %v4542_v58 = vpop.f32.mrb[17].mxu1  ;;  %v2871_v59 = vrot.slane %v2864_v54, %v5854_v9  ;;  %v1294_v50 = vld [vmem:[%s5752_s10 + $0x38] sm:$0xff]  ;;  %v1270_v54 = vld [vmem:[%s1268_s1 + $0x8] sm:$0xff] }
 0x74b   : > { %v2879_v60 = vrot.slane %v2872_v57, %v5854_v9 }
 0x74d   : > { %v2888_v62 = vcombine.low %v2871_v59, %v2879_v60 }
 0x74f   : > { %v2895_v0 = vrot.slane %v2888_v62, %v5856_v10 }
 0x751   : > { %v2896_v1 = vcombine.low %v2887_v63, %v2895_v0  ;;  %v2897_v2 = vcombine.high %v2887_v63, %v2895_v0 }
 0x753   : > { %2898 = vxpose.xlu0.b32.start.end [1/1] (short) (narrow) %v2896_v1, 8 }
 0x757   : > { %2930 = vxpose.xlu0.b32.start.end [1/1] (short) (narrow) %v2897_v2, 8 }
 0x7d3   : > { %v2914_v3 = vpop.trf.xlu0 }
 0x7d4   : > { %v2962_v4 = vadd.f32 %v2914_v3, %v2093_v39 }
 0x7d6   : > { %v2964_v5 = vsel %vm1361_vm4, %v2962_v4, -inf }
 0x7d7   : > { %2965 = vmax.xlane.f32.xlu1 %v2964_v5  ;;  %v2946_v6 = vpop.trf.xlu0 }
 0x7d8   : > { %v2963_v7 = vadd.f32 %v2946_v6, %v2169_v40  ;;  %v1290_v40 = vld [vmem:[%s5752_s10 + $0x18] sm:$0xff]  ;;  %s5232_s10 = smov (!%p4300_p10), 8  }
 0x7da   : > { %v2967_v8 = vsel %vm1361_vm4, %v2963_v7, -inf }
 0x7db   : > { %2968 = vmax.xlane.f32.xlu1 %v2967_v8 }
 0x864   : > { %v2966_v11 = vpop.xlane.xlu1 %2965 }
 0x865   : > { %v2970_v12 = vsub.f32 %v2962_v4, %v2966_v11 }
 0x867   : > { %v2972_v13 = vmul.f32 1.442695, %v2970_v12 }
 0x868   : > { %v2969_v14 = vpop.xlane.xlu1 %2968 }
 0x869   : > { %4836 = vpow2.f32 %v2972_v13  ;;  %v2971_v15 = vsub.f32 %v2963_v7, %v2969_v14 }
 0x86b   : > { %v2974_v16 = vmul.f32 1.442695, %v2971_v15 }
 0x86d   : > { %4838 = vpow2.f32 %v2974_v16 }
 0x873   : > { %v4837_v17 = vpop.eup %4836 }
 0x874   : > { %v2976_v18 = vsel %vm1361_vm4, %v4837_v17, 0.0 }
 0x875   : > { %2977 = vadd.xlane.f32.xlu0 %v2976_v18 }
 0x877   : > { %v4839_v19 = vpop.eup %4838 }
 0x878   : > { %v2979_v20 = vsel %vm1361_vm4, %v4839_v19, 0.0 }
 0x879   : > { %2980 = vadd.xlane.f32.xlu1 %v2979_v20 }
 0x902   : > { %v2978_v23 = vpop.xlane.xlu0 %2977 }
 0x903   : > { %4840 = vrcp.f32 %v2978_v23 }
 0x906   : > { %v2981_v24 = vpop.xlane.xlu1 %2980 }
 0x907   : > { %4842 = vrcp.f32 %v2981_v24 }
 0x90d   : > { %v4841_v25 = vpop.eup %4840 }
 0x90e   : > { %v2984_v26 = vmul.f32 %v4841_v25, %v4837_v17 }
 0x910   : > { %v2986_v29 = vcombine.high %v2984_v26, %v5228_v61  ;;  %v2993_v30 = vrot.slane %v2984_v26, %v5854_v9 }
 0x911   : > { %v4843_v27 = vpop.eup %4842 }
 0x912   : > { %v2985_v28 = vmul.f32 %v4843_v27, %v4839_v19  ;;  %v3000_v38 = vrot.slane %v2986_v29, %v5854_v9 }
 0x914   : > { %v3001_v31 = vcombine.high %v2985_v28, %v5228_v61  ;;  %v3008_v32 = vrot.slane %v2985_v28, %v5854_v9 }
 0x916   : > { %v3016_v33 = vcombine.low %v2993_v30, %v3008_v32  ;;  %v3017_v34 = vcombine.high %v2993_v30, %v3008_v32  ;;  %v3015_v35 = vrot.slane %v3001_v31, %v5854_v9 }
 0x918   : > { %v3024_v36 = vrot.slane %v3016_v33, %v5856_v10  ;;  %v3031_v41 = vrot.slane %v3017_v34, %v5856_v10  ;;  %v3032_v42 = vcombine.low %v3000_v38, %v3015_v35  ;;  %v3033_v47 = vcombine.high %v3000_v38, %v3015_v35  ;;  %v3887_v33 = vld [vmem:[%s6306_s5] sm:$0xff] (!%p4300_p10)  ;;  %v3888_v34 = vld [vmem:[%s6306_s5 + $0x8] sm:$0xff] (!%p4300_p10)  ;;  %v3889_v35 = vld [vmem:[%s6306_s5 + $0x10] sm:$0xff] (!%p4300_p10) }
 0x91a   : > { %4546 = vmatmul.mubr.msk.f32.vlgmr.msra.gmra.mrb[18].mxu0 %vm1361_vm4, %v3024_v36  ;;  %v3048_v39 = vcombine.high %v3024_v36, %v5228_v61  ;;  %v3049_v44 = vcombine.high %v3031_v41, %v5228_v61  ;;  %v3040_v46 = vrot.slane %v3032_v42, %v5856_v10  ;;  %v3047_v51 = vrot.slane %v3033_v47, %v5856_v10  ;;  %v3890_v36 = vld [vmem:[%s6306_s5 + $0x18] sm:$0xff] (!%p4300_p10) }
 0x91b   : > { %4554 = vmatpush3.msra.mxu0 %v1289_v37  ;;  %4555 = vmatprep.mubr.msk.f32.mxu0 %vm5231_vm5, %v5228_v61  ;;  %v4636_v37 = vpack.c.bf16 (!%p4300_p10), %v3888_v34, %v3887_v33  ;;  %v4640_v38 = vpack.c.bf16 (!%p4300_p10), %v3890_v36, %v3889_v35 }
 0x91c   : > { %4551 = vmatmul.mubr.msk.f32.vlgmr.msra.gmra.mrb[18].mxu1 %vm1361_vm4, %v3048_v39  ;;  %4563 = vmatprep.subr.mxu0 %v5228_v61  ;;  %v3050_v49 = vcombine.high %v3040_v46, %v5228_v61  ;;  %v3051_v53 = vcombine.high %v3047_v51, %v5228_v61 }
 0x91d   : > { %4559 = vmatpush3.msra.mxu1 %v1290_v40  ;;  %4560 = vmatprep.mubr.msk.f32.mxu1 %vm5231_vm5, %v5228_v61 }
 0x91e   : > { %4556 = vmatmul.mubr.msk.f32.vlgmr.msra.gmra.mrb[20].mxu0 %vm1361_vm4, %v3031_v41  ;;  %4568 = vmatprep.subr.mxu1 %v5228_v61 }
 0x91f   : > { %4564 = vmatpush3.msra.mxu0 %v1291_v43  ;;  %4565 = vmatprep.mubr.msk.f32.mxu0 %vm5231_vm5, %v5228_v61 }
 0x920   : > { %4561 = vmatmul.mubr.msk.f32.vlgmr.msra.gmra.mrb[20].mxu1 %vm1361_vm4, %v3049_v44  ;;  %4573 = vmatprep.subr.mxu0 %v5228_v61 }
 0x921   : > { %4569 = vmatpush3.msra.mxu1 %v1292_v45  ;;  %4570 = vmatprep.mubr.msk.f32.mxu1 %vm5231_vm5, %v5228_v61 }
 0x922   : > { %4566 = vmatmul.mubr.msk.f32.vlgmr.msra.gmra.mrb[22].mxu0 %vm1361_vm4, %v3040_v46  ;;  %4578 = vmatprep.subr.mxu1 %v5228_v61 }
 0x923   : > { %4574 = vmatpush3.msra.mxu0 %v1293_v48  ;;  %4575 = vmatprep.mubr.msk.f32.mxu0 %vm5231_vm5, %v5228_v61 }
 0x924   : > { %4571 = vmatmul.mubr.msk.f32.vlgmr.msra.gmra.mrb[22].mxu1 %vm1361_vm4, %v3050_v49  ;;  %4583 = vmatprep.subr.mxu0 %v5228_v61  ;;  %v4301_v49 = vld [vmem:[%s6307_s25] ss:$0 sm:$0xff] (!%p4300_p10) }
 0x925   : > { %4579 = vmatpush3.msra.mxu1 %v1294_v50  ;;  %4580 = vmatprep.mubr.msk.f32.mxu1 %vm5231_vm5, %v5228_v61 }
 0x926   : > { %4576 = vmatmul.mubr.msk.f32.vlgmr.msra.gmra.mrb[24].mxu0 %vm1361_vm4, %v3047_v51  ;;  %4588 = vmatprep.subr.mxu1 %v5228_v61  ;;  %v3981_v51 = vld [vmem:[#allocation2 + $0x8] sm:$0xff] (!%p4300_p10) }
 0x927   : > { %4584 = vmatpush3.msra.mxu0 %v1269_v52  ;;  %4585 = vmatprep.mubr.msk.f32.mxu0 %vm5231_vm5, %v5228_v61 }
 0x928   : > { %4581 = vmatmul.mubr.msk.f32.vlgmr.msra.gmra.mrb[24].mxu1 %vm1361_vm4, %v3051_v53  ;;  %4637 = vmatprep.subr.bf16.mxu0 (!%p4300_p10), %v4636_v37 }
 0x929   : > { %4589 = vmatpush3.msra.mxu1 %v1270_v54  ;;  %4590 = vmatprep.mubr.msk.f32.mxu1 %vm5231_vm5, %v5228_v61  ;;  %v3980_v54 = vld [vmem:[#allocation2] sm:$0xff] (!%p4300_p10) }
 0x92a   : > { %4586 = vmatmul.mubr.msk.f32.vlgmr.msra.gmra.mrb[26].mxu0 %vm1361_vm4, %v2984_v26 }
 0x92b   : > { %4639 = vmatpush3.bf16.msra.mxu0 (!%p4300_p10), %v4636_v37 }
 0x92c   : > { %4591 = vmatmul.mubr.msk.f32.vlgmr.msra.gmra.mrb[26].mxu1 %vm1361_vm4, %v2985_v28  ;;  %4641 = vmatprep.subr.bf16.mxu0 (!%p4300_p10), %v4640_v38 }
 0x92f   : > { %4643 = vmatpush3.bf16.msra.mxu0 (!%p4300_p10), %v4640_v38 }
 0x9ed   : > { %v3121_v55 = vpop.f32.mrb[18].mxu0 }
 0x9ee   : > { %v4547_v56 = vpop.f32.mrb[19].mxu0 }
 0x9ef   : > { %v3194_v57 = vpop.f32.mrb[18].mxu1 }
 0x9f0   : > { %v4552_v58 = vpop.f32.mrb[19].mxu1 }
 0x9f1   : > { %v3267_v59 = vpop.f32.mrb[20].mxu0 }
 0x9f2   : > { %v3636_v60 = vcombine.low %v3121_v55, %v3267_v59  ;;  %v4557_v62 = vpop.f32.mrb[21].mxu0 }
 0x9f3   : > { %v3340_v63 = vpop.f32.mrb[20].mxu1 }
 0x9f4   : > { %v3644_v0 = vcombine.low %v3194_v57, %v3340_v63  ;;  %v4562_v1 = vpop.f32.mrb[21].mxu1  ;;  %v3643_v3 = vrot.slane %v3636_v60, %v5854_v9 }
 0x9f5   : > { %v3413_v2 = vpop.f32.mrb[22].mxu0 }
 0x9f6   : > { %v3651_v4 = vrot.slane %v3644_v0, %v5854_v9  ;;  %v4567_v61 = vpop.f32.mrb[23].mxu0 }
 0x9f7   : > { %v3486_v5 = vpop.f32.mrb[22].mxu1 }
 0x9f8   : > { %v3668_v6 = vcombine.low %v3643_v3, %v3651_v4  ;;  %v4572_v7 = vpop.f32.mrb[23].mxu1 }
 0x9f9   : > { %v3559_v8 = vpop.f32.mrb[24].mxu0 }
 0x9fa   : > { %v3652_v11 = vcombine.low %v3413_v2, %v3559_v8  ;;  %v4577_v12 = vpop.f32.mrb[25].mxu0  ;;  %v3675_v23 = vrot.slane %v3668_v6, %v5856_v10 }
 0x9fb   : > { %v3632_v13 = vpop.f32.mrb[24].mxu1 }
 0x9fc   : > { %v3660_v14 = vcombine.low %v3486_v5, %v3632_v13  ;;  %v4582_v15 = vpop.f32.mrb[25].mxu1  ;;  %v3659_v17 = vrot.slane %v3652_v11, %v5854_v9 }
 0x9fd   : > { %v3755_v16 = vpop.f32.mrb[26].mxu0 }
 0x9fe   : > { %v3667_v18 = vrot.slane %v3660_v14, %v5854_v9  ;;  %v4587_v19 = vpop.f32.mrb[27].mxu0 }
 0x9ff   : > { %v3828_v20 = vpop.f32.mrb[26].mxu1 }
 0xa00   : > { %v3676_v21 = vcombine.low %v3659_v17, %v3667_v18  ;;  %v4592_v22 = vpop.f32.mrb[27].mxu1 }
 0xa02   : > { %v3683_v24 = vrot.slane %v3676_v21, %v5856_v10  ;;  %3838 = sbr.rel (%p4300_p10) target bundleno = 2926 (0xb6e), region = 104 }
 0xa04   : > { %v3684_v25 = vcombine.low %v3675_v23, %v3683_v24  ;;  %v3685_v26 = vcombine.high %v3675_v23, %v3683_v24 }
 0xa06   : > { %v3756_v27 = vadd.f32 %v3755_v16, %v3684_v25  ;;  %v3829_v28 = vadd.f32 %v3828_v20, %v3685_v26 }
 0xa08   : > { %3833 = vst.msk [vmem:[%s3832_s12] sm:$0xff] %vm1361_vm4, %v3756_v27  ;;  %3834 = vst.msk [vmem:[%s3832_s12 + $0x8] sm:$0xff] %vm1361_vm4, %v3829_v28 }
 0xa0f   : > { %v3844_v9 = vld [vmem:[#allocation6 + $0x10] sm:$0xff]  ;;  %v3858_v29 = vld [vmem:[#allocation6 + $0x20] sm:$0xff]  ;;  %v3845_v30 = vld [vmem:[#allocation6 + $0x18] sm:$0xff] }
 0xa10   : > { %3848 = vrot.lane.b32.xlu0 %v3844_v9, %s5232_s10  ;;  %3862 = vrot.lane.b32.xlu1 %v3858_v29, %s5233_s11  ;;  %v3859_v10 = vld [vmem:[#allocation6 + $0x28] sm:$0xff]  ;;  %v3839_v31 = vld [vmem:[#allocation6] sm:$0xff]  ;;  %v3872_v39 = vld [vmem:[#allocation6 + $0x30] sm:$0xff] }
 0xa11   : > { %v3840_v32 = vld [vmem:[#allocation6 + $0x8] sm:$0xff]  ;;  %3841 = vst.msk [vmem:[#allocation7] sm:$0xff] %vm1361_vm4, %v3839_v31  ;;  %v3873_v40 = vld [vmem:[#allocation6 + $0x38] sm:$0xff] }
 0xa12   : > { %3842 = vst.msk [vmem:[#allocation7 + $0x8] sm:$0xff] %vm1361_vm4, %v3840_v32 }
 0xa14   : > { %3850 = vrot.lane.b32.xlu0 %v3845_v30, %s5232_s10  ;;  %3864 = vrot.lane.b32.xlu1 %v3859_v10, %s5233_s11 }
 0xa18   : > { %3876 = vrot.lane.b32.xlu0 %v3872_v39, %s5234_s28  ;;  %3878 = vrot.lane.b32.xlu1 %v3873_v40, %s5234_s28 }
 0xa82   : > { %v3849_v41 = vpop.permute.xlu0 %3848  ;;  %v3863_v42 = vpop.permute.xlu1 %3862 }
 0xa83   : > { %3855 = vst.msk [vmem:[#allocation7] sm:$0xff] %vm3854_vm6, %v3849_v41 }
 0xa84   : > { %3869 = vst.msk [vmem:[#allocation7] sm:$0xff] %vm3868_vm7, %v3863_v42 }
 0xa86   : > { %v3851_v43 = vpop.permute.xlu0 %3850  ;;  %v3865_v44 = vpop.permute.xlu1 %3864 }
 0xa87   : > { %3856 = vst.msk [vmem:[#allocation7 + $0x8] sm:$0xff] %vm3854_vm6, %v3851_v43 }
 0xa88   : > { %3870 = vst.msk [vmem:[#allocation7 + $0x8] sm:$0xff] %vm3868_vm7, %v3865_v44 }
 0xa8a   : > { %v3877_v45 = vpop.permute.xlu0 %3876  ;;  %v3879_v46 = vpop.permute.xlu1 %3878 }
 0xa8b   : > { %3883 = vst.msk [vmem:[#allocation7] sm:$0xff] %vm3882_vm8, %v3877_v45  ;;  %3884 = vst.msk [vmem:[#allocation7 + $0x8] sm:$0xff] %vm3882_vm8, %v3879_v46 }
 0xa92   : > { %v3885_v47 = vld [vmem:[#allocation7] sm:$0xff]  ;;  %v3886_v48 = vld [vmem:[#allocation7 + $0x8] sm:$0xff] }
 0xa93   : > { %4601 = vmatprep.mubr.msk.f32.mxu0 %vm3898_vm9, %v3885_v47 }
 0xa94   : > { %4602 = vmatmul.mubr.msk.f32.vlgmr.msra.gmra.mrb[0].mxu0 %vm3898_vm9, %v3886_v48 }
 0xb67   : > { %v4603_v50 = vpop.f32.mrb[0].mxu0 }
 0xb68   : > { %v3977_v52 = vadd.f32 %v4603_v50, %v4301_v49  ;;  %v3971_v53 = vpop.f32.mrb[1].mxu0 }
 0xb69   : > { %v3972_v55 = vadd.f32 %v4301_v49, %v3971_v53 }
 0xb6a   : > { %v3983_v56 = vadd.f32 %v3981_v51, %v3977_v52 }
 0xb6b   : > { %v3982_v57 = vadd.f32 %v3980_v54, %v3972_v55 }
 0xb6c   : > { %3985 = vst.msk [vmem:[%s5766_s21 + $0x8] sm:$0xff] %vm3898_vm9, %v3983_v56 }
 0xb6d   : > { %3984 = vst.msk [vmem:[%s5766_s21] sm:$0xff] %vm3898_vm9, %v3982_v57 }
 0xb6e PF: > { %s6308_s1 = sld [smem:[#allocation31_spill]]  ;;  %s6309_s12 = sld [smem:[#allocation32_spill]] }
 0xb6f   : > { %s6310_s10 = sld [smem:[#allocation41_spill]]  ;;  %s4002_s16 = sshll.u32 %s5766_s21, 4  ;;  %s6092_s16 = int_to_ptr.vmem [resolvable:$true] %s4002_s16 }
 0xb70   : > { %s6311_s9 = sld [smem:[#allocation54_spill]]  ;;  %s3987_s28 = scalar_lea.sflag [#allocation10], %s5732_s18 }
 0xb71   : > { %s5048_s4 = scalar_lea.vmem %s6092_s16, 256  ;;  %s5235_s27 = smov [#allocation20]  }
 0xb72   : > { %p5049_p11 = scmp.ne.s32.totalorder %s6092_s16, %s5048_s4  ;;  %s5052_s21 = sshll.u32 %s5235_s27, 4  ;;  %s5053_s21 = int_to_ptr.vmem [resolvable:$false] %s5052_s21 }
 0xb73   : > { %s5054_s25 = scalar_lea.vmem %s5053_s21, 512  ;;  %p5055_p12 = scmp.lt.s32.totalorder %s6092_s16, %s5053_s21 }
 0xb74   : > { %s4305_s11 = sshll.u32 %s6308_s1, 1  ;;  %s4306_s29 = sshll.u32 %s6309_s12, 2 }
 0xb75   : > { %s3999_s3 = sadd.s32 %s4306_s29, %s4305_s11  ;;  %p6312_p6 = scmp.ne.s32.totalorder %s6310_s10, 0 }
 0xb76   : > { %s4307_s2 = sshll.u32 %s3999_s3, 7  ;;  %p5056_p2 = scmp.lt.s32.totalorder %s5054_s25, %s5048_s4 }
 0xb77   : > { %s6097_s22 = scalar_lea.hbm %s6311_s9, %s4307_s2  ;;  %p5050_p13 = pnand %p5049_p11, %p6312_p6 }
 0xb78   : > { %p5057_p5 = por %p5056_p2, %p5055_p12 }
 0xb79   : > { %p5051_p9 = pneg %p5050_p13 }
 0xb7b   : > { %p5058_p1 = pnand %p5057_p5, %p5051_p9 }
 0xb7d   : > { %5061 = shalt.err (!%p5058_p1)
}
 0xb7e   : > { %s5062_s1 = scalar_lea.hbm %s6097_s22, 256  ;;  %s5066_s29 = scalar_lea.hbm %s6311_s9, 1024 }
 0xb7f   : > { %p5063_p0 = scmp.ne.s32.totalorder %s6097_s22, %s5062_s1  ;;  %p5067_p4 = scmp.lt.u32.totalorder %s6097_s22, %s6311_s9 }
 0xb80   : > { %p5068_p7 = scmp.lt.u32.totalorder %s5066_s29, %s5062_s1  ;;  %p5070_p11 = scmp.lt.u32.totalorder %s5062_s1, %s6097_s22 }
 0xb81   : > { %p5064_p3 = pnand %p5063_p0, %p6312_p6 }
 0xb82   : > { %p5069_p10 = por %p5068_p7, %p5067_p4 }
 0xb83   : > { %p5065_p8 = pneg %p5064_p3 }
 0xb84   : > { %p5071_p13 = por %p5070_p11, %p5069_p10 }
 0xb86   : > { %p5072_p9 = pnand %p5071_p13, %p5065_p8 }
 0xb88   : > { %5075 = shalt.err (!%p5072_p9)
}
 0xb89   : > { %s5236_s13 = smov 128   ;;  %s5237_s24 = smov 8  }
 0xb8a   : > { %4664 = dma.vmem_to_hbm [thread:$0]  (%p6312_p6), %s6092_s16, 256, %s6097_s22, %s3987_s28, %s5236_s13, %s5236_s13, %s5237_s24  }
 0xb8b PF: > { %s6313_s4 = sld [smem:[#allocation28_spill]]  ;;  %s6314_s27 = sld [smem:[#allocation37_spill]] }
 0xb8c   : > { %p4700_p12 = scmp.ge.s32.totalorder %s5202_s15, 2 }
 0xb91   : > { %s4017_s21 = sand.u32 1, %s6313_s4   ;;  %p6315_p2 = scmp.ne.s32.totalorder %s6314_s27, 0 }
 0xb92   : > { %s4018_s25 = scalar_lea.sflag [#allocation10], %s4017_s21 }
 0xb93   : > { %p4690_p5 = pnand %p4700_p12, %p6315_p2 }
 0xb95   : > { %5149 = dma.done.wait (!%p4690_p5), %s4018_s25, 256  }
 0xb96   : > { %5151 = vsyncadd (!%p4690_p5), %s4018_s25, 4294967040  ;;  %s35_s15 = sadd.s32 1, %s5202_s15   ;;  %s6317_s21 = sld [smem:[#allocation27_spill]] }
 0xb97   : > { %p6128_p1 = scmp.ge.s32.totalorder %s35_s15, 18   ;;  %s6318_s24 = sld [smem:[#allocation29_spill]] }
 0xb98   : > { %s6319_s28 = sld [smem:[#allocation33_spill]]  ;;  %s6320_s13 = sld [smem:[#allocation42_spill]] }
 0xb99   : > { %s6321_s22 = smov %s5162_s23  ;;  %s6322_s23 = smov %s5624_s7 }
 0xb9a   : > { %s6323_s25 = smov %s5174_s26  ;;  %s6324_s26 = smov %s5619_s17 }
 0xb9b   : > { %s6325_s27 = smov %s5190_s30  ;;  %s6326_s29 = smov %s5198_s14 }
 0xb9c   : > { %s6327_s30 = smov %s6330_s19  ;;  %s6328_s14 = smov %s6338_s6 }
 0xb9d   :  { %34 = sbr.rel (!%p6128_p1) target bundleno = 28 (0x1c), region = 186 }
 0xba4   :  { %4023 = vsyncpa [#allocation9], 1 }
 0xba5   :  { %4025 = vsyncpa [#allocation9 + $0x1], 1 }
 0xba6   :  { %4026 = vsyncpa [#allocation12], 1 }
 0xba7   :  { %4028 = vsyncpa [#allocation12 + $0x1], 1 }
 0xba8   :  { %4029 = vsyncpa [#allocation15], 1 }
 0xba9   :  { %4031 = vsyncpa [#allocation15 + $0x1], 1 }
 0xbaa   :  { %4032 = vsyncpa [#allocation18], 1 }
 0xbab   :  { %4033 = vsyncpa [#allocation10], 1 }
 0xbac   :  { %4035 = vsyncpa [#allocation10 + $0x1], 1 }

// kernel: tpu_custom_call.1
= control target key start
LH: loop header
LB: loop body
LE: loop exit
PB: predicated region body
PF: predicated region fallthrough
CT: control target
= control target key end

     0   :  { %s6172_s0 = inlined_call_operand.hbm [shape: f32[2,4,8,32], index: 0, kind: input, shape index: {}]   ;;  %s6173_s1 = inlined_call_operand.hbm [shape: f32[2,4,8,8,8], index: 1, kind: input, shape index: {}]   ;;  %s6174_s2 = inlined_call_operand.hbm [shape: f32[2,4,8,8,8], index: 2, kind: input, shape index: {}]   ;;  %s6175_s3 = inlined_call_operand.hbm [shape: f32[2,4,8,8,8], index: 3, kind: input, shape index: {}]   ;;  %s6176_s4 = inlined_call_operand.hbm [shape: f32[32,32], index: 4, kind: input, shape index: {}]   ;;  %s6177_s5 = inlined_call_operand.hbm [shape: f32[32,32], index: 5, kind: input, shape index: {}]   ;;  %s6178_s6 = inlined_call_operand.vmem [shape: f32[1,32], index: 6, kind: input, shape index: {}]   ;;  %s6179_s7 = inlined_call_operand.vmem [shape: f32[1,32], index: 7, kind: input, shape index: {}]   ;;  %s6180_s8 = inlined_call_operand.hbm [shape: f32[32,96], index: 8, kind: input, shape index: {}]   ;;  %s6181_s9 = inlined_call_operand.vmem [shape: f32[1,96], index: 9, kind: input, shape index: {}]   ;;  %s6182_s10 = inlined_call_operand.vmem [shape: f32[32,32], index: 10, kind: input, shape index: {}]   ;;  %s6183_s11 = inlined_call_operand.vmem [shape: f32[1,32], index: 11, kind: input, shape index: {}]   ;;  %s6184_s12 = inlined_call_operand.hbm [shape: f32[2,4,8,32], index: 12, kind: output, shape index: {}]  }
   0x1   :  { %6226 = sst [smem:[#allocation43_spill]] %s6173_s1 }
   0x2   :  { %6227 = sst [smem:[#allocation44_spill]] %s6174_s2 }
   0x3   :  { %6228 = sst [smem:[#allocation45_spill]] %s6175_s3 }
   0x4   :  { %6229 = sst [smem:[#allocation46_spill]] %s6176_s4 }
   0x5   :  { %6230 = sst [smem:[#allocation47_spill]] %s6177_s5 }
   0x6   :  { %6231 = sst [smem:[#allocation48_spill]] %s6178_s6 }
   0x7   :  { %6232 = sst [smem:[#allocation49_spill]] %s6179_s7 }
   0x8   :  { %6233 = sst [smem:[#allocation50_spill]] %s6180_s8 }
   0x9   :  { %6234 = sst [smem:[#allocation51_spill]] %s6181_s9 }
   0xa   :  { %6235 = sst [smem:[#allocation52_spill]] %s6182_s10 }
   0xb   :  { %6236 = sst [smem:[#allocation53_spill]] %s6183_s11 }
   0xc   :  { %6237 = sst [smem:[#allocation54_spill]] %s6184_s12 }
   0xd   :  { %17 = vsyncpa [#allocation9], 0 }
   0xe   :  { %19 = vsyncpa [#allocation9 + $0x1], 0 }
   0xf   :  { %20 = vsyncpa [#allocation12], 0 }
  0x10   :  { %22 = vsyncpa [#allocation12 + $0x1], 0 }
  0x11   :  { %23 = vsyncpa [#allocation15], 0 }
  0x12   :  { %25 = vsyncpa [#allocation15 + $0x1], 0 }
  0x13   :  { %26 = vsyncpa [#allocation18], 0 }
  0x14   :  { %27 = vsyncpa [#allocation10], 0 }
  0x15   :  { %29 = vsyncpa [#allocation10 + $0x1], 0  ;;  %s5303_s21 = smov 0   ;;  %s5305_s22 = smov 0  }
  0x16   :  { %s5307_s23 = smov 0   ;;  %s5309_s24 = smov 0  }
  0x17   :  { %s5311_s25 = smov 0   ;;  %s5313_s26 = smov 0  }
  0x18   :  { %s5315_s27 = smov 0   ;;  %s5317_s28 = smov 0  }
  0x19   :  { %s5319_s29 = smov 0   ;;  %s5321_s30 = smov 0  }
  0x1a   :  { %s5323_s13 = smov 0   ;;  %s5325_s14 = smov 0  }
  0x1b   :  { %s5327_s15 = smov 0  }
  0x1c LB: > { %6238 = sst [smem:[#allocation27_spill]] %s5158_s22  ;;  %s5367_s16 = sadd.s32 4294967295, %s5202_s15   ;;  %s5202_s15 = sphi %s5327_s15, %s35_s15   ;;  %s5198_s14 = sphi %s5325_s14, %s6328_s14   ;;  %s5194_s13 = sphi %s5323_s13, %s6320_s13   ;;  %s5190_s30 = sphi %s5321_s30, %s6327_s30   ;;  %s5186_s29 = sphi %s5319_s29, %s6326_s29   ;;  %s5182_s28 = sphi %s5317_s28, %s6319_s28   ;;  %s5178_s27 = sphi %s5315_s27, %s6325_s27   ;;  %s5174_s26 = sphi %s5313_s26, %s6324_s26   ;;  %s5170_s25 = sphi %s5311_s25, %s6323_s25   ;;  %s5166_s24 = sphi %s5309_s24, %s6318_s24   ;;  %s5162_s23 = sphi %s5307_s23, %s6322_s23   ;;  %s5158_s22 = sphi %s5305_s22, %s6321_s22   ;;  %s5154_s21 = sphi %s5303_s21, %s6317_s21  }
  0x1d   : > { %6239 = sst [smem:[#allocation28_spill]] %s5166_s24  ;;  %s4210_s17 = sadd.s32 4294967294, %s5202_s15  }
  0x1e   : > { %6240 = sst [smem:[#allocation29_spill]] %s5170_s25  ;;  %p76_p0 = scmp.ne.s32.totalorder %s5170_s25, %s5166_s24 }
  0x1f   : > { %6241 = sst [smem:[#allocation30_spill]] %s5178_s27  ;;  %p6189_p1 = scmp.eq.s32.totalorder %s5367_s16, 0 }
  0x20   : > { %6242 = sst [smem:[#allocation31_spill]] %s5182_s28  ;;  %p104_p2 = scmp.ne.s32.totalorder %s5158_s22, %s5154_s21 }
  0x21   : > { %6243 = sst [smem:[#allocation32_spill]] %s5186_s29  ;;  %p5377_p4 = por %p6189_p1, %p76_p0 }
  0x22   : > { %6244 = sst [smem:[#allocation33_spill]] %s5194_s13  ;;  %p360_p5 = scmp.eq.s32.totalorder %s4210_s17, 15 }
  0x23   : > { %6245 = sst [smem:[#allocation34_spill]] %s5367_s16  ;;  %p5383_p6 = por %p104_p2, %p6189_p1 }
  0x24   : > { %s6246_s18 = scalar_select %p5377_p4, 1, 0 }
  0x25   : > { %s6248_s19 = scalar_select %p5383_p6, 1, 0 }
  0x26   : > { %6247 = sst [smem:[#allocation35_spill]] %s6246_s18  ;;  %p4211_p7 = scmp.ge.s32.totalorder %s5202_s15, 1 }
  0x27   : > { %6249 = sst [smem:[#allocation36_spill]] %s6248_s19  ;;  %p5388_p8 = por %p360_p5, %p76_p0 }
  0x28   : > { %p367_p9 = scmp.lt.s32.totalorder %s5202_s15, 17  ;;  %s5204_s24 = smov [#allocation16]  }
  0x29   : > { %s6250_s20 = scalar_select %p5388_p8, 1, 0 }
  0x2a   : > { %p5393_p10 = pnand %p4211_p7, %p367_p9  ;;  %s379_s12 = sshll.u32 %s5204_s24, 4  ;;  %s380_s12 = int_to_ptr.vmem [resolvable:$true] %s379_s12 }
  0x2b   : > { %6251 = sst [smem:[#allocation37_spill]] %s6250_s20  ;;  %s5205_s29 = smov [#allocation17]  }
  0x2c   : > { %s6252_s21 = scalar_select %p5393_p10, 1, 0 }
  0x2d   : > { %p4666_p11 = pneg %p5393_p10  ;;  %s392_s28 = sshll.u32 %s5205_s29, 4  ;;  %s5405_s28 = int_to_ptr.vmem [resolvable:$true] %s392_s28 }
  0x2e   : > { %6253 = sst [smem:[#allocation38_spill]] %s6252_s21  ;;  %s6255_s4 = sld [smem:[#allocation46_spill]] }
  0x2f   : > { %p5401_p12 = pnand %p4666_p11, %p6189_p1 }
  0x31   : > { %s6254_s17 = scalar_select %p5401_p12, 1, 0 }
  0x32   : > { %p5415_p0 = pneg %p5401_p12 }
  0x34   : > { %s4844_s10 = scalar_lea.hbm %s6255_s4, 512 }
  0x35   : > { %p4845_p13 = scmp.ne.s32.totalorder %s6255_s4, %s4844_s10  ;;  %p4851_p7 = scmp.lt.u32.totalorder %s4844_s10, %s6255_s4 }
  0x36   : > { %s6256_s24 = scalar_select %p5415_p0, 1, 0 }
  0x37   : > { %p4847_p2 = pnand %p5415_p0, %p4845_p13 }
  0x39   : > { %p4848_p5 = pneg %p4847_p2 }
  0x3b   : > { %p4853_p9 = pnand %p4851_p7, %p4848_p5 }
  0x3d   : > { %4856 = shalt.err (!%p4853_p9)
}
  0x3e   : > { %s4857_s11 = scalar_lea.vmem %s380_s12, 512  ;;  %p4865_p8 = scmp.lt.s32.totalorder %s380_s12, %s380_s12 }
  0x3f   : > { %p4858_p11 = scmp.ne.s32.totalorder %s380_s12, %s4857_s11  ;;  %p4866_p6 = scmp.lt.s32.totalorder %s4857_s11, %s4857_s11 }
  0x41   : > { %p4860_p1 = pnand %p4858_p11, %p5415_p0  ;;  %p4867_p4 = por %p4866_p6, %p4865_p8 }
  0x43   : > { %p4861_p3 = pneg %p4860_p1 }
  0x45   : > { %p4868_p10 = pnand %p4867_p4, %p4861_p3 }
  0x47   : > { %4871 = shalt.err (!%p4868_p10)
}
  0x48   : > { %s6199_s7 = smov 128   ;;  %s6201_s9 = smov 8  }
  0x49   : > { %4669 = dma.hbm_to_vmem [thread:$0]  (!%p5401_p12), %s6255_s4, 512, %s380_s12, [#allocation15], %s6199_s7, %s6199_s7, %s6201_s9  }
  0x4a   : > { %s6257_s5 = sld [smem:[#allocation47_spill]] }
  0x50   : > { %s4872_s27 = scalar_lea.hbm %s6257_s5, 512 }
  0x51   : > { %p4873_p1 = scmp.ne.s32.totalorder %s6257_s5, %s4872_s27  ;;  %p4879_p6 = scmp.lt.u32.totalorder %s4872_s27, %s6257_s5 }
  0x53   : > { %p4875_p3 = pnand %p4873_p1, %p5415_p0 }
  0x55   : > { %p4876_p4 = pneg %p4875_p3 }
  0x57   : > { %p4881_p8 = pnand %p4879_p6, %p4876_p4 }
  0x59   : > { %4884 = shalt.err (!%p4881_p8)
}
  0x5a   : > { %s4885_s12 = scalar_lea.vmem %s5405_s28, 512  ;;  %p4893_p5 = scmp.lt.s32.totalorder %s5405_s28, %s5405_s28 }
  0x5b   : > { %p4886_p10 = scmp.ne.s32.totalorder %s5405_s28, %s4885_s12  ;;  %p4894_p7 = scmp.lt.s32.totalorder %s4885_s12, %s4885_s12 }
  0x5d   : > { %p4888_p13 = pnand %p4886_p10, %p5415_p0  ;;  %p4895_p9 = por %p4894_p7, %p4893_p5 }
  0x5f   : > { %p4889_p2 = pneg %p4888_p13 }
  0x61   : > { %p4896_p11 = pnand %p4895_p9, %p4889_p2 }
  0x63   : > { %4899 = shalt.err (!%p4896_p11)
}
  0x64   : > { %4672 = dma.hbm_to_vmem [thread:$0]  (!%p5401_p12), %s6257_s5, 512, %s5405_s28, [#allocation18], %s6199_s7, %s6199_s7, %s6201_s9  }
  0x65   : > { %s47_s19 = sadd.s32 1, %s5190_s30  ;;  %p6206_p3 = scmp.eq.s32.totalorder %s5202_s15, 0 }
  0x66   : > { %p5462_p1 = scmp.ge.s32.totalorder %s47_s19, 4  ;;  %p98_p4 = scmp.ne.s32.totalorder %s5162_s23, %s5158_s22 }
  0x67   : > { %p6205_p8 = scmp.lt.s32.totalorder %s5202_s15, 16  ;;  %s6207_s29 = sand.u32 1, %s5202_s15  }
  0x68   : > { %s6258_s6 = scalar_select %p5462_p1, 1, 0 }
  0x69   : > { %s6330_s19 = smov (%p5462_p1, %s47_s19), 0  ;;  %p5476_p6 = por %p98_p4, %p6206_p3 }
  0x6a   : > { %s459_s11 = sand.u32 1, %s5162_s23   ;;  %s4221_s27 = sshll.u32 %s5190_s30, 3 }
  0x6b   : > { %s5485_s12 = sshll.u32 %s459_s11, 6  ;;  %s4222_s18 = sshll.u32 %s5198_s14, 5 }
  0x6c   : > { %s467_s10 = sadd.s32 %s4222_s18, %s4221_s27  ;;  %s461_s21 = scalar_lea.vmem [#allocation11], %s5485_s12 }
  0x6d   : > { %s470_s7 = sshll.u32 %s461_s21, 4  ;;  %s5490_s9 = sshll.u32 %s467_s10, 7  ;;  %s5492_s7 = int_to_ptr.vmem [resolvable:$true] %s470_s7 }
  0x6e   : > { %s6260_s1 = sld [smem:[#allocation43_spill]]  ;;  %p5504_p10 = pnand %p6205_p8, %p5476_p6 }
  0x6f   : > { %s5208_s21 = smov [#allocation19]   ;;  %s5512_s27 = scalar_lea.sflag [#allocation12], %s6207_s29 }
  0x70   : > { %s6261_s11 = scalar_select %p5504_p10, 1, 0 }
  0x71   : > { %s5508_s10 = sshll.u32 %s5208_s21, 4  ;;  %6263 = sst [smem:[#allocation40_spill]] %s5512_s27  ;;  %s412_s10 = int_to_ptr.vmem [resolvable:$true] %s5508_s10 }
  0x72   : > { %6262 = sst [smem:[#allocation39_spill]] %s6261_s11  ;;  %p5518_p2 = pneg %p5504_p10 }
  0x74   : > { %s5498_s22 = scalar_lea.hbm %s6260_s1, %s5490_s9  ;;  %s4905_s28 = scalar_lea.hbm %s6260_s1, 8192 }
  0x75   : > { %s4900_s4 = scalar_lea.hbm %s5498_s22, 1024  ;;  %p4906_p9 = scmp.lt.u32.totalorder %s5498_s22, %s6260_s1 }
  0x76   : > { %p4901_p13 = scmp.ne.s32.totalorder %s5498_s22, %s4900_s4  ;;  %p4907_p11 = scmp.lt.u32.totalorder %s4905_s28, %s4900_s4 }
  0x77   : > { %p4909_p6 = scmp.lt.u32.totalorder %s4900_s4, %s5498_s22 }
  0x78   : > { %p4903_p5 = pnand %p5518_p2, %p4901_p13  ;;  %p4908_p4 = por %p4907_p11, %p4906_p9 }
  0x7a   : > { %p4904_p7 = pneg %p4903_p5  ;;  %p4910_p8 = por %p4909_p6, %p4908_p4 }
  0x7c   : > { %p4911_p3 = pnand %p4910_p8, %p4904_p7 }
  0x7e   : > { %4914 = shalt.err (!%p4911_p3)
}
  0x7f   : > { %s4915_s29 = scalar_lea.vmem %s5492_s7, 1024  ;;  %s5209_s20 = smov [#allocation11]  }
  0x80   : > { %p4916_p13 = scmp.ne.s32.totalorder %s5492_s7, %s4915_s29  ;;  %s4920_s18 = sshll.u32 %s5209_s20, 4  ;;  %s4921_s18 = int_to_ptr.vmem [resolvable:$false] %s4920_s18 }
  0x81   : > { %s4922_s3 = scalar_lea.vmem %s4921_s18, 2048  ;;  %p4923_p12 = scmp.lt.s32.totalorder %s5492_s7, %s4921_s18 }
  0x82   : > { %p4918_p5 = pnand %p4916_p13, %p5518_p2  ;;  %p4924_p0 = scmp.lt.s32.totalorder %s4922_s3, %s4915_s29 }
  0x84   : > { %p4919_p1 = pneg %p4918_p5  ;;  %p4925_p9 = por %p4924_p0, %p4923_p12 }
  0x86   : > { %p4926_p11 = pnand %p4925_p9, %p4919_p1 }
  0x88   : > { %4929 = shalt.err (!%p4926_p11)
}
  0x89   : > { %s6265_s28 = smov 8   ;;  %s6266_s4 = smov 128  }
  0x8a   : > { %4682 = dma.hbm_to_vmem [thread:$0]  (!%p5504_p10), %s5498_s22, 1024, %s5492_s7, %s5512_s27, %s6266_s4, %s6266_s4, %s6265_s28  }
  0x8b   : > { %s6267_s8 = sld [smem:[#allocation50_spill]]  ;;  %p6268_p0 = scmp.ne.s32.totalorder %s6256_s24, 0 }
  0x91   : > { %s4930_s18 = scalar_lea.hbm %s6267_s8, 512 }
  0x92   : > { %p4931_p12 = scmp.ne.s32.totalorder %s6267_s8, %s4930_s18  ;;  %p4937_p8 = scmp.lt.u32.totalorder %s4930_s18, %s6267_s8 }
  0x94   : > { %p4933_p1 = pnand %p4931_p12, %p6268_p0 }
  0x96   : > { %p4934_p3 = pneg %p4933_p1 }
  0x98   : > { %p4939_p7 = pnand %p4937_p8, %p4934_p3 }
  0x9a   : > { %4942 = shalt.err (!%p4939_p7)
}
  0x9b   : > { %s4943_s2 = scalar_lea.vmem %s412_s10, 512  ;;  %p4951_p5 = scmp.lt.s32.totalorder %s412_s10, %s412_s10 }
  0x9c   : > { %p4944_p4 = scmp.ne.s32.totalorder %s412_s10, %s4943_s2  ;;  %p4952_p9 = scmp.lt.s32.totalorder %s4943_s2, %s4943_s2 }
  0x9e   : > { %p4946_p6 = pnand %p4944_p4, %p6268_p0  ;;  %p4953_p11 = por %p4952_p9, %p4951_p5 }
  0xa0   : > { %p4947_p13 = pneg %p4946_p6 }
  0xa2   : > { %p4954_p10 = pnand %p4953_p11, %p4947_p13 }
  0xa4   : > { %4957 = shalt.err (!%p4954_p10)
}
  0xa5   : > { %p6269_p12 = scmp.ne.s32.totalorder %s6254_s17, 0  ;;  %s63_s2 = sadd.s32 1, %s5174_s26 }
  0xa6   : > { %s50_s17 = sadd.s32 1, %s5194_s13  ;;  %p70_p10 = scmp.ne.s32.totalorder %s5174_s26, %s5170_s25 }
  0xa7   : > { %4675 = dma.hbm_to_vmem [thread:$0]  (!%p6269_p12), %s6267_s8, 512, %s412_s10, [#allocation18], %s6266_s4, %s6266_s4, %s6265_s28  }
  0xa8   : > { %p6270_p0 = scmp.ne.s32.totalorder %s6258_s6, 0  ;;  %p6271_p1 = scmp.eq.s32.totalorder %s5202_s15, 0 }
  0xa9   : > { %p6273_p8 = scmp.eq.s32.totalorder %s5367_s16, 15  ;;  %s434_s11 = sand.u32 1, %s5174_s26  }
  0xaa   : > { %s6332_s17 = smov (!%p6270_p0, %s50_s17), %s5194_s13  ;;  %p5576_p3 = por %p6271_p1, %p70_p10 }
  0xab   : > { %p5582_p7 = por %p6273_p8, %p70_p10  ;;  %p52_p4 = scmp.ge.s32.totalorder %s6332_s17, 2 }
  0xac   : > { %s4216_s10 = sshll.u32 %s434_s11, 4  ;;  %s6277_s6 = sadd.s32 1, %s5198_s14 }
  0xad   : > { %s6274_s7 = scalar_select %p5582_p7, 1, 0 }
  0xae   : > { %s6334_s17 = smov (%p52_p4, %s6332_s17), 0  ;;  %s6336_s6 = smov (!%p52_p4, %s6277_s6), %s5198_s14 }
  0xaf   : > { %6275 = sst [smem:[#allocation41_spill]] %s6274_s7  ;;  %s59_s21 = ssub.s32 %s5194_s13, %s6334_s17 }
  0xb0   : > { %6276 = sst [smem:[#allocation42_spill]] %s6334_s17  ;;  %p56_p6 = scmp.ge.s32.totalorder %s6336_s6, 2 }
  0xb1   : > { %s4217_s20 = sshll.u32 %s5194_s13, 1  ;;  %s4218_s18 = sshll.u32 %s5198_s14, 2 }
  0xb2   : > { %s438_s29 = scalar_lea.vmem [#allocation8], %s4216_s10  ;;  %s6338_s6 = smov (%p56_p6, %s6336_s6), 0 }
  0xb3   : > { %s447_s3 = sshll.u32 %s438_s29, 4  ;;  %s444_s1 = sadd.s32 %s4218_s18, %s4217_s20  ;;  %s5598_s3 = int_to_ptr.vmem [resolvable:$true] %s447_s3 }
  0xb4   : > { %s58_s22 = ssub.s32 %s5198_s14, %s6338_s6  ;;  %s4219_s8 = sshll.u32 %s444_s1, 7 }
  0xb5   : > { %s60_s7 = sor.u32 %s59_s21, %s58_s22  ;;  %s6278_s17 = ssub.s32 %s5190_s30, %s6330_s19 }
  0xb6   : > { %s88_s16 = sor.u32 %s6278_s17, %s58_s22  ;;  %p61_p13 = scmp.eq.s32.totalorder %s60_s7, 0 }
  0xb7   : > { %p89_p5 = scmp.eq.s32.totalorder %s88_s16, 0  ;;  %s5608_s27 = scalar_lea.hbm %s6172_s0, %s4219_s8 }
  0xb8   : > { %p6279_p9 = scmp.lt.s32.totalorder %s5202_s15, 16  ;;  %s6281_s16 = sadd.s32 1, %s5162_s23 }
  0xb9   : > { %s5619_s17 = scalar_select %p61_p13, %s5174_s26, %s63_s2  }
  0xba   : > { %p5614_p11 = pnand %p6279_p9, %p5576_p3  ;;  %s5626_s25 = scalar_lea.sflag [#allocation9], %s434_s11 }
  0xbb   : > { %s5624_s7 = scalar_select %p89_p5, %s5162_s23, %s6281_s16  }
  0xbc   : > { %s4958_s8 = scalar_lea.hbm %s5608_s27, 256  ;;  %p4960_p10 = pneg %p5614_p11 }
  0xbd   : > { %p4959_p12 = scmp.ne.s32.totalorder %s5608_s27, %s4958_s8  ;;  %s4963_s21 = scalar_lea.hbm %s6172_s0, 1024 }
  0xbe   : > { %p4964_p3 = scmp.lt.u32.totalorder %s5608_s27, %s6172_s0  ;;  %p4965_p8 = scmp.lt.u32.totalorder %s4963_s21, %s4958_s8 }
  0xbf   : > { %p4961_p0 = pnand %p4960_p10, %p4959_p12  ;;  %p4967_p6 = scmp.lt.u32.totalorder %s4958_s8, %s5608_s27 }
  0xc0   : > { %p4966_p4 = por %p4965_p8, %p4964_p3 }
  0xc1   : > { %p4962_p1 = pneg %p4961_p0 }
  0xc2   : > { %p4968_p13 = por %p4967_p6, %p4966_p4 }
  0xc4   : > { %p4969_p5 = pnand %p4968_p13, %p4962_p1 }
  0xc6   : > { %4972 = shalt.err (!%p4969_p5)
}
  0xc7   : > { %s4973_s11 = scalar_lea.vmem %s5598_s3, 256  ;;  %s5210_s18 = smov [#allocation8]  }
  0xc8   : > { %p4974_p9 = scmp.ne.s32.totalorder %s5598_s3, %s4973_s11  ;;  %s4978_s29 = sshll.u32 %s5210_s18, 4  ;;  %s4979_s29 = int_to_ptr.vmem [resolvable:$false] %s4978_s29 }
  0xc9   : > { %s4980_s1 = scalar_lea.vmem %s4979_s29, 512  ;;  %p4981_p7 = scmp.lt.s32.totalorder %s5598_s3, %s4979_s29 }
  0xca   : > { %p4976_p12 = pnand %p4974_p9, %p4960_p10  ;;  %p4982_p3 = scmp.lt.s32.totalorder %s4980_s1, %s4973_s11 }
  0xcc   : > { %p4977_p0 = pneg %p4976_p12  ;;  %p4983_p8 = por %p4982_p3, %p4981_p7 }
  0xce   : > { %p4984_p4 = pnand %p4983_p8, %p4977_p0 }
  0xd0   : > { %4987 = shalt.err (!%p4984_p4)
}
  0xd1   : > { %4679 = dma.hbm_to_vmem [thread:$0]  (!%p5614_p11), %s5608_s27, 256, %s5598_s3, %s5626_s25, %s6266_s4, %s6266_s4, %s6265_s28  }
  0xd2   : > { %s6282_s8 = sld [smem:[#allocation44_spill]]  ;;  %s484_s10 = scalar_lea.vmem [#allocation13], %s5485_s12 }
  0xd3   : > { %s493_s24 = sshll.u32 %s484_s10, 4  ;;  %s5664_s24 = int_to_ptr.vmem [resolvable:$true] %s493_s24 }
  0xd8   : > { %s5661_s13 = scalar_lea.hbm %s6282_s8, %s5490_s9  ;;  %s4993_s3 = scalar_lea.hbm %s6282_s8, 8192 }
  0xd9   : > { %s4988_s21 = scalar_lea.hbm %s5661_s13, 1024  ;;  %p4994_p11 = scmp.lt.u32.totalorder %s5661_s13, %s6282_s8 }
  0xda   : > { %p4989_p7 = scmp.ne.s32.totalorder %s5661_s13, %s4988_s21  ;;  %p4995_p6 = scmp.lt.u32.totalorder %s4993_s3, %s4988_s21 }
  0xdb   : > { %p4997_p5 = scmp.lt.u32.totalorder %s4988_s21, %s5661_s13 }
  0xdc   : > { %p4991_p10 = pnand %p4989_p7, %p5518_p2  ;;  %p4996_p13 = por %p4995_p6, %p4994_p11 }
  0xde   : > { %p4992_p1 = pneg %p4991_p10  ;;  %p4998_p9 = por %p4997_p5, %p4996_p13 }
  0xe0   : > { %p4999_p12 = pnand %p4998_p9, %p4992_p1 }
  0xe2   : > { %5002 = shalt.err (!%p4999_p12)
}
  0xe3   : > { %s5003_s11 = scalar_lea.vmem %s5664_s24, 1024  ;;  %s5211_s18 = smov [#allocation13]  }
  0xe4   : > { %p5004_p0 = scmp.ne.s32.totalorder %s5664_s24, %s5003_s11  ;;  %s5008_s29 = sshll.u32 %s5211_s18, 4  ;;  %s5009_s29 = int_to_ptr.vmem [resolvable:$false] %s5008_s29 }
  0xe5   : > { %s5010_s1 = scalar_lea.vmem %s5009_s29, 2048  ;;  %p5011_p4 = scmp.lt.s32.totalorder %s5664_s24, %s5009_s29 }
  0xe6   : > { %p5006_p3 = pnand %p5004_p0, %p5518_p2  ;;  %p5012_p7 = scmp.lt.s32.totalorder %s5010_s1, %s5003_s11 }
  0xe8   : > { %p5007_p8 = pneg %p5006_p3  ;;  %p5013_p10 = por %p5012_p7, %p5011_p4 }
  0xea   : > { %p5014_p11 = pnand %p5013_p10, %p5007_p8 }
  0xec   : > { %5017 = shalt.err (!%p5014_p11)
}
  0xed   : > { %s6283_s22 = sld [smem:[#allocation39_spill]]  ;;  %s6285_s16 = sld [smem:[#allocation40_spill]] }
  0xee   : > { %s6286_s20 = sld [smem:[#allocation45_spill]]  ;;  %s507_s3 = scalar_lea.vmem [#allocation14], %s5485_s12 }
  0xef   : > { %s516_s25 = sshll.u32 %s507_s3, 4  ;;  %s6287_s2 = sand.u32 1, %s5202_s15   ;;  %s5698_s25 = int_to_ptr.vmem [resolvable:$true] %s516_s25 }
  0xf0   : > { %s5702_s11 = scalar_lea.sflag [#allocation15], %s6287_s2 }
  0xf3   : > { %p6284_p1 = scmp.ne.s32.totalorder %s6283_s22, 0 }
  0xf4   : > { %s5695_s27 = scalar_lea.hbm %s6286_s20, %s5490_s9  ;;  %s5023_s9 = scalar_lea.hbm %s6286_s20, 8192 }
  0xf5   : > { %4685 = dma.hbm_to_vmem [thread:$0]  (!%p6284_p1), %s5661_s13, 1024, %s5664_s24, %s6285_s16, %s6266_s4, %s6266_s4, %s6265_s28  }
  0xf6   : > { %s5018_s18 = scalar_lea.hbm %s5695_s27, 1024  ;;  %p5024_p9 = scmp.lt.u32.totalorder %s5695_s27, %s6286_s20 }
  0xf7   : > { %p5019_p6 = scmp.ne.s32.totalorder %s5695_s27, %s5018_s18  ;;  %p5025_p12 = scmp.lt.u32.totalorder %s5023_s9, %s5018_s18 }
  0xf8   : > { %p5027_p3 = scmp.lt.u32.totalorder %s5018_s18, %s5695_s27 }
  0xf9   : > { %p5021_p13 = pnand %p5019_p6, %p5518_p2  ;;  %p5026_p0 = por %p5025_p12, %p5024_p9 }
  0xfb   : > { %p5022_p5 = pneg %p5021_p13  ;;  %p5028_p8 = por %p5027_p3, %p5026_p0 }
  0xfd   : > { %p5029_p4 = pnand %p5028_p8, %p5022_p5 }
  0xff   : > { %5032 = shalt.err (!%p5029_p4)
}
 0x100   : > { %s5033_s12 = scalar_lea.vmem %s5698_s25, 1024  ;;  %s5212_s16 = smov [#allocation14]  }
 0x101   : > { %p5034_p7 = scmp.ne.s32.totalorder %s5698_s25, %s5033_s12  ;;  %s5038_s10 = sshll.u32 %s5212_s16, 4  ;;  %s5039_s10 = int_to_ptr.vmem [resolvable:$false] %s5038_s10 }
 0x102   : > { %s5040_s21 = scalar_lea.vmem %s5039_s10, 2048  ;;  %p5041_p6 = scmp.lt.s32.totalorder %s5698_s25, %s5039_s10 }
 0x103   : > { %p5036_p10 = pnand %p5034_p7, %p5518_p2  ;;  %p5042_p13 = scmp.lt.s32.totalorder %s5040_s21, %s5033_s12 }
 0x105   : > { %p5037_p11 = pneg %p5036_p10  ;;  %p5043_p9 = por %p5042_p13, %p5041_p6 }
 0x107   : > { %p5044_p12 = pnand %p5043_p9, %p5037_p11 }
 0x109   : > { %5047 = shalt.err (!%p5044_p12)
}
 0x10a   : > { %4688 = dma.hbm_to_vmem [thread:$0]  (!%p6284_p1), %s5695_s27, 1024, %s5698_s25, %s5702_s11, %s6266_s4, %s6266_s4, %s6265_s28  }
 0x10b   : > { %s6288_s5 = sld [smem:[#allocation38_spill]] }
 0x111   : > { %p6289_p2 = scmp.ne.s32.totalorder %s6288_s5, 0 }
 0x112   : > { %s6290_s3 = sld [smem:[#allocation29_spill]] (!%p6289_p2) }
 0x113   : > { %528 = sbr.rel (%p6289_p2) target bundleno = 2955 (0xb8b), region = 68  ;;  %s6291_s2 = sld [smem:[#allocation35_spill]] (!%p6289_p2) }
 0x118   : > { %s5732_s18 = sand.u32 (!%p6289_p2), 1, %s6290_s3  }
 0x119   : > { %s4233_s13 = sshll.u32 (!%p6289_p2), %s5732_s18, 4  ;;  %s531_s24 = scalar_lea.sflag (!%p6289_p2), [#allocation9], %s5732_s18 }
 0x11a   : > { %s5736_s9 = scalar_lea.vmem [#allocation8], %s4233_s13  ;;  %p6292_p5 = scmp.ne.s32.totalorder %s6291_s2, 0 }
 0x11c   : > { %5129 = dma.done.wait (%p6292_p5), %s531_s24, 256  }
 0x11d   : > { %5131 = vsyncadd (%p6292_p5), %s531_s24, 4294967040  ;;  %s6293_s22 = sld [smem:[#allocation34_spill]]  ;;  %s6295_s4 = sld [smem:[#allocation36_spill]] }
 0x11e   : > { %s6294_s28 = sld [smem:[#allocation27_spill]] }
 0x123   : > { %s539_s27 = sand.u32 1, %s6293_s22   ;;  %p6296_p1 = scmp.ne.s32.totalorder %s6295_s4, 0 }
 0x124   : > { %s541_s25 = sand.u32 1, %s6294_s28   ;;  %s540_s29 = scalar_lea.sflag [#allocation12], %s539_s27 }
 0x125   : > { %s4234_s11 = sshll.u32 %s541_s25, 6 }
 0x126   : > { %s5744_s1 = scalar_lea.vmem [#allocation11], %s4234_s11 }
 0x127   : > { %5133 = dma.done.wait (%p6296_p1), %s540_s29, 2048  }
 0x128   : > { %5135 = vsyncadd (%p6296_p1), %s540_s29, 4294965248  ;;  %s5750_s12 = scalar_lea.vmem [#allocation13], %s4234_s11  ;;  %s558_s16 = scalar_lea.sflag [#allocation15], %s539_s27 }
 0x129   : > { %s5752_s10 = scalar_lea.vmem [#allocation14], %s4234_s11 }
 0x12a   : > { %5137 = dma.done.wait (%p6296_p1), %s558_s16, 1024  }
 0x12b   : > { %5139 = vsyncadd (%p6296_p1), %s558_s16, 4294966272  ;;  %p6297_p0 = scmp.eq.s32.totalorder %s6293_s22, 0 }
 0x12d   : > { %5141 = dma.done.wait (%p6297_p0), [#allocation15], 512   ;;  %p6298_p3 = pmov %p6297_p0 }
 0x12e   : > { %p6299_p8 = pmov %p6297_p0 }
 0x12f   : > { %5143 = vsyncadd (%p6298_p3), [#allocation15], 4294966784 }
 0x130   : > { %5145 = dma.done.wait (%p6299_p8), [#allocation18], 1024   ;;  %p6300_p4 = pmov %p6297_p0 }
 0x131   : > { %s5766_s21 = scalar_lea.vmem [#allocation20], %s4233_s13  ;;  %s6301_s5 = sld [smem:[#allocation30_spill]] }
 0x132   : > { %5147 = vsyncadd (%p6300_p4), [#allocation18], 4294966272 }
 0x137   : > { %p4241_p7 = scmp.ne.s32.totalorder %s6301_s5, 0 }
 0x138   : > { %v637_v0 = vld [vmem:[#allocation16] sm:$0xff] (!%p4241_p7)  ;;  %v638_v1 = vld [vmem:[#allocation16 + $0x8] sm:$0xff] (!%p4241_p7)  ;;  %v639_v2 = vld [vmem:[#allocation16 + $0x10] sm:$0xff] (!%p4241_p7)  ;;  %v5213_v3 = vmov (!%p4241_p7), 0.0|0.0   ;;  %vm5214_vm0 = vmmov (!%p4241_p7), 0   ;;  %v5215_v6 = vmov (!%p4241_p7), 0.0   ;;  %v814_v36 = vlaneseq (!%p4241_p7) }
 0x139   : > { %634 = sbr.rel (%p4241_p7) target bundleno = 1604 (0x644), region = 100  ;;  %4604 = vmatprep.subr.bf16.mxu0 (!%p4241_p7), %v5213_v3  ;;  %v4605_v4 = vpack.c.bf16 (!%p4241_p7), %v638_v1, %v637_v0  ;;  %v640_v5 = vld [vmem:[#allocation16 + $0x18] sm:$0xff] (!%p4241_p7)  ;;  %4406 = vmatprep.mubr.msk.f32.mxu0 (!%p4241_p7), %vm5214_vm0, %v5215_v6  ;;  %v5771_v7 = vld [vmem:[%s5736_s9] sm:$0xff] (!%p4241_p7)  ;;  %vm645_vm1 = vcmask (!%p4241_p7), 261120   ;;  %v642_v12 = vld [vmem:[#allocation17 + $0x8] sm:$0xff] (!%p4241_p7)  ;;  %vm662_vm2 = vcmask (!%p4241_p7), 1041409  }
 0x13a   : > { %v5774_v8 = vld [vmem:[%s5736_s9 + $0x8] sm:$0xff] (!%p4241_p7)  ;;  %v646_v9 = vsel (!%p4241_p7), %vm645_vm1, %v5771_v7, 0.0  ;;  %4610 = vmatprep.subr.bf16.mxu1 (!%p4241_p7), %v5213_v3  ;;  %v641_v11 = vld [vmem:[#allocation17] sm:$0xff] (!%p4241_p7)  ;;  %4417 = vmatprep.mubr.msk.f32.mxu1 (!%p4241_p7), %vm5214_vm0, %v5215_v6  ;;  %v4608_v13 = vpack.c.bf16 (!%p4241_p7), %v640_v5, %v639_v2  ;;  %v643_v28 = vld [vmem:[#allocation17 + $0x10] sm:$0xff] (!%p4241_p7)  ;;  %v5216_v34 = vmov (!%p4241_p7), 1966171168  }
 0x13b   : > { %v653_v10 = vsel (!%p4241_p7), %vm645_vm1, %v5774_v8, 0.0  ;;  %4606 = vmatpush3.bf16.msra.mxu0 (!%p4241_p7), %v4605_v4  ;;  %v647_v14 = vrot.slane (!%p4241_p7), %v646_v9, 4  ;;  %v4611_v16 = vpack.c.bf16 (!%p4241_p7), %v642_v12, %v641_v11  ;;  %v644_v29 = vld [vmem:[#allocation17 + $0x18] sm:$0xff] (!%p4241_p7)  ;;  %v812_v35 = vunpack.c.l.s4 (!%p4241_p7), %v5216_v34  ;;  %v1069_v12 = vld [vmem:[#allocation19 + $0x10] sm:$0xff] (!%p4241_p7)  ;;  %s6302_s13 = sld [smem:[#allocation48_spill]] (!%p4241_p7)  ;;  %s6303_s22 = sld [smem:[#allocation49_spill]] (!%p4241_p7) }
 0x13c   : > { %v654_v15 = vrot.slane (!%p4241_p7), %v653_v10, 4  ;;  %4607 = vmatprep.subr.bf16.mxu0 (!%p4241_p7), %v5213_v3  ;;  %v4614_v30 = vpack.c.bf16 (!%p4241_p7), %v644_v29, %v643_v28  ;;  %v815_v38 = vshrl.u32 (!%p4241_p7), %v814_v36, 7  ;;  %s6304_s27 = sld [smem:[#allocation51_spill]] (!%p4241_p7)  ;;  %vm1159_vm3 = vcmask (!%p4241_p7), 64512   ;;  %s5217_s25 = smov (!%p4241_p7), 64  }
 0x13d   : > { %v648_v17 = vadd.f32 (!%p4241_p7), %v647_v14, %v646_v9  ;;  %4612 = vmatpush3.bf16.msra.mxu1 (!%p4241_p7), %v4611_v16  ;;  %v813_v37 = vunpack.c.0.s8 (!%p4241_p7), %v812_v35  ;;  %v1067_v9 = vld [vmem:[#allocation19] sm:$0xff] (!%p4241_p7)  ;;  %s5218_s11 = smov (!%p4241_p7), 96   ;;  %s5219_s29 = smov (!%p4241_p7), 120  }
 0x13e   : > { %v655_v18 = vadd.f32 (!%p4241_p7), %v654_v15, %v653_v10  ;;  %4613 = vmatprep.subr.bf16.mxu1 (!%p4241_p7), %v5213_v3  ;;  %v835_v42 = vsub.s32 (!%p4241_p7), 0, %v815_v38  ;;  %v1068_v10 = vld [vmem:[#allocation19 + $0x8] sm:$0xff] (!%p4241_p7)  ;;  %s5220_s16 = smov (!%p4241_p7), 88   ;;  %s5221_s5 = smov (!%p4241_p7), 56  }
 0x13f   : > { %4609 = vmatpush3.bf16.msra.mxu0 (!%p4241_p7), %v4608_v13  ;;  %v649_v19 = vrot.slane (!%p4241_p7), %v648_v17, 2  ;;  %v816_v39 = vsub.s32 (!%p4241_p7), %v813_v37, %v815_v38  ;;  %v4628_v11 = vpack.c.bf16 (!%p4241_p7), %v1068_v10, %v1067_v9  ;;  %s5222_s3 = smov (!%p4241_p7), 112   ;;  %s5223_s2 = smov (!%p4241_p7), 80  }
 0x140   : > { %v656_v20 = vrot.slane %v655_v18, 2  ;;  %4616 = vmatprep.subr.bf16.mxu0 %v5213_v3  ;;  %s5225_s24 = smov 104   ;;  %s5226_s9 = smov 72  }
 0x141   : > { %v650_v21 = vadd.f32 %v649_v19, %v648_v17  ;;  %4615 = vmatpush3.bf16.msra.mxu1 %v4614_v30 }
 0x142   : > { %v657_v22 = vadd.f32 %v656_v20, %v655_v18  ;;  %4622 = vmatprep.subr.bf16.mxu1 %v5213_v3 }
 0x143   : > { %v651_v23 = vrot.slane %v650_v21, 1 }
 0x144   : > { %v658_v24 = vrot.slane %v657_v22, 1 }
 0x145   : > { %v652_v25 = vadd.f32 %v651_v23, %v650_v21 }
 0x146   : > { %v659_v26 = vadd.f32 %v658_v24, %v657_v22  ;;  %v4246_v22 = vld [vmem:[%s6302_s13] ss:$0 sm:$0xff]  ;;  %s5224_s13 = smov 48  }
 0x148   : > { %v663_v27 = vsel %vm662_vm2, %v659_v26, %v652_v25  ;;  %v4247_v25 = vld [vmem:[%s6303_s22] ss:$0 sm:$0xff]  ;;  %s5227_s22 = smov 40  }
 0x149   : > { %4407 = vmatmul.mubr.msk.f32.vlgmr.msra.gmra.mrb[0].mxu0 %vm645_vm1, %v663_v27 }
 0x14a   : > { %4618 = vmatpush3.bf16.msra.mxu0 %v4605_v4  ;;  %4428 = vmatprep.mubr.msk.f32.mxu0 %vm5214_vm0, %v5215_v6 }
 0x14b   : > { %4619 = vmatprep.subr.bf16.mxu0 %v5213_v3 }
 0x14e   : > { %4621 = vmatpush3.bf16.msra.mxu0 %v4608_v13  ;;  %v1070_v13 = vld [vmem:[#allocation19 + $0x18] sm:$0xff] }
 0x14f   : > { %4629 = vmatprep.subr.bf16.mxu0 %v4628_v11  ;;  %v4632_v14 = vpack.c.bf16 %v1070_v13, %v1069_v12 }
 0x21c   : > { %v732_v31 = vpop.f32.mrb[0].mxu0 }
 0x21d   : > { %v736_v32 = vmul.f32 0.125, %v732_v31  ;;  %v4408_v33 = vpop.f32.mrb[1].mxu0  ;;  %v4248_v31 = vld [vmem:[%s6304_s27] ss:$0 sm:$0xff] }
 0x21f   : > { %4418 = vmatmul.mubr.msk.f32.vlgmr.msra.gmra.mrb[0].mxu1 %vm645_vm1, %v736_v32 }
 0x220   : > { %4624 = vmatpush3.bf16.msra.mxu1 %v4611_v16  ;;  %4439 = vmatprep.mubr.msk.f32.mxu1 %vm5214_vm0, %v5215_v6 }
 0x221   : > { %4625 = vmatprep.subr.bf16.mxu1 %v5213_v3 }
 0x224   : > { %4627 = vmatpush3.bf16.msra.mxu1 %v4614_v30 }
 0x2f2   : > { %v806_v40 = vpop.f32.mrb[0].mxu1 }
 0x2f3   : > { %v817_v41 = vrot.slane %v806_v40, %v816_v39  ;;  %v4419_v43 = vpop.f32.mrb[1].mxu1 }
 0x2f5   : > { %v818_v44 = vcombine.high %v817_v41, %v817_v41  ;;  %v825_v45 = vrot.slane %v817_v41, %v816_v39 }
 0x2f7   : > { %v832_v46 = vrot.slane %v818_v44, %v816_v39  ;;  %v836_v47 = vrot.slane %v825_v45, %v835_v42 }
 0x2f9   : > { %v840_v48 = vrot.slane %v832_v46, %v835_v42  ;;  %v843_v49 = vsub.f32 %v5771_v7, %v836_v47 }
 0x2fb   : > { %v844_v50 = vsub.f32 %v5774_v8, %v840_v48  ;;  %v845_v51 = vmul.f32 %v843_v49, %v843_v49 }
 0x2fd   : > { %v846_v52 = vmul.f32 %v844_v50, %v844_v50  ;;  %v847_v53 = vsel %vm645_vm1, %v845_v51, 0.0 }
 0x2fe   : > { %v848_v54 = vrot.slane %v847_v53, 4 }
 0x2ff   : > { %v854_v55 = vsel %vm645_vm1, %v846_v52, 0.0 }
 0x300   : > { %v849_v56 = vadd.f32 %v848_v54, %v847_v53  ;;  %v855_v57 = vrot.slane %v854_v55, 4 }
 0x302   : > { %v850_v58 = vrot.slane %v849_v56, 2  ;;  %v856_v59 = vadd.f32 %v855_v57, %v854_v55 }
 0x304   : > { %v851_v60 = vadd.f32 %v850_v58, %v849_v56  ;;  %v857_v61 = vrot.slane %v856_v59, 2 }
 0x306   : > { %v852_v62 = vrot.slane %v851_v60, 1  ;;  %v858_v63 = vadd.f32 %v857_v61, %v856_v59 }
 0x308   : > { %v859_v0 = vrot.slane %v858_v63, 1  ;;  %v853_v1 = vadd.f32 %v852_v62, %v851_v60 }
 0x30a   : > { %v860_v2 = vadd.f32 %v859_v0, %v858_v63 }
 0x30c   : > { %v863_v3 = vsel %vm662_vm2, %v860_v2, %v853_v1 }
 0x30d   : > { %4429 = vmatmul.mubr.msk.f32.vlgmr.msra.gmra.mrb[2].mxu0 %vm645_vm1, %v863_v3 }
 0x30e   : > { %4631 = vmatpush3.bf16.msra.mxu0 %v4628_v11 }
 0x30f   : > { %4633 = vmatprep.subr.bf16.mxu0 %v4632_v14 }
 0x312   : > { %4635 = vmatpush3.bf16.msra.mxu0 %v4632_v14 }
 0x3e0   : > { %v932_v4 = vpop.f32.mrb[2].mxu0 }
 0x3e1   : > { %v936_v5 = vmul.f32 0.125, %v932_v4  ;;  %v4430_v6 = vpop.f32.mrb[3].mxu0 }
 0x3e3   : > { %v937_v7 = vadd.f32 1e-05, %v936_v5 }
 0x3e5   : > { %4834 = vrsqrt.f32 %v937_v7 }
 0x3ef   : > { %v4835_v8 = vpop.eup %4834 }
 0x3f0   : > { %4440 = vmatmul.mubr.msk.f32.vlgmr.msra.gmra.mrb[2].mxu1 %vm645_vm1, %v4835_v8 }
 0x4c3   : > { %v1008_v15 = vpop.f32.mrb[2].mxu1 }
 0x4c4   : > { %v1019_v16 = vrot.slane %v1008_v15, %v816_v39  ;;  %v4441_v17 = vpop.f32.mrb[3].mxu1 }
 0x4c6   : > { %v1020_v18 = vcombine.high %v1019_v16, %v1019_v16  ;;  %v1027_v19 = vrot.slane %v1019_v16, %v816_v39 }
 0x4c8   : > { %v1034_v20 = vrot.slane %v1020_v18, %v816_v39  ;;  %v1038_v21 = vrot.slane %v1027_v19, %v835_v42 }
 0x4ca   : > { %v1042_v23 = vrot.slane %v1034_v20, %v835_v42  ;;  %v1045_v24 = vmul.f32 %v1038_v21, %v843_v49 }
 0x4cc   : > { %v1046_v26 = vmul.f32 %v1042_v23, %v844_v50  ;;  %v1054_v27 = vmul.f32 %v4246_v22, %v1045_v24 }
 0x4ce   : > { %v1055_v28 = vmul.f32 %v4246_v22, %v1046_v26  ;;  %v1063_v29 = vadd.f32 %v4247_v25, %v1054_v27 }
 0x4d0   : > { %v1064_v30 = vadd.f32 %v4247_v25, %v1055_v28  ;;  %1065 = vst.msk [vmem:[#allocation2] sm:$0xff] %vm645_vm1, %v1063_v29  ;;  %4450 = vmatprep.mubr.msk.f32.mxu0 %vm645_vm1, %v1063_v29 }
 0x4d2   : > { %1066 = vst.msk [vmem:[#allocation2 + $0x8] sm:$0xff] %vm645_vm1, %v1064_v30  ;;  %4451 = vmatmul.mubr.msk.f32.vlgmr.msra.gmra.mrb[4].mxu0 %vm645_vm1, %v1064_v30 }
 0x5a5   : > { %v4452_v32 = vpop.f32.mrb[4].mxu0 }
 0x5a6   : > { %v1156_v33 = vadd.f32 %v4452_v32, %v4248_v31  ;;  %v1150_v34 = vpop.f32.mrb[5].mxu0 }
 0x5a7   : > { %v1151_v35 = vadd.f32 %v4248_v31, %v1150_v34 }
 0x5a8   : > { %1161 = vst.msk [vmem:[#allocation3 + $0x8] sm:$0xff] %vm1159_vm3, %v1156_v33  ;;  %1174 = vrot.lane.b32.xlu1 %v1156_v33, %s5217_s25  ;;  %1166 = vrot.lane.b32.xlu0 %v1156_v33, %s5218_s11 }
 0x5a9   : > { %1160 = vst.msk [vmem:[#allocation3] sm:$0xff] %vm1159_vm3, %v1151_v35 }
 0x5ac   : > { %1182 = vrot.lane.b32.xlu1 %v1156_v33, %s5219_s29  ;;  %1164 = vrot.lane.b32.xlu0 %v1151_v35, %s5218_s11 }
 0x5b0   : > { %1191 = vrot.lane.b32.xlu1 %v1156_v33, %s5220_s16  ;;  %1180 = vrot.lane.b32.xlu0 %v1151_v35, %s5219_s29 }
 0x5b4   : > { %1200 = vrot.lane.b32.xlu1 %v1156_v33, %s5221_s5  ;;  %1189 = vrot.lane.b32.xlu0 %v1151_v35, %s5220_s16 }
 0x5b8   : > { %1209 = vrot.lane.b32.xlu1 %v1156_v33, %s5222_s3  ;;  %1198 = vrot.lane.b32.xlu0 %v1151_v35, %s5221_s5 }
 0x5bc   : > { %1218 = vrot.lane.b32.xlu1 %v1156_v33, %s5223_s2  ;;  %1207 = vrot.lane.b32.xlu0 %v1151_v35, %s5222_s3 }
 0x5c0   : > { %1227 = vrot.lane.b32.xlu1 %v1156_v33, %s5224_s13  ;;  %1216 = vrot.lane.b32.xlu0 %v1151_v35, %s5223_s2 }
 0x5c4   : > { %1236 = vrot.lane.b32.xlu1 %v1156_v33, %s5225_s24  ;;  %1225 = vrot.lane.b32.xlu0 %v1151_v35, %s5224_s13 }
 0x5c8   : > { %1245 = vrot.lane.b32.xlu1 %v1156_v33, %s5226_s9  ;;  %1234 = vrot.lane.b32.xlu0 %v1151_v35, %s5225_s24 }
 0x5cc   : > { %1172 = vrot.lane.b32.xlu1 %v1151_v35, %s5217_s25  ;;  %1243 = vrot.lane.b32.xlu0 %v1151_v35, %s5226_s9 }
 0x5d0   : > { %1254 = vrot.lane.b32.xlu1 %v1156_v33, %s5227_s22  ;;  %1252 = vrot.lane.b32.xlu0 %v1151_v35, %s5227_s22 }
 0x61a   : > { %v1175_v36 = vpop.permute.xlu1 %1174  ;;  %v1167_v37 = vpop.permute.xlu0 %1166 }
 0x61b   : > { %1179 = vst.msk [vmem:[#allocation5 + $0x8] sm:$0xff] %vm1159_vm3, %v1175_v36  ;;  %1171 = vst.msk [vmem:[#allocation4 + $0x8] sm:$0xff] %vm1159_vm3, %v1167_v37 }
 0x61e   : > { %v1183_v38 = vpop.permute.xlu1 %1182  ;;  %v1165_v39 = vpop.permute.xlu0 %1164 }
 0x61f   : > { %1188 = vst.msk [vmem:[#allocation3 + $0x18] sm:$0xff] %vm1159_vm3, %v1183_v38  ;;  %1170 = vst.msk [vmem:[#allocation4] sm:$0xff] %vm1159_vm3, %v1165_v39 }
 0x622   : > { %v1192_v40 = vpop.permute.xlu1 %1191  ;;  %v1181_v41 = vpop.permute.xlu0 %1180 }
 0x623   : > { %1197 = vst.msk [vmem:[#allocation4 + $0x18] sm:$0xff] %vm1159_vm3, %v1192_v40  ;;  %1187 = vst.msk [vmem:[#allocation3 + $0x10] sm:$0xff] %vm1159_vm3, %v1181_v41 }
 0x626   : > { %v1201_v42 = vpop.permute.xlu1 %1200  ;;  %v1190_v43 = vpop.permute.xlu0 %1189 }
 0x627   : > { %1206 = vst.msk [vmem:[#allocation5 + $0x18] sm:$0xff] %vm1159_vm3, %v1201_v42  ;;  %1196 = vst.msk [vmem:[#allocation4 + $0x10] sm:$0xff] %vm1159_vm3, %v1190_v43 }
 0x62a   : > { %v1210_v44 = vpop.permute.xlu1 %1209  ;;  %v1199_v45 = vpop.permute.xlu0 %1198 }
 0x62b   : > { %1215 = vst.msk [vmem:[#allocation3 + $0x28] sm:$0xff] %vm1159_vm3, %v1210_v44  ;;  %1205 = vst.msk [vmem:[#allocation5 + $0x10] sm:$0xff] %vm1159_vm3, %v1199_v45 }
 0x62e   : > { %v1219_v46 = vpop.permute.xlu1 %1218  ;;  %v1208_v47 = vpop.permute.xlu0 %1207 }
 0x62f   : > { %1224 = vst.msk [vmem:[#allocation4 + $0x28] sm:$0xff] %vm1159_vm3, %v1219_v46  ;;  %1214 = vst.msk [vmem:[#allocation3 + $0x20] sm:$0xff] %vm1159_vm3, %v1208_v47 }
 0x632   : > { %v1228_v48 = vpop.permute.xlu1 %1227  ;;  %v1217_v49 = vpop.permute.xlu0 %1216 }
 0x633   : > { %1233 = vst.msk [vmem:[#allocation5 + $0x28] sm:$0xff] %vm1159_vm3, %v1228_v48  ;;  %1223 = vst.msk [vmem:[#allocation4 + $0x20] sm:$0xff] %vm1159_vm3, %v1217_v49 }
 0x636   : > { %v1237_v50 = vpop.permute.xlu1 %1236  ;;  %v1226_v51 = vpop.permute.xlu0 %1225 }
 0x637   : > { %1242 = vst.msk [vmem:[#allocation3 + $0x38] sm:$0xff] %vm1159_vm3, %v1237_v50  ;;  %1232 = vst.msk [vmem:[#allocation5 + $0x20] sm:$0xff] %vm1159_vm3, %v1226_v51 }
 0x63a   : > { %v1246_v52 = vpop.permute.xlu1 %1245  ;;  %v1235_v53 = vpop.permute.xlu0 %1234 }
 0x63b   : > { %1251 = vst.msk [vmem:[#allocation4 + $0x38] sm:$0xff] %vm1159_vm3, %v1246_v52  ;;  %1241 = vst.msk [vmem:[#allocation3 + $0x30] sm:$0xff] %vm1159_vm3, %v1235_v53 }
 0x63e   : > { %v1173_v54 = vpop.permute.xlu1 %1172  ;;  %v1244_v55 = vpop.permute.xlu0 %1243 }
 0x63f   : > { %1178 = vst.msk [vmem:[#allocation5] sm:$0xff] %vm1159_vm3, %v1173_v54  ;;  %1250 = vst.msk [vmem:[#allocation4 + $0x30] sm:$0xff] %vm1159_vm3, %v1244_v55 }
 0x642   : > { %v1255_v56 = vpop.permute.xlu1 %1254  ;;  %v1253_v57 = vpop.permute.xlu0 %1252 }
 0x643   : > { %1260 = vst.msk [vmem:[#allocation5 + $0x38] sm:$0xff] %vm1159_vm3, %v1255_v56  ;;  %1259 = vst.msk [vmem:[#allocation5 + $0x30] sm:$0xff] %vm1159_vm3, %v1253_v57 }
 0x644 PF: > { %s6305_s28 = sld [smem:[#allocation30_spill]]  ;;  %v1271_v58 = vld [vmem:[%s5744_s1] sm:$0xff]  ;;  %vm1361_vm4 = vcmask 64512   ;;  %v1272_v59 = vld [vmem:[%s5744_s1 + $0x8] sm:$0xff]  ;;  %v1299_v60 = vlaneseq  ;;  %v5228_v61 = vmov 0.0   ;;  %vm5231_vm5 = vmmov 0  }
 0x645   : > { %4453 = vmatprep.subr.mxu0 %v5228_v61  ;;  %4458 = vmatprep.subr.mxu1 %v5228_v61  ;;  %v5229_v62 = vmov 1983009808   ;;  %v5230_v1 = vmov 1934713408   ;;  %v1273_v18 = vld [vmem:[%s5744_s1 + $0x10] sm:$0xff]  ;;  %v1274_v22 = vld [vmem:[%s5744_s1 + $0x18] sm:$0xff] }
 0x646   : > { %4454 = vmatpush3.xpose.msk.msra.mxu0 %vm1361_vm4, %v1271_v58  ;;  %4459 = vmatpush3.xpose.msk.msra.mxu1 %vm1361_vm4, %v1272_v59  ;;  %v1297_v63 = vunpack.c.l.s4 %v5229_v62  ;;  %v1300_v0 = vshrl.u32 %v1299_v60, 7  ;;  %v1328_v2 = vunpack.c.l.s4 %v5230_v1  ;;  %v1275_v23 = vld [vmem:[%s5744_s1 + $0x20] sm:$0xff]  ;;  %v1276_v27 = vld [vmem:[%s5744_s1 + $0x28] sm:$0xff]  ;;  %v1277_v28 = vld [vmem:[%s5744_s1 + $0x30] sm:$0xff] }
 0x647   : > { %4455 = vmatprep.mubr.msk.f32.mxu0 %vm5231_vm5, %v5228_v61  ;;  %4463 = vmatprep.subr.mxu0 %v5228_v61  ;;  %v1278_v33 = vld [vmem:[%s5744_s1 + $0x38] sm:$0xff]  ;;  %v1279_v43 = vld [vmem:[%s5750_s12] sm:$0xff]  ;;  %v1280_v45 = vld [vmem:[%s5750_s12 + $0x8] sm:$0xff] }
 0x648   : > { %v1298_v6 = vunpack.c.0.s8 %v1297_v63  ;;  %v1329_v8 = vunpack.c.0.s8 %v1328_v2  ;;  %4460 = vmatprep.mubr.msk.f32.mxu1 %vm5231_vm5, %v5228_v61  ;;  %4468 = vmatprep.subr.mxu1 %v5228_v61  ;;  %v1281_v47 = vld [vmem:[%s5750_s12 + $0x10] sm:$0xff]  ;;  %v1282_v50 = vld [vmem:[%s5750_s12 + $0x18] sm:$0xff]  ;;  %v1283_v52 = vld [vmem:[%s5750_s12 + $0x20] sm:$0xff] }
 0x649   : > { %v1284_v55 = vld [vmem:[%s5750_s12 + $0x28] sm:$0xff]  ;;  %v1285_v56 = vld [vmem:[%s5750_s12 + $0x30] sm:$0xff]  ;;  %v1286_v59 = vld [vmem:[%s5750_s12 + $0x38] sm:$0xff] }
 0x64a   : > { %s5833_s4 = sshll.u32 %s6305_s28, 4  ;;  %v5854_v9 = vsub.s32 %v1298_v6, %v1300_v0  ;;  %v5856_v10 = vsub.s32 %v1329_v8, %v1300_v0  ;;  %p4300_p10 = scmp.ne.s32.totalorder %s6305_s28, 3 }
 0x64b   : > { %s1262_s27 = scalar_lea.vmem [#allocation3], %s5833_s4  ;;  %s1265_s25 = scalar_lea.vmem [#allocation4], %s5833_s4  ;;  %vm3854_vm6 = vcmask (!%p4300_p10), 130112   ;;  %vm3868_vm7 = vcmask (!%p4300_p10), 195712   ;;  %vm3882_vm8 = vcmask (!%p4300_p10), 261312   ;;  %vm3898_vm9 = vcmask (!%p4300_p10), 261120  }
 0x64c   : > { %v5842_v3 = vld [vmem:[%s1262_s27] sm:$0xff]  ;;  %v5844_v4 = vld [vmem:[%s1262_s27 + $0x8] sm:$0xff]  ;;  %s1268_s1 = scalar_lea.vmem [#allocation5], %s5833_s4  ;;  %s3832_s12 = scalar_lea.vmem [#allocation6], %s5833_s4 }
 0x64d   : > { %v1295_v5 = vcombine.high %v5842_v3, %v5228_v61  ;;  %v1310_v7 = vcombine.high %v5844_v4, %v5228_v61  ;;  %v1302_v11 = vrot.slane %v5842_v3, %v5854_v9  ;;  %v1317_v12 = vrot.slane %v5844_v4, %v5854_v9  ;;  %v4272_v31 = vld.sshfl [vmem:[%s1265_s25] sm:$0xff pattern:$0x76325410]  ;;  %v4273_v32 = vld.sshfl [vmem:[%s1265_s25 + $0x8] sm:$0xff pattern:$0x76325410] }
 0x64e   : > { %v1266_v34 = vld [vmem:[%s1265_s25] sm:$0xff]  ;;  %v1267_v36 = vld [vmem:[%s1265_s25 + $0x8] sm:$0xff]  ;;  %v2204_v39 = vcombine.low %v4272_v31, %v4273_v32  ;;  %v2205_v40 = vcombine.high %v4272_v31, %v4273_v32  ;;  %s5233_s11 = smov (!%p4300_p10), 16   ;;  %s6306_s5 = sld [smem:[#allocation52_spill]] (!%p4300_p10) }
 0x64f   : > { %v1309_v13 = vrot.slane %v1295_v5, %v5854_v9  ;;  %v1324_v14 = vrot.slane %v1310_v7, %v5854_v9  ;;  %v1325_v15 = vcombine.low %v1302_v11, %v1317_v12  ;;  %v1326_v16 = vcombine.high %v1302_v11, %v1317_v12  ;;  %s5234_s28 = smov (!%p4300_p10), 24   ;;  %s6307_s25 = sld [smem:[#allocation53_spill]] (!%p4300_p10) }
 0x650   : > { %v2173_v35 = vcombine.high %v1266_v34, %v5228_v61  ;;  %v2189_v38 = vcombine.high %v1267_v36, %v5228_v61  ;;  %v2212_v44 = vrot.slane %v2204_v39, %v5856_v10  ;;  %v2219_v49 = vrot.slane %v2205_v40, %v5856_v10 }
 0x651   : > { %v1333_v17 = vrot.slane %v1325_v15, %v5856_v10  ;;  %v1340_v19 = vrot.slane %v1326_v16, %v5856_v10  ;;  %v1341_v20 = vcombine.low %v1309_v13, %v1324_v14  ;;  %v1342_v26 = vcombine.high %v1309_v13, %v1324_v14 }
 0x652   : > { %v2187_v41 = vrot.slane %v2173_v35, %v5854_v9  ;;  %v2203_v42 = vrot.slane %v2189_v38, %v5854_v9  ;;  %v2236_v48 = vcombine.high %v2212_v44, %v5228_v61  ;;  %v2237_v53 = vcombine.high %v2219_v49, %v5228_v61 }
 0x653   : > { %4456 = vmatmul.mubr.msk.f32.vlgmr.msra.gmra.mrb[0].mxu0 %vm1361_vm4, %v1333_v17  ;;  %v1357_v21 = vcombine.high %v1333_v17, %v5228_v61  ;;  %v1358_v24 = vcombine.high %v1340_v19, %v5228_v61  ;;  %v1349_v25 = vrot.slane %v1341_v20, %v5856_v10  ;;  %v1356_v30 = vrot.slane %v1342_v26, %v5856_v10 }
 0x654   : > { %4464 = vmatpush3.xpose.msk.msra.mxu0 %vm1361_vm4, %v1273_v18  ;;  %4465 = vmatprep.mubr.msk.f32.mxu0 %vm5231_vm5, %v5228_v61  ;;  %v2220_v46 = vcombine.low %v2187_v41, %v2203_v42  ;;  %v2221_v51 = vcombine.high %v2187_v41, %v2203_v42 }
 0x655   : > { %4461 = vmatmul.mubr.msk.f32.vlgmr.msra.gmra.mrb[0].mxu1 %vm1361_vm4, %v1357_v21  ;;  %4473 = vmatprep.subr.mxu0 %v5228_v61  ;;  %v1359_v29 = vcombine.high %v1349_v25, %v5228_v61  ;;  %v1360_v37 = vcombine.high %v1356_v30, %v5228_v61 }
 0x656   : > { %4469 = vmatpush3.xpose.msk.msra.mxu1 %vm1361_vm4, %v1274_v22  ;;  %4470 = vmatprep.mubr.msk.f32.mxu1 %vm5231_vm5, %v5228_v61  ;;  %v2228_v54 = vrot.slane %v2220_v46, %v5856_v10  ;;  %v2235_v58 = vrot.slane %v2221_v51, %v5856_v10 }
 0x657   : > { %4466 = vmatmul.mubr.msk.f32.vlgmr.msra.gmra.mrb[2].mxu0 %vm1361_vm4, %v1340_v19  ;;  %4478 = vmatprep.subr.mxu1 %v5228_v61 }
 0x658   : > { %4474 = vmatpush3.xpose.msk.msra.mxu0 %vm1361_vm4, %v1275_v23  ;;  %4475 = vmatprep.mubr.msk.f32.mxu0 %vm5231_vm5, %v5228_v61  ;;  %v2238_v57 = vcombine.high %v2228_v54, %v5228_v61  ;;  %v2239_v60 = vcombine.high %v2235_v58, %v5228_v61 }
 0x659   : > { %4471 = vmatmul.mubr.msk.f32.vlgmr.msra.gmra.mrb[2].mxu1 %vm1361_vm4, %v1358_v24  ;;  %4483 = vmatprep.subr.mxu0 %v5228_v61 }
 0x65a   : > { %4479 = vmatpush3.xpose.msk.msra.mxu1 %vm1361_vm4, %v1276_v27  ;;  %4480 = vmatprep.mubr.msk.f32.mxu1 %vm5231_vm5, %v5228_v61 }
 0x65b   : > { %4476 = vmatmul.mubr.msk.f32.vlgmr.msra.gmra.mrb[4].mxu0 %vm1361_vm4, %v1349_v25  ;;  %4488 = vmatprep.subr.mxu1 %v5228_v61 }
 0x65c   : > { %4484 = vmatpush3.xpose.msk.msra.mxu0 %vm1361_vm4, %v1277_v28  ;;  %4485 = vmatprep.mubr.msk.f32.mxu0 %vm5231_vm5, %v5228_v61 }
 0x65d   : > { %4481 = vmatmul.mubr.msk.f32.vlgmr.msra.gmra.mrb[4].mxu1 %vm1361_vm4, %v1359_v29  ;;  %4493 = vmatprep.subr.mxu0 %v5228_v61 }
 0x65e   : > { %4489 = vmatpush3.xpose.msk.msra.mxu1 %vm1361_vm4, %v1278_v33  ;;  %4490 = vmatprep.mubr.msk.f32.mxu1 %vm5231_vm5, %v5228_v61 }
 0x65f   : > { %4486 = vmatmul.mubr.msk.f32.vlgmr.msra.gmra.mrb[6].mxu0 %vm1361_vm4, %v1356_v30  ;;  %4498 = vmatprep.subr.mxu1 %v5228_v61 }
 0x660   : > { %4494 = vmatpush3.xpose.msk.msra.mxu0 %vm1361_vm4, %v1266_v34  ;;  %4495 = vmatprep.mubr.msk.f32.mxu0 %vm5231_vm5, %v5228_v61 }
 0x661   : > { %4491 = vmatmul.mubr.msk.f32.vlgmr.msra.gmra.mrb[6].mxu1 %vm1361_vm4, %v1360_v37  ;;  %4503 = vmatprep.subr.mxu0 %v5228_v61 }
 0x662   : > { %4499 = vmatpush3.xpose.msk.msra.mxu1 %vm1361_vm4, %v1267_v36  ;;  %4500 = vmatprep.mubr.msk.f32.mxu1 %vm5231_vm5, %v5228_v61 }
 0x663   : > { %4496 = vmatmul.mubr.msk.f32.vlgmr.msra.gmra.mrb[8].mxu0 %vm1361_vm4, %v5842_v3  ;;  %4508 = vmatprep.subr.mxu1 %v5228_v61 }
 0x664   : > { %4504 = vmatpush3.xpose.msk.msra.mxu0 %vm1361_vm4, %v1279_v43  ;;  %4505 = vmatprep.mubr.msk.f32.mxu0 %vm5231_vm5, %v5228_v61 }
 0x665   : > { %4501 = vmatmul.mubr.msk.f32.vlgmr.msra.gmra.mrb[8].mxu1 %vm1361_vm4, %v5844_v4  ;;  %4513 = vmatprep.subr.mxu0 %v5228_v61 }
 0x666   : > { %4509 = vmatpush3.xpose.msk.msra.mxu1 %vm1361_vm4, %v1280_v45  ;;  %4510 = vmatprep.mubr.msk.f32.mxu1 %vm5231_vm5, %v5228_v61 }
 0x667   : > { %4506 = vmatmul.mubr.msk.f32.vlgmr.msra.gmra.mrb[10].mxu0 %vm1361_vm4, %v2212_v44  ;;  %4518 = vmatprep.subr.mxu1 %v5228_v61 }
 0x668   : > { %4514 = vmatpush3.xpose.msk.msra.mxu0 %vm1361_vm4, %v1281_v47  ;;  %4515 = vmatprep.mubr.msk.f32.mxu0 %vm5231_vm5, %v5228_v61 }
 0x669   : > { %4511 = vmatmul.mubr.msk.f32.vlgmr.msra.gmra.mrb[10].mxu1 %vm1361_vm4, %v2236_v48  ;;  %4523 = vmatprep.subr.mxu0 %v5228_v61 }
 0x66a   : > { %4519 = vmatpush3.xpose.msk.msra.mxu1 %vm1361_vm4, %v1282_v50  ;;  %4520 = vmatprep.mubr.msk.f32.mxu1 %vm5231_vm5, %v5228_v61 }
 0x66b   : > { %4516 = vmatmul.mubr.msk.f32.vlgmr.msra.gmra.mrb[12].mxu0 %vm1361_vm4, %v2219_v49  ;;  %4528 = vmatprep.subr.mxu1 %v5228_v61 }
 0x66c   : > { %4524 = vmatpush3.xpose.msk.msra.mxu0 %vm1361_vm4, %v1283_v52  ;;  %4525 = vmatprep.mubr.msk.f32.mxu0 %vm5231_vm5, %v5228_v61 }
 0x66d   : > { %4521 = vmatmul.mubr.msk.f32.vlgmr.msra.gmra.mrb[12].mxu1 %vm1361_vm4, %v2237_v53  ;;  %4533 = vmatprep.subr.mxu0 %v5228_v61 }
 0x66e   : > { %4529 = vmatpush3.xpose.msk.msra.mxu1 %vm1361_vm4, %v1284_v55  ;;  %4530 = vmatprep.mubr.msk.f32.mxu1 %vm5231_vm5, %v5228_v61 }
 0x66f   : > { %4526 = vmatmul.mubr.msk.f32.vlgmr.msra.gmra.mrb[14].mxu0 %vm1361_vm4, %v2228_v54  ;;  %4538 = vmatprep.subr.mxu1 %v5228_v61 }
 0x670   : > { %4534 = vmatpush3.xpose.msk.msra.mxu0 %vm1361_vm4, %v1285_v56  ;;  %4535 = vmatprep.mubr.msk.f32.mxu0 %vm5231_vm5, %v5228_v61 }
 0x671   : > { %4531 = vmatmul.mubr.msk.f32.vlgmr.msra.gmra.mrb[14].mxu1 %vm1361_vm4, %v2238_v57  ;;  %4543 = vmatprep.subr.mxu0 %v5228_v61 }
 0x672   : > { %4539 = vmatpush3.xpose.msk.msra.mxu1 %vm1361_vm4, %v1286_v59  ;;  %4540 = vmatprep.mubr.msk.f32.mxu1 %vm5231_vm5, %v5228_v61 }
 0x673   : > { %4536 = vmatmul.mubr.msk.f32.vlgmr.msra.gmra.mrb[16].mxu0 %vm1361_vm4, %v2235_v58  ;;  %4548 = vmatprep.subr.mxu1 %v5228_v61 }
 0x674   : > { %4545 = vmatprep.mubr.msk.f32.mxu0 %vm5231_vm5, %v5228_v61 }
 0x675   : > { %4541 = vmatmul.mubr.msk.f32.vlgmr.msra.gmra.mrb[16].mxu1 %vm1361_vm4, %v2239_v60 }
 0x676   : > { %4550 = vmatprep.mubr.msk.f32.mxu1 %vm5231_vm5, %v5228_v61 }
 0x726   : > { %v1434_v62 = vpop.f32.mrb[0].mxu0 }
 0x727   : > { %v4457_v63 = vpop.f32.mrb[1].mxu0 }
 0x728   : > { %v1510_v0 = vpop.f32.mrb[0].mxu1 }
 0x729   : > { %v4462_v1 = vpop.f32.mrb[1].mxu1 }
 0x72a   : > { %v1586_v2 = vpop.f32.mrb[2].mxu0 }
 0x72b   : > { %v1970_v3 = vcombine.low %v1434_v62, %v1586_v2  ;;  %v4467_v4 = vpop.f32.mrb[3].mxu0 }
 0x72c   : > { %v1662_v5 = vpop.f32.mrb[2].mxu1 }
 0x72d   : > { %v1978_v6 = vcombine.low %v1510_v0, %v1662_v5  ;;  %v4472_v7 = vpop.f32.mrb[3].mxu1  ;;  %v1977_v11 = vrot.slane %v1970_v3, %v5854_v9 }
 0x72e   : > { %v1738_v8 = vpop.f32.mrb[4].mxu0 }
 0x72f   : > { %v1985_v12 = vrot.slane %v1978_v6, %v5854_v9  ;;  %v4477_v13 = vpop.f32.mrb[5].mxu0 }
 0x730   : > { %v1814_v14 = vpop.f32.mrb[4].mxu1 }
 0x731   : > { %v2002_v15 = vcombine.low %v1977_v11, %v1985_v12  ;;  %v4482_v16 = vpop.f32.mrb[5].mxu1 }
 0x732   : > { %v1890_v17 = vpop.f32.mrb[6].mxu0 }
 0x733   : > { %v1986_v18 = vcombine.low %v1738_v8, %v1890_v17  ;;  %v4487_v19 = vpop.f32.mrb[7].mxu0  ;;  %v2009_v31 = vrot.slane %v2002_v15, %v5856_v10 }
 0x734   : > { %v1966_v20 = vpop.f32.mrb[6].mxu1 }
 0x735   : > { %v1994_v21 = vcombine.low %v1814_v14, %v1966_v20  ;;  %v4492_v22 = vpop.f32.mrb[7].mxu1  ;;  %v1993_v24 = vrot.slane %v1986_v18, %v5854_v9 }
 0x736   : > { %v2092_v23 = vpop.f32.mrb[8].mxu0  ;;  %v1288_v22 = vld [vmem:[%s5752_s10 + $0x8] sm:$0xff] }
 0x737   : > { %v2001_v25 = vrot.slane %v1994_v21, %v5854_v9  ;;  %v4497_v26 = vpop.f32.mrb[9].mxu0  ;;  %v1287_v21 = vld [vmem:[%s5752_s10] sm:$0xff]  ;;  %4549 = vmatpush3.msra.mxu1 %v1288_v22 }
 0x738   : > { %v2168_v27 = vpop.f32.mrb[8].mxu1  ;;  %4544 = vmatpush3.msra.mxu0 %v1287_v21  ;;  %4558 = vmatprep.subr.mxu1 %v5228_v61 }
 0x739   : > { %v2010_v28 = vcombine.low %v1993_v24, %v2001_v25  ;;  %v4502_v29 = vpop.f32.mrb[9].mxu1  ;;  %4553 = vmatprep.subr.mxu0 %v5228_v61 }
 0x73a   : > { %v2312_v30 = vpop.f32.mrb[10].mxu0 }
 0x73b   : > { %v2017_v32 = vrot.slane %v2010_v28, %v5856_v10  ;;  %v4507_v33 = vpop.f32.mrb[11].mxu0 }
 0x73c   : > { %v2388_v34 = vpop.f32.mrb[10].mxu1 }
 0x73d   : > { %v2018_v35 = vcombine.low %v2009_v31, %v2017_v32  ;;  %v2019_v36 = vcombine.high %v2009_v31, %v2017_v32  ;;  %v4512_v37 = vpop.f32.mrb[11].mxu1 }
 0x73e   : > { %v2464_v38 = vpop.f32.mrb[12].mxu0  ;;  %v1289_v37 = vld [vmem:[%s5752_s10 + $0x10] sm:$0xff] }
 0x73f   : > { %v2093_v39 = vadd.f32 %v2092_v23, %v2018_v35  ;;  %v2169_v40 = vadd.f32 %v2168_v27, %v2019_v36  ;;  %v2848_v41 = vcombine.low %v2312_v30, %v2464_v38  ;;  %v4517_v42 = vpop.f32.mrb[13].mxu0 }
 0x740   : > { %v2540_v43 = vpop.f32.mrb[12].mxu1 }
 0x741   : > { %v2856_v44 = vcombine.low %v2388_v34, %v2540_v43  ;;  %v4522_v45 = vpop.f32.mrb[13].mxu1  ;;  %v2855_v47 = vrot.slane %v2848_v41, %v5854_v9  ;;  %v1291_v43 = vld [vmem:[%s5752_s10 + $0x20] sm:$0xff] }
 0x742   : > { %v2616_v46 = vpop.f32.mrb[14].mxu0  ;;  %v1292_v45 = vld [vmem:[%s5752_s10 + $0x28] sm:$0xff] }
 0x743   : > { %v2863_v48 = vrot.slane %v2856_v44, %v5854_v9  ;;  %v4527_v49 = vpop.f32.mrb[15].mxu0 }
 0x744   : > { %v2692_v50 = vpop.f32.mrb[14].mxu1 }
 0x745   : > { %v4532_v51 = vpop.f32.mrb[15].mxu1  ;;  %v2880_v52 = vcombine.low %v2855_v47, %v2863_v48  ;;  %v1293_v48 = vld [vmem:[%s5752_s10 + $0x30] sm:$0xff] }
 0x746   : > { %v2768_v53 = vpop.f32.mrb[16].mxu0 }
 0x747   : > { %v2864_v54 = vcombine.low %v2616_v46, %v2768_v53  ;;  %v4537_v55 = vpop.f32.mrb[17].mxu0  ;;  %v2887_v63 = vrot.slane %v2880_v52, %v5856_v10  ;;  %v1269_v52 = vld [vmem:[%s1268_s1] sm:$0xff] }
 0x748   : > { %v2844_v56 = vpop.f32.mrb[16].mxu1 }
 0x749   : > { %v2872_v57 = vcombine.low %v2692_v50, %v2844_v56  ;;  %v4542_v58 = vpop.f32.mrb[17].mxu1  ;;  %v2871_v59 = vrot.slane %v2864_v54, %v5854_v9  ;;  %v1294_v50 = vld [vmem:[%s5752_s10 + $0x38] sm:$0xff]  ;;  %v1270_v54 = vld [vmem:[%s1268_s1 + $0x8] sm:$0xff] }
 0x74b   : > { %v2879_v60 = vrot.slane %v2872_v57, %v5854_v9 }
 0x74d   : > { %v2888_v62 = vcombine.low %v2871_v59, %v2879_v60 }
 0x74f   : > { %v2895_v0 = vrot.slane %v2888_v62, %v5856_v10 }
 0x751   : > { %v2896_v1 = vcombine.low %v2887_v63, %v2895_v0  ;;  %v2897_v2 = vcombine.high %v2887_v63, %v2895_v0 }
 0x753   : > { %2898 = vxpose.xlu0.b32.start.end [1/1] (short) (narrow) %v2896_v1, 8 }
 0x757   : > { %2930 = vxpose.xlu0.b32.start.end [1/1] (short) (narrow) %v2897_v2, 8 }
 0x7d3   : > { %v2914_v3 = vpop.trf.xlu0 }
 0x7d4   : > { %v2962_v4 = vadd.f32 %v2914_v3, %v2093_v39 }
 0x7d6   : > { %v2964_v5 = vsel %vm1361_vm4, %v2962_v4, -inf }
 0x7d7   : > { %2965 = vmax.xlane.f32.xlu1 %v2964_v5  ;;  %v2946_v6 = vpop.trf.xlu0 }
 0x7d8   : > { %v2963_v7 = vadd.f32 %v2946_v6, %v2169_v40  ;;  %v1290_v40 = vld [vmem:[%s5752_s10 + $0x18] sm:$0xff]  ;;  %s5232_s10 = smov (!%p4300_p10), 8  }
 0x7da   : > { %v2967_v8 = vsel %vm1361_vm4, %v2963_v7, -inf }
 0x7db   : > { %2968 = vmax.xlane.f32.xlu1 %v2967_v8 }
 0x864   : > { %v2966_v11 = vpop.xlane.xlu1 %2965 }
 0x865   : > { %v2970_v12 = vsub.f32 %v2962_v4, %v2966_v11 }
 0x867   : > { %v2972_v13 = vmul.f32 1.442695, %v2970_v12 }
 0x868   : > { %v2969_v14 = vpop.xlane.xlu1 %2968 }
 0x869   : > { %4836 = vpow2.f32 %v2972_v13  ;;  %v2971_v15 = vsub.f32 %v2963_v7, %v2969_v14 }
 0x86b   : > { %v2974_v16 = vmul.f32 1.442695, %v2971_v15 }
 0x86d   : > { %4838 = vpow2.f32 %v2974_v16 }
 0x873   : > { %v4837_v17 = vpop.eup %4836 }
 0x874   : > { %v2976_v18 = vsel %vm1361_vm4, %v4837_v17, 0.0 }
 0x875   : > { %2977 = vadd.xlane.f32.xlu0 %v2976_v18 }
 0x877   : > { %v4839_v19 = vpop.eup %4838 }
 0x878   : > { %v2979_v20 = vsel %vm1361_vm4, %v4839_v19, 0.0 }
 0x879   : > { %2980 = vadd.xlane.f32.xlu1 %v2979_v20 }
 0x902   : > { %v2978_v23 = vpop.xlane.xlu0 %2977 }
 0x903   : > { %4840 = vrcp.f32 %v2978_v23 }
 0x906   : > { %v2981_v24 = vpop.xlane.xlu1 %2980 }
 0x907   : > { %4842 = vrcp.f32 %v2981_v24 }
 0x90d   : > { %v4841_v25 = vpop.eup %4840 }
 0x90e   : > { %v2984_v26 = vmul.f32 %v4841_v25, %v4837_v17 }
 0x910   : > { %v2986_v29 = vcombine.high %v2984_v26, %v5228_v61  ;;  %v2993_v30 = vrot.slane %v2984_v26, %v5854_v9 }
 0x911   : > { %v4843_v27 = vpop.eup %4842 }
 0x912   : > { %v2985_v28 = vmul.f32 %v4843_v27, %v4839_v19  ;;  %v3000_v38 = vrot.slane %v2986_v29, %v5854_v9 }
 0x914   : > { %v3001_v31 = vcombine.high %v2985_v28, %v5228_v61  ;;  %v3008_v32 = vrot.slane %v2985_v28, %v5854_v9 }
 0x916   : > { %v3016_v33 = vcombine.low %v2993_v30, %v3008_v32  ;;  %v3017_v34 = vcombine.high %v2993_v30, %v3008_v32  ;;  %v3015_v35 = vrot.slane %v3001_v31, %v5854_v9 }
 0x918   : > { %v3024_v36 = vrot.slane %v3016_v33, %v5856_v10  ;;  %v3031_v41 = vrot.slane %v3017_v34, %v5856_v10  ;;  %v3032_v42 = vcombine.low %v3000_v38, %v3015_v35  ;;  %v3033_v47 = vcombine.high %v3000_v38, %v3015_v35  ;;  %v3887_v33 = vld [vmem:[%s6306_s5] sm:$0xff] (!%p4300_p10)  ;;  %v3888_v34 = vld [vmem:[%s6306_s5 + $0x8] sm:$0xff] (!%p4300_p10)  ;;  %v3889_v35 = vld [vmem:[%s6306_s5 + $0x10] sm:$0xff] (!%p4300_p10) }
 0x91a   : > { %4546 = vmatmul.mubr.msk.f32.vlgmr.msra.gmra.mrb[18].mxu0 %vm1361_vm4, %v3024_v36  ;;  %v3048_v39 = vcombine.high %v3024_v36, %v5228_v61  ;;  %v3049_v44 = vcombine.high %v3031_v41, %v5228_v61  ;;  %v3040_v46 = vrot.slane %v3032_v42, %v5856_v10  ;;  %v3047_v51 = vrot.slane %v3033_v47, %v5856_v10  ;;  %v3890_v36 = vld [vmem:[%s6306_s5 + $0x18] sm:$0xff] (!%p4300_p10) }
 0x91b   : > { %4554 = vmatpush3.msra.mxu0 %v1289_v37  ;;  %4555 = vmatprep.mubr.msk.f32.mxu0 %vm5231_vm5, %v5228_v61  ;;  %v4636_v37 = vpack.c.bf16 (!%p4300_p10), %v3888_v34, %v3887_v33  ;;  %v4640_v38 = vpack.c.bf16 (!%p4300_p10), %v3890_v36, %v3889_v35 }
 0x91c   : > { %4551 = vmatmul.mubr.msk.f32.vlgmr.msra.gmra.mrb[18].mxu1 %vm1361_vm4, %v3048_v39  ;;  %4563 = vmatprep.subr.mxu0 %v5228_v61  ;;  %v3050_v49 = vcombine.high %v3040_v46, %v5228_v61  ;;  %v3051_v53 = vcombine.high %v3047_v51, %v5228_v61 }
 0x91d   : > { %4559 = vmatpush3.msra.mxu1 %v1290_v40  ;;  %4560 = vmatprep.mubr.msk.f32.mxu1 %vm5231_vm5, %v5228_v61 }
 0x91e   : > { %4556 = vmatmul.mubr.msk.f32.vlgmr.msra.gmra.mrb[20].mxu0 %vm1361_vm4, %v3031_v41  ;;  %4568 = vmatprep.subr.mxu1 %v5228_v61 }
 0x91f   : > { %4564 = vmatpush3.msra.mxu0 %v1291_v43  ;;  %4565 = vmatprep.mubr.msk.f32.mxu0 %vm5231_vm5, %v5228_v61 }
 0x920   : > { %4561 = vmatmul.mubr.msk.f32.vlgmr.msra.gmra.mrb[20].mxu1 %vm1361_vm4, %v3049_v44  ;;  %4573 = vmatprep.subr.mxu0 %v5228_v61 }
 0x921   : > { %4569 = vmatpush3.msra.mxu1 %v1292_v45  ;;  %4570 = vmatprep.mubr.msk.f32.mxu1 %vm5231_vm5, %v5228_v61 }
 0x922   : > { %4566 = vmatmul.mubr.msk.f32.vlgmr.msra.gmra.mrb[22].mxu0 %vm1361_vm4, %v3040_v46  ;;  %4578 = vmatprep.subr.mxu1 %v5228_v61 }
 0x923   : > { %4574 = vmatpush3.msra.mxu0 %v1293_v48  ;;  %4575 = vmatprep.mubr.msk.f32.mxu0 %vm5231_vm5, %v5228_v61 }
 0x924   : > { %4571 = vmatmul.mubr.msk.f32.vlgmr.msra.gmra.mrb[22].mxu1 %vm1361_vm4, %v3050_v49  ;;  %4583 = vmatprep.subr.mxu0 %v5228_v61  ;;  %v4301_v49 = vld [vmem:[%s6307_s25] ss:$0 sm:$0xff] (!%p4300_p10) }
 0x925   : > { %4579 = vmatpush3.msra.mxu1 %v1294_v50  ;;  %4580 = vmatprep.mubr.msk.f32.mxu1 %vm5231_vm5, %v5228_v61 }
 0x926   : > { %4576 = vmatmul.mubr.msk.f32.vlgmr.msra.gmra.mrb[24].mxu0 %vm1361_vm4, %v3047_v51  ;;  %4588 = vmatprep.subr.mxu1 %v5228_v61  ;;  %v3981_v51 = vld [vmem:[#allocation2 + $0x8] sm:$0xff] (!%p4300_p10) }
 0x927   : > { %4584 = vmatpush3.msra.mxu0 %v1269_v52  ;;  %4585 = vmatprep.mubr.msk.f32.mxu0 %vm5231_vm5, %v5228_v61 }
 0x928   : > { %4581 = vmatmul.mubr.msk.f32.vlgmr.msra.gmra.mrb[24].mxu1 %vm1361_vm4, %v3051_v53  ;;  %4637 = vmatprep.subr.bf16.mxu0 (!%p4300_p10), %v4636_v37 }
 0x929   : > { %4589 = vmatpush3.msra.mxu1 %v1270_v54  ;;  %4590 = vmatprep.mubr.msk.f32.mxu1 %vm5231_vm5, %v5228_v61  ;;  %v3980_v54 = vld [vmem:[#allocation2] sm:$0xff] (!%p4300_p10) }
 0x92a   : > { %4586 = vmatmul.mubr.msk.f32.vlgmr.msra.gmra.mrb[26].mxu0 %vm1361_vm4, %v2984_v26 }
 0x92b   : > { %4639 = vmatpush3.bf16.msra.mxu0 (!%p4300_p10), %v4636_v37 }
 0x92c   : > { %4591 = vmatmul.mubr.msk.f32.vlgmr.msra.gmra.mrb[26].mxu1 %vm1361_vm4, %v2985_v28  ;;  %4641 = vmatprep.subr.bf16.mxu0 (!%p4300_p10), %v4640_v38 }
 0x92f   : > { %4643 = vmatpush3.bf16.msra.mxu0 (!%p4300_p10), %v4640_v38 }
 0x9ed   : > { %v3121_v55 = vpop.f32.mrb[18].mxu0 }
 0x9ee   : > { %v4547_v56 = vpop.f32.mrb[19].mxu0 }
 0x9ef   : > { %v3194_v57 = vpop.f32.mrb[18].mxu1 }
 0x9f0   : > { %v4552_v58 = vpop.f32.mrb[19].mxu1 }
 0x9f1   : > { %v3267_v59 = vpop.f32.mrb[20].mxu0 }
 0x9f2   : > { %v3636_v60 = vcombine.low %v3121_v55, %v3267_v59  ;;  %v4557_v62 = vpop.f32.mrb[21].mxu0 }
 0x9f3   : > { %v3340_v63 = vpop.f32.mrb[20].mxu1 }
 0x9f4   : > { %v3644_v0 = vcombine.low %v3194_v57, %v3340_v63  ;;  %v4562_v1 = vpop.f32.mrb[21].mxu1  ;;  %v3643_v3 = vrot.slane %v3636_v60, %v5854_v9 }
 0x9f5   : > { %v3413_v2 = vpop.f32.mrb[22].mxu0 }
 0x9f6   : > { %v3651_v4 = vrot.slane %v3644_v0, %v5854_v9  ;;  %v4567_v61 = vpop.f32.mrb[23].mxu0 }
 0x9f7   : > { %v3486_v5 = vpop.f32.mrb[22].mxu1 }
 0x9f8   : > { %v3668_v6 = vcombine.low %v3643_v3, %v3651_v4  ;;  %v4572_v7 = vpop.f32.mrb[23].mxu1 }
 0x9f9   : > { %v3559_v8 = vpop.f32.mrb[24].mxu0 }
 0x9fa   : > { %v3652_v11 = vcombine.low %v3413_v2, %v3559_v8  ;;  %v4577_v12 = vpop.f32.mrb[25].mxu0  ;;  %v3675_v23 = vrot.slane %v3668_v6, %v5856_v10 }
 0x9fb   : > { %v3632_v13 = vpop.f32.mrb[24].mxu1 }
 0x9fc   : > { %v3660_v14 = vcombine.low %v3486_v5, %v3632_v13  ;;  %v4582_v15 = vpop.f32.mrb[25].mxu1  ;;  %v3659_v17 = vrot.slane %v3652_v11, %v5854_v9 }
 0x9fd   : > { %v3755_v16 = vpop.f32.mrb[26].mxu0 }
 0x9fe   : > { %v3667_v18 = vrot.slane %v3660_v14, %v5854_v9  ;;  %v4587_v19 = vpop.f32.mrb[27].mxu0 }
 0x9ff   : > { %v3828_v20 = vpop.f32.mrb[26].mxu1 }
 0xa00   : > { %v3676_v21 = vcombine.low %v3659_v17, %v3667_v18  ;;  %v4592_v22 = vpop.f32.mrb[27].mxu1 }
 0xa02   : > { %v3683_v24 = vrot.slane %v3676_v21, %v5856_v10  ;;  %3838 = sbr.rel (%p4300_p10) target bundleno = 2926 (0xb6e), region = 104 }
 0xa04   : > { %v3684_v25 = vcombine.low %v3675_v23, %v3683_v24  ;;  %v3685_v26 = vcombine.high %v3675_v23, %v3683_v24 }
 0xa06   : > { %v3756_v27 = vadd.f32 %v3755_v16, %v3684_v25  ;;  %v3829_v28 = vadd.f32 %v3828_v20, %v3685_v26 }
 0xa08   : > { %3833 = vst.msk [vmem:[%s3832_s12] sm:$0xff] %vm1361_vm4, %v3756_v27  ;;  %3834 = vst.msk [vmem:[%s3832_s12 + $0x8] sm:$0xff] %vm1361_vm4, %v3829_v28 }
 0xa0f   : > { %v3844_v9 = vld [vmem:[#allocation6 + $0x10] sm:$0xff]  ;;  %v3858_v29 = vld [vmem:[#allocation6 + $0x20] sm:$0xff]  ;;  %v3845_v30 = vld [vmem:[#allocation6 + $0x18] sm:$0xff] }
 0xa10   : > { %3848 = vrot.lane.b32.xlu0 %v3844_v9, %s5232_s10  ;;  %3862 = vrot.lane.b32.xlu1 %v3858_v29, %s5233_s11  ;;  %v3859_v10 = vld [vmem:[#allocation6 + $0x28] sm:$0xff]  ;;  %v3839_v31 = vld [vmem:[#allocation6] sm:$0xff]  ;;  %v3872_v39 = vld [vmem:[#allocation6 + $0x30] sm:$0xff] }
 0xa11   : > { %v3840_v32 = vld [vmem:[#allocation6 + $0x8] sm:$0xff]  ;;  %3841 = vst.msk [vmem:[#allocation7] sm:$0xff] %vm1361_vm4, %v3839_v31  ;;  %v3873_v40 = vld [vmem:[#allocation6 + $0x38] sm:$0xff] }
 0xa12   : > { %3842 = vst.msk [vmem:[#allocation7 + $0x8] sm:$0xff] %vm1361_vm4, %v3840_v32 }
 0xa14   : > { %3850 = vrot.lane.b32.xlu0 %v3845_v30, %s5232_s10  ;;  %3864 = vrot.lane.b32.xlu1 %v3859_v10, %s5233_s11 }
 0xa18   : > { %3876 = vrot.lane.b32.xlu0 %v3872_v39, %s5234_s28  ;;  %3878 = vrot.lane.b32.xlu1 %v3873_v40, %s5234_s28 }
 0xa82   : > { %v3849_v41 = vpop.permute.xlu0 %3848  ;;  %v3863_v42 = vpop.permute.xlu1 %3862 }
 0xa83   : > { %3855 = vst.msk [vmem:[#allocation7] sm:$0xff] %vm3854_vm6, %v3849_v41 }
 0xa84   : > { %3869 = vst.msk [vmem:[#allocation7] sm:$0xff] %vm3868_vm7, %v3863_v42 }
 0xa86   : > { %v3851_v43 = vpop.permute.xlu0 %3850  ;;  %v3865_v44 = vpop.permute.xlu1 %3864 }
 0xa87   : > { %3856 = vst.msk [vmem:[#allocation7 + $0x8] sm:$0xff] %vm3854_vm6, %v3851_v43 }
 0xa88   : > { %3870 = vst.msk [vmem:[#allocation7 + $0x8] sm:$0xff] %vm3868_vm7, %v3865_v44 }
 0xa8a   : > { %v3877_v45 = vpop.permute.xlu0 %3876  ;;  %v3879_v46 = vpop.permute.xlu1 %3878 }
 0xa8b   : > { %3883 = vst.msk [vmem:[#allocation7] sm:$0xff] %vm3882_vm8, %v3877_v45  ;;  %3884 = vst.msk [vmem:[#allocation7 + $0x8] sm:$0xff] %vm3882_vm8, %v3879_v46 }
 0xa92   : > { %v3885_v47 = vld [vmem:[#allocation7] sm:$0xff]  ;;  %v3886_v48 = vld [vmem:[#allocation7 + $0x8] sm:$0xff] }
 0xa93   : > { %4601 = vmatprep.mubr.msk.f32.mxu0 %vm3898_vm9, %v3885_v47 }
 0xa94   : > { %4602 = vmatmul.mubr.msk.f32.vlgmr.msra.gmra.mrb[0].mxu0 %vm3898_vm9, %v3886_v48 }
 0xb67   : > { %v4603_v50 = vpop.f32.mrb[0].mxu0 }
 0xb68   : > { %v3977_v52 = vadd.f32 %v4603_v50, %v4301_v49  ;;  %v3971_v53 = vpop.f32.mrb[1].mxu0 }
 0xb69   : > { %v3972_v55 = vadd.f32 %v4301_v49, %v3971_v53 }
 0xb6a   : > { %v3983_v56 = vadd.f32 %v3981_v51, %v3977_v52 }
 0xb6b   : > { %v3982_v57 = vadd.f32 %v3980_v54, %v3972_v55 }
 0xb6c   : > { %3985 = vst.msk [vmem:[%s5766_s21 + $0x8] sm:$0xff] %vm3898_vm9, %v3983_v56 }
 0xb6d   : > { %3984 = vst.msk [vmem:[%s5766_s21] sm:$0xff] %vm3898_vm9, %v3982_v57 }
 0xb6e PF: > { %s6308_s1 = sld [smem:[#allocation31_spill]]  ;;  %s6309_s12 = sld [smem:[#allocation32_spill]] }
 0xb6f   : > { %s6310_s10 = sld [smem:[#allocation41_spill]]  ;;  %s4002_s16 = sshll.u32 %s5766_s21, 4  ;;  %s6092_s16 = int_to_ptr.vmem [resolvable:$true] %s4002_s16 }
 0xb70   : > { %s6311_s9 = sld [smem:[#allocation54_spill]]  ;;  %s3987_s28 = scalar_lea.sflag [#allocation10], %s5732_s18 }
 0xb71   : > { %s5048_s4 = scalar_lea.vmem %s6092_s16, 256  ;;  %s5235_s27 = smov [#allocation20]  }
 0xb72   : > { %p5049_p11 = scmp.ne.s32.totalorder %s6092_s16, %s5048_s4  ;;  %s5052_s21 = sshll.u32 %s5235_s27, 4  ;;  %s5053_s21 = int_to_ptr.vmem [resolvable:$false] %s5052_s21 }
 0xb73   : > { %s5054_s25 = scalar_lea.vmem %s5053_s21, 512  ;;  %p5055_p12 = scmp.lt.s32.totalorder %s6092_s16, %s5053_s21 }
 0xb74   : > { %s4305_s11 = sshll.u32 %s6308_s1, 1  ;;  %s4306_s29 = sshll.u32 %s6309_s12, 2 }
 0xb75   : > { %s3999_s3 = sadd.s32 %s4306_s29, %s4305_s11  ;;  %p6312_p6 = scmp.ne.s32.totalorder %s6310_s10, 0 }
 0xb76   : > { %s4307_s2 = sshll.u32 %s3999_s3, 7  ;;  %p5056_p2 = scmp.lt.s32.totalorder %s5054_s25, %s5048_s4 }
 0xb77   : > { %s6097_s22 = scalar_lea.hbm %s6311_s9, %s4307_s2  ;;  %p5050_p13 = pnand %p5049_p11, %p6312_p6 }
 0xb78   : > { %p5057_p5 = por %p5056_p2, %p5055_p12 }
 0xb79   : > { %p5051_p9 = pneg %p5050_p13 }
 0xb7b   : > { %p5058_p1 = pnand %p5057_p5, %p5051_p9 }
 0xb7d   : > { %5061 = shalt.err (!%p5058_p1)
}
 0xb7e   : > { %s5062_s1 = scalar_lea.hbm %s6097_s22, 256  ;;  %s5066_s29 = scalar_lea.hbm %s6311_s9, 1024 }
 0xb7f   : > { %p5063_p0 = scmp.ne.s32.totalorder %s6097_s22, %s5062_s1  ;;  %p5067_p4 = scmp.lt.u32.totalorder %s6097_s22, %s6311_s9 }
 0xb80   : > { %p5068_p7 = scmp.lt.u32.totalorder %s5066_s29, %s5062_s1  ;;  %p5070_p11 = scmp.lt.u32.totalorder %s5062_s1, %s6097_s22 }
 0xb81   : > { %p5064_p3 = pnand %p5063_p0, %p6312_p6 }
 0xb82   : > { %p5069_p10 = por %p5068_p7, %p5067_p4 }
 0xb83   : > { %p5065_p8 = pneg %p5064_p3 }
 0xb84   : > { %p5071_p13 = por %p5070_p11, %p5069_p10 }
 0xb86   : > { %p5072_p9 = pnand %p5071_p13, %p5065_p8 }
 0xb88   : > { %5075 = shalt.err (!%p5072_p9)
}
 0xb89   : > { %s5236_s13 = smov 128   ;;  %s5237_s24 = smov 8  }
 0xb8a   : > { %4664 = dma.vmem_to_hbm [thread:$0]  (%p6312_p6), %s6092_s16, 256, %s6097_s22, %s3987_s28, %s5236_s13, %s5236_s13, %s5237_s24  }
 0xb8b PF: > { %s6313_s4 = sld [smem:[#allocation28_spill]]  ;;  %s6314_s27 = sld [smem:[#allocation37_spill]] }
 0xb8c   : > { %p4700_p12 = scmp.ge.s32.totalorder %s5202_s15, 2 }
 0xb91   : > { %s4017_s21 = sand.u32 1, %s6313_s4   ;;  %p6315_p2 = scmp.ne.s32.totalorder %s6314_s27, 0 }
 0xb92   : > { %s4018_s25 = scalar_lea.sflag [#allocation10], %s4017_s21 }
 0xb93   : > { %p4690_p5 = pnand %p4700_p12, %p6315_p2 }
 0xb95   : > { %5149 = dma.done.wait (!%p4690_p5), %s4018_s25, 256  }
 0xb96   : > { %5151 = vsyncadd (!%p4690_p5), %s4018_s25, 4294967040  ;;  %s35_s15 = sadd.s32 1, %s5202_s15   ;;  %s6317_s21 = sld [smem:[#allocation27_spill]] }
 0xb97   : > { %p6128_p1 = scmp.ge.s32.totalorder %s35_s15, 18   ;;  %s6318_s24 = sld [smem:[#allocation29_spill]] }
 0xb98   : > { %s6319_s28 = sld [smem:[#allocation33_spill]]  ;;  %s6320_s13 = sld [smem:[#allocation42_spill]] }
 0xb99   : > { %s6321_s22 = smov %s5162_s23  ;;  %s6322_s23 = smov %s5624_s7 }
 0xb9a   : > { %s6323_s25 = smov %s5174_s26  ;;  %s6324_s26 = smov %s5619_s17 }
 0xb9b   : > { %s6325_s27 = smov %s5190_s30  ;;  %s6326_s29 = smov %s5198_s14 }
 0xb9c   : > { %s6327_s30 = smov %s6330_s19  ;;  %s6328_s14 = smov %s6338_s6 }
 0xb9d   :  { %34 = sbr.rel (!%p6128_p1) target bundleno = 28 (0x1c), region = 186 }
 0xba4   :  { %4023 = vsyncpa [#allocation9], 1 }
 0xba5   :  { %4025 = vsyncpa [#allocation9 + $0x1], 1 }
 0xba6   :  { %4026 = vsyncpa [#allocation12], 1 }
 0xba7   :  { %4028 = vsyncpa [#allocation12 + $0x1], 1 }
 0xba8   :  { %4029 = vsyncpa [#allocation15], 1 }
 0xba9   :  { %4031 = vsyncpa [#allocation15 + $0x1], 1 }
 0xbaa   :  { %4032 = vsyncpa [#allocation18], 1 }
 0xbab   :  { %4033 = vsyncpa [#allocation10], 1 }
 0xbac   :  { %4035 = vsyncpa [#allocation10 + $0x1], 1 }

</bundles_post_ra>
